<compile_context>
chip_gen: v7x
topology: tpu7x:2x2x1
jax: 0.10.0
libtpu: 0.0.40
codegen_flags: <defaults>
</compile_context>

<pallas_src>
import math
import jax
import jax.numpy as jnp
from jax.experimental import pallas as pl
from jax.experimental.pallas import tpu as pltpu

# ----------------------------- config ---------------------------------------
HIDDEN = 32
N_HEADS = 4
D_HEAD = HIDDEN // N_HEADS
D_FF = 64
VOCAB = 128
N_LAYERS = 2
EMB_DIM = 32            # embedding_dim == hidden_size (t5-small default case)
NUM_BUCKETS = 32
MAX_DISTANCE = 128
EPS = 1e-6
NEG = -1e9


# ------------------------- BlockSpec helpers --------------------------------
def _bspec_batch(shape):
    """Slice dim 0 per grid step b; full extent on the remaining dims."""
    nd = len(shape)
    block = (1,) + tuple(shape[1:])
    return pl.BlockSpec(block, lambda b, _nd=nd: (b,) + (0,) * (_nd - 1))


def _bspec_full(shape):
    """Whole array as a single block, same block for every grid step."""
    nd = len(shape)
    return pl.BlockSpec(tuple(shape), lambda b, _nd=nd: (0,) * _nd)


# --------------------------- in-kernel math ----------------------------------
def _rms(x, g):
    # T5LayerNorm: x * rsqrt(mean(x^2) + eps) * g  (no mean subtraction/bias)
    var = jnp.mean(x * x, axis=-1, keepdims=True)
    return x * jax.lax.rsqrt(var + EPS) * g


def _mha(q, k, v, bias, wo):
    """Multi-head attention core on 2D values.

    q: [S_q, H], k/v: [S_kv, H], bias: [nH, S_q, S_kv] or None, wo: [H, H].
    Returns [S_q, H] (already O-projected: sum_h ctx_h @ Wo[h]).
    T5 semantics: no 1/sqrt(d) scaling; additive bias carries rel-pos + masks.
    """
    out = jnp.zeros((q.shape[0], HIDDEN), jnp.float32)
    for h in range(N_HEADS):
        sl = slice(h * D_HEAD, (h + 1) * D_HEAD)
        qh, kh, vh = q[:, sl], k[:, sl], v[:, sl]
        s = jax.lax.dot_general(qh, kh, (((1,), (1,)), ((), ())),
                                preferred_element_type=jnp.float32)
        if bias is not None:
            s = s + bias[h]
        m = jnp.max(s, axis=-1, keepdims=True)
        p = jnp.exp(s - m)
        p = p / jnp.sum(p, axis=-1, keepdims=True)
        ctx = jnp.dot(p, vh, preferred_element_type=jnp.float32)
        out = out + jnp.dot(ctx, wo[sl, :], preferred_element_type=jnp.float32)
    return out


def _ffn(x, wi, wo):
    # T5 DenseReluDense (no biases)
    h = jnp.maximum(jnp.dot(x, wi, preferred_element_type=jnp.float32), 0.0)
    return jnp.dot(h, wo, preferred_element_type=jnp.float32)


# --------------------------- fused forward kernel ----------------------------
def _make_forward_kernel(with_loss):
    def kernel(x_ref, enc_bias_ref, mask_ref, dec_bias_ref, *rest):
        if with_loss:
            (lbl_ref,
             e_sa_ln, e_sa_wqkv, e_sa_wo, e_ff_ln, e_ff_wi, e_ff_wo,
             e_fln, pw, pb,
             d_sa_ln, d_sa_wqkv, d_sa_wo,
             d_ca_ln, d_ca_wq, d_ca_wkv, d_ca_wo,
             d_ff_ln, d_ff_wi, d_ff_wo,
             d_fln, ow, ob,
             logits_ref, nll_ref) = rest
        else:
            (e_sa_ln, e_sa_wqkv, e_sa_wo, e_ff_ln, e_ff_wi, e_ff_wo,
             e_fln, pw, pb,
             d_sa_ln, d_sa_wqkv, d_sa_wo,
             d_ca_ln, d_ca_wq, d_ca_wkv, d_ca_wo,
             d_ff_ln, d_ff_wi, d_ff_wo,
             d_fln, ow, ob,
             logits_ref) = rest

        # ----------------- encoder (one batch element per grid step) ----------
        h = x_ref[0]                       # [S, H]
        ebias = enc_bias_ref[0]            # [nH, S, S]
        for l in range(N_LAYERS):          # static, fully unrolled
            n = _rms(h, e_sa_ln[l])
            qkv = jnp.dot(n, e_sa_wqkv[l], preferred_element_type=jnp.float32)
            h = h + _mha(qkv[:, :HIDDEN], qkv[:, HIDDEN:2 * HIDDEN],
                         qkv[:, 2 * HIDDEN:], ebias, e_sa_wo[l])
            n = _rms(h, e_ff_ln[l])
            h = h + _ffn(n, e_ff_wi[l], e_ff_wo[l])
        h = _rms(h, e_fln[...])

        # masked mean pooling over the sequence (MXU dot) + projection
        mask = mask_ref[0]                                              # [1, S]
        num = jnp.dot(mask, h, preferred_element_type=jnp.float32)      # [1, H]
        den = jnp.maximum(jnp.sum(mask, axis=-1, keepdims=True), 1e-9)  # all-pad guard
        comp = jnp.dot(num / den, pw[...],
                       preferred_element_type=jnp.float32) + pb[...]    # [1, EMB]

        # ----------------- decoder ------------------------------------------
        # EMB_DIM == HIDDEN -> decode()'s re-projection branch is skipped.
        s_d = logits_ref.shape[1]
        enc_states = jnp.broadcast_to(comp, (s_d, HIDDEN))   # reused by all layers
        dbias = dec_bias_ref[0]                              # [nH, S_d, S_d]

        g = enc_states                                       # decoder inputs_embeds
        for l in range(N_LAYERS):
            # self-attention (causal + padding mask folded into bias)
            n = _rms(g, d_sa_ln[l])
            qkv = jnp.dot(n, d_sa_wqkv[l], preferred_element_type=jnp.float32)
            g = g + _mha(qkv[:, :HIDDEN], qkv[:, HIDDEN:2 * HIDDEN],
                         qkv[:, 2 * HIDDEN:], dbias, d_sa_wo[l])
            # cross-attention against the broadcast compressed embedding
            # (no rel-pos bias, no encoder mask -> zero additive bias)
            n = _rms(g, d_ca_ln[l])
            q = jnp.dot(n, d_ca_wq[l], preferred_element_type=jnp.float32)
            kv = jnp.dot(enc_states, d_ca_wkv[l], preferred_element_type=jnp.float32)
            g = g + _mha(q, kv[:, :HIDDEN], kv[:, HIDDEN:], None, d_ca_wo[l])
            # feed-forward
            n = _rms(g, d_ff_ln[l])
            g = g + _ffn(n, d_ff_wi[l], d_ff_wo[l])
        g = _rms(g, d_fln[...])

        logits = jnp.dot(g, ow[...], preferred_element_type=jnp.float32) + ob[...]
        logits_ref[...] = logits[None]                       # [1, S_d, V] lane-dense

        if with_loss:
            lbl = lbl_ref[0]                                 # [S_d, 1] int32
            col = jax.lax.broadcasted_iota(jnp.int32, (s_d, VOCAB), 1)
            tgt = jnp.sum(jnp.where(col == lbl, logits, 0.0), axis=-1, keepdims=True)
            m = jnp.max(logits, axis=-1, keepdims=True)
            lse = jnp.log(jnp.sum(jnp.exp(logits - m), axis=-1, keepdims=True)) + m
            nll = lse - tgt                                  # [S_d, 1]
            nll_ref[...] = jnp.sum(nll, axis=0, keepdims=True)[None]  # per-batch NLL sum

    return kernel


# --------------------------- pallas_call wrapper ------------------------------
def _forward_call(params, x, enc_bias, mask3, dec_bias, lbl3, with_loss):
    B = x.shape[0]
    S_d = dec_bias.shape[-1]
    enc = params["enc"]
    dec = params["dec"]
    weights = [enc["sa_ln"], enc["sa_wqkv"], enc["sa_wo"],
               enc["ff_ln"], enc["ff_wi"], enc["ff_wo"],
               params["enc_final_ln"], params["proj_w"], params["proj_b"],
               dec["sa_ln"], dec["sa_wqkv"], dec["sa_wo"],
               dec["ca_ln"], dec["ca_wq"], dec["ca_wkv"], dec["ca_wo"],
               dec["ff_ln"], dec["ff_wi"], dec["ff_wo"],
               params["dec_final_ln"], params["out_w"], params["out_b"]]
    batched = [x, enc_bias, mask3, dec_bias] + ([lbl3] if with_loss else [])
    in_arrays = batched + weights
    in_specs = ([_bspec_batch(a.shape) for a in batched]
                + [_bspec_full(w.shape) for w in weights])

    logits_shape = jax.ShapeDtypeStruct((B, S_d, VOCAB), jnp.float32)
    logits_spec = pl.BlockSpec((1, S_d, VOCAB), lambda b: (b, 0, 0))
    if with_loss:
        out_shape = (logits_shape, jax.ShapeDtypeStruct((B, 1, 1), jnp.float32))
        out_specs = (logits_spec, pl.BlockSpec((1, 1, 1), lambda b: (b, 0, 0)))
    else:
        out_shape = logits_shape
        out_specs = logits_spec

    return pl.pallas_call(
        _make_forward_kernel(with_loss),
        out_shape=out_shape,
        grid=(B,),
        in_specs=in_specs,
        out_specs=out_specs,
        compiler_params=pltpu.CompilerParams(dimension_semantics=("parallel",)),
    )(*in_arrays)


# ------------------- T5 relative position bias (XLA glue, once) ---------------
def _relative_position_bucket(rel_pos, bidirectional):
    num_buckets = NUM_BUCKETS
    buckets = jnp.zeros_like(rel_pos)
    if bidirectional:
        num_buckets //= 2
        buckets = buckets + (rel_pos > 0).astype(jnp.int32) * num_buckets
        rel_pos = jnp.abs(rel_pos)
    else:
        rel_pos = -jnp.minimum(rel_pos, 0)
    max_exact = num_buckets // 2
    is_small = rel_pos < max_exact
    rel_if_large = max_exact + (
        jnp.log(rel_pos.astype(jnp.float32) / max_exact + 1e-20)
        / math.log(MAX_DISTANCE / max_exact)
        * (num_buckets - max_exact)
    ).astype(jnp.int32)
    rel_if_large = jnp.minimum(rel_if_large, num_buckets - 1)
    return buckets + jnp.where(is_small, rel_pos, rel_if_large)


def _position_bias(rel_emb, S_q, S_k, bidirectional):
    ctx = jnp.arange(S_q)[:, None]
    mem = jnp.arange(S_k)[None, :]
    buckets = _relative_position_bucket(mem - ctx, bidirectional)
    vals = rel_emb[buckets]                                 # [S_q, S_k, nH]
    return jnp.transpose(vals, (2, 0, 1))[None]             # [1, nH, S_q, S_k]


def _encoder_bias(attn_mask, rel_emb, S):
    add = (1.0 - attn_mask[:, None, None, :]) * NEG          # [B,1,1,S]
    return (_position_bias(rel_emb, S, S, True) + add).astype(jnp.float32)


def _decoder_self_bias(attn_mask, rel_emb, S):
    causal = jnp.tril(jnp.ones((S, S), jnp.float32))
    comb = causal[None, None] * attn_mask[:, None, None, :]  # [B,1,S,S]
    add = (1.0 - comb) * NEG
    return (_position_bias(rel_emb, S, S, False) + add).astype(jnp.float32)


# ----------------------------- parameters -------------------------------------
def init_params(key):
    keys = iter(jax.random.split(key, 64))

    def nrm(shape, scale=0.05):
        return jax.random.normal(next(keys), shape, jnp.float32) * scale

    def ones_ln():
        return jnp.ones((N_LAYERS, 1, HIDDEN), jnp.float32)

    enc = dict(
        sa_ln=ones_ln(),
        sa_wqkv=nrm((N_LAYERS, HIDDEN, 3 * HIDDEN)),   # Wq|Wk|Wv fused
        sa_wo=nrm((N_LAYERS, HIDDEN, HIDDEN)),
        ff_ln=ones_ln(),
        ff_wi=nrm((N_LAYERS, HIDDEN, D_FF)),
        ff_wo=nrm((N_LAYERS, D_FF, HIDDEN)),
    )
    dec = dict(
        sa_ln=ones_ln(),
        sa_wqkv=nrm((N_LAYERS, HIDDEN, 3 * HIDDEN)),
        sa_wo=nrm((N_LAYERS, HIDDEN, HIDDEN)),
        ca_ln=ones_ln(),
        ca_wq=nrm((N_LAYERS, HIDDEN, HIDDEN)),
        ca_wkv=nrm((N_LAYERS, HIDDEN, 2 * HIDDEN)),    # Wk|Wv fused
        ca_wo=nrm((N_LAYERS, HIDDEN, HIDDEN)),
        ff_ln=ones_ln(),
        ff_wi=nrm((N_LAYERS, HIDDEN, D_FF)),
        ff_wo=nrm((N_LAYERS, D_FF, HIDDEN)),
    )
    return dict(
        embed=nrm((VOCAB, HIDDEN), 0.5),
        enc_rel=nrm((NUM_BUCKETS, N_HEADS)),
        dec_rel=nrm((NUM_BUCKETS, N_HEADS)),
        enc=enc,
        dec=dec,
        enc_final_ln=jnp.ones((1, HIDDEN), jnp.float32),
        dec_final_ln=jnp.ones((1, HIDDEN), jnp.float32),
        proj_w=nrm((HIDDEN, EMB_DIM)), proj_b=jnp.zeros((1, EMB_DIM), jnp.float32),
        out_w=nrm((HIDDEN, VOCAB)), out_b=jnp.zeros((1, VOCAB), jnp.float32),
    )


# ------------------------------ forward ---------------------------------------
def symphony_forward(params, input_ids, attention_mask=None,
                     decoder_input_ids=None, decoder_attention_mask=None,
                     labels=None):
    B, S = input_ids.shape
    if attention_mask is None:
        attention_mask = jnp.ones((B, S), jnp.float32)
    attention_mask = attention_mask.astype(jnp.float32)

    if decoder_input_ids is None:
        decoder_input_ids = input_ids
    if decoder_attention_mask is None:
        decoder_attention_mask = attention_mask
    S_d = decoder_input_ids.shape[1]

    # ---- XLA glue (runs once per forward): embedding gather + biases ----
    x = params["embed"][input_ids]                                     # [B, S, H]
    enc_bias = _encoder_bias(attention_mask, params["enc_rel"], S)     # [B,nH,S,S]
    mask3 = attention_mask[:, None, :]                                 # [B, 1, S]
    dec_bias = _decoder_self_bias(decoder_attention_mask.astype(jnp.float32),
                                  params["dec_rel"], S_d)              # [B,nH,S_d,S_d]

    if labels is not None:
        lbl3 = labels.reshape(B, S_d, 1).astype(jnp.int32)
        logits, nll = _forward_call(params, x, enc_bias, mask3, dec_bias,
                                    lbl3, with_loss=True)
        loss = jnp.sum(nll) / (B * S_d)                                # CE mean reduction
        return loss, logits
    logits = _forward_call(params, x, enc_bias, mask3, dec_bias, None,
                           with_loss=False)
    return logits


# ------------------------------- main ------------------------------------------
if __name__ == "__main__":
    key = jax.random.PRNGKey(0)
    pkey, ikey = jax.random.split(key)
    params = init_params(pkey)

    B, S = 2, 8
    input_ids = jax.random.randint(ikey, (B, S), 0, VOCAB, dtype=jnp.int32)
    attention_mask = jnp.array(
        [[1, 1, 1, 1, 1, 1, 1, 1],
         [1, 1, 1, 1, 1, 0, 0, 0]], dtype=jnp.float32)
    labels = input_ids  # autoencoder target

    fwd = jax.jit(lambda p, ids, am, lbl: symphony_forward(p, ids, am, labels=lbl))
    loss, logits = fwd(params, input_ids, attention_mask, labels)
    jax.block_until_ready((loss, logits))
    assert logits.shape == (B, S, VOCAB)
    assert loss.shape == ()
    assert bool(jnp.isfinite(loss))

    # labels=None path (logits only)
    fwd_nolabel = jax.jit(lambda p, ids, am: symphony_forward(p, ids, am))
    logits2 = fwd_nolabel(params, input_ids, attention_mask)
    jax.block_until_ready(logits2)
    assert logits2.shape == (B, S, VOCAB)

    print("KERNEL_OK")
</pallas_src>

<mosaic_0001>
module attributes {stable_mosaic.version = 11 : i64} {
  func.func @kernel(%arg0: i32, %arg1: memref<1x8x32xf32, #tpu.memory_space<vmem>>, %arg2: memref<1x4x8x8xf32, #tpu.memory_space<vmem>>, %arg3: memref<1x1x8xf32, #tpu.memory_space<vmem>>, %arg4: memref<1x4x8x8xf32, #tpu.memory_space<vmem>>, %arg5: memref<1x8x1xi32, #tpu.memory_space<vmem>>, %arg6: memref<2x1x32xf32, #tpu.memory_space<vmem>>, %arg7: memref<2x32x96xf32, #tpu.memory_space<vmem>>, %arg8: memref<2x32x32xf32, #tpu.memory_space<vmem>>, %arg9: memref<2x1x32xf32, #tpu.memory_space<vmem>>, %arg10: memref<2x32x64xf32, #tpu.memory_space<vmem>>, %arg11: memref<2x64x32xf32, #tpu.memory_space<vmem>>, %arg12: memref<1x32xf32, #tpu.memory_space<vmem>>, %arg13: memref<32x32xf32, #tpu.memory_space<vmem>>, %arg14: memref<1x32xf32, #tpu.memory_space<vmem>>, %arg15: memref<2x1x32xf32, #tpu.memory_space<vmem>>, %arg16: memref<2x32x96xf32, #tpu.memory_space<vmem>>, %arg17: memref<2x32x32xf32, #tpu.memory_space<vmem>>, %arg18: memref<2x1x32xf32, #tpu.memory_space<vmem>>, %arg19: memref<2x32x32xf32, #tpu.memory_space<vmem>>, %arg20: memref<2x32x64xf32, #tpu.memory_space<vmem>>, %arg21: memref<2x32x32xf32, #tpu.memory_space<vmem>>, %arg22: memref<2x1x32xf32, #tpu.memory_space<vmem>>, %arg23: memref<2x32x64xf32, #tpu.memory_space<vmem>>, %arg24: memref<2x64x32xf32, #tpu.memory_space<vmem>>, %arg25: memref<1x32xf32, #tpu.memory_space<vmem>>, %arg26: memref<32x128xf32, #tpu.memory_space<vmem>>, %arg27: memref<1x128xf32, #tpu.memory_space<vmem>>, %arg28: memref<1x8x128xf32, #tpu.memory_space<vmem>>, %arg29: memref<1x1x1xf32, #tpu.memory_space<vmem>>) attributes {dimension_semantics = [#tpu.dimension_semantics<parallel>], iteration_bounds = array<i64: 2>, scalar_prefetch = 0 : i64, scratch_operands = 0 : i64, tpu.core_type = #tpu.core_type<tc>, window_params = [{transform_indices = @transform_0, window_bounds = array<i64: 1, 8, 32>}, {transform_indices = @transform_1, window_bounds = array<i64: 1, 4, 8, 8>}, {transform_indices = @transform_2, window_bounds = array<i64: 1, 1, 8>}, {transform_indices = @transform_3, window_bounds = array<i64: 1, 4, 8, 8>}, {transform_indices = @transform_4, window_bounds = array<i64: 1, 8, 1>}, {pipeline_mode = #tpu.pipeline_mode<synchronous>, transform_indices = @transform_5, window_bounds = array<i64: 2, 1, 32>}, {pipeline_mode = #tpu.pipeline_mode<synchronous>, transform_indices = @transform_6, window_bounds = array<i64: 2, 32, 96>}, {pipeline_mode = #tpu.pipeline_mode<synchronous>, transform_indices = @transform_7, window_bounds = array<i64: 2, 32, 32>}, {pipeline_mode = #tpu.pipeline_mode<synchronous>, transform_indices = @transform_8, window_bounds = array<i64: 2, 1, 32>}, {pipeline_mode = #tpu.pipeline_mode<synchronous>, transform_indices = @transform_9, window_bounds = array<i64: 2, 32, 64>}, {pipeline_mode = #tpu.pipeline_mode<synchronous>, transform_indices = @transform_10, window_bounds = array<i64: 2, 64, 32>}, {pipeline_mode = #tpu.pipeline_mode<synchronous>, transform_indices = @transform_11, window_bounds = array<i64: 1, 32>}, {pipeline_mode = #tpu.pipeline_mode<synchronous>, transform_indices = @transform_12, window_bounds = array<i64: 32, 32>}, {pipeline_mode = #tpu.pipeline_mode<synchronous>, transform_indices = @transform_13, window_bounds = array<i64: 1, 32>}, {pipeline_mode = #tpu.pipeline_mode<synchronous>, transform_indices = @transform_14, window_bounds = array<i64: 2, 1, 32>}, {pipeline_mode = #tpu.pipeline_mode<synchronous>, transform_indices = @transform_15, window_bounds = array<i64: 2, 32, 96>}, {pipeline_mode = #tpu.pipeline_mode<synchronous>, transform_indices = @transform_16, window_bounds = array<i64: 2, 32, 32>}, {pipeline_mode = #tpu.pipeline_mode<synchronous>, transform_indices = @transform_17, window_bounds = array<i64: 2, 1, 32>}, {pipeline_mode = #tpu.pipeline_mode<synchronous>, transform_indices = @transform_18, window_bounds = array<i64: 2, 32, 32>}, {pipeline_mode = #tpu.pipeline_mode<synchronous>, transform_indices = @transform_19, window_bounds = array<i64: 2, 32, 64>}, {pipeline_mode = #tpu.pipeline_mode<synchronous>, transform_indices = @transform_20, window_bounds = array<i64: 2, 32, 32>}, {pipeline_mode = #tpu.pipeline_mode<synchronous>, transform_indices = @transform_21, window_bounds = array<i64: 2, 1, 32>}, {pipeline_mode = #tpu.pipeline_mode<synchronous>, transform_indices = @transform_22, window_bounds = array<i64: 2, 32, 64>}, {pipeline_mode = #tpu.pipeline_mode<synchronous>, transform_indices = @transform_23, window_bounds = array<i64: 2, 64, 32>}, {pipeline_mode = #tpu.pipeline_mode<synchronous>, transform_indices = @transform_24, window_bounds = array<i64: 1, 32>}, {pipeline_mode = #tpu.pipeline_mode<synchronous>, transform_indices = @transform_25, window_bounds = array<i64: 32, 128>}, {pipeline_mode = #tpu.pipeline_mode<synchronous>, transform_indices = @transform_26, window_bounds = array<i64: 1, 128>}, {transform_indices = @transform_27, window_bounds = array<i64: 1, 8, 128>}, {transform_indices = @transform_28, window_bounds = array<i64: 1, 1, 1>}]} {
    %c0 = arith.constant 0 : index
    %c0_0 = arith.constant 0 : index
    %c0_1 = arith.constant 0 : index
    %0 = vector.load %arg1[%c0, %c0_0, %c0_1] : memref<1x8x32xf32, #tpu.memory_space<vmem>>, vector<1x8x32xf32>
    %1 = vector.shape_cast %0 : vector<1x8x32xf32> to vector<8x32xf32>
    %c0_2 = arith.constant 0 : index
    %c0_3 = arith.constant 0 : index
    %c0_4 = arith.constant 0 : index
    %c0_5 = arith.constant 0 : index
    %2 = vector.load %arg2[%c0_2, %c0_3, %c0_4, %c0_5] : memref<1x4x8x8xf32, #tpu.memory_space<vmem>>, vector<1x4x8x8xf32>
    %3 = vector.shape_cast %2 : vector<1x4x8x8xf32> to vector<4x8x8xf32>
    %c0_6 = arith.constant 0 : index
    %c0_7 = arith.constant 0 : index
    %c0_8 = arith.constant 0 : index
    %4 = vector.load %arg6[%c0_6, %c0_7, %c0_8] : memref<2x1x32xf32, #tpu.memory_space<vmem>>, vector<1x1x32xf32>
    %5 = vector.shape_cast %4 : vector<1x1x32xf32> to vector<1x32xf32>
    %6 = arith.mulf %1, %1 : vector<8x32xf32>
    %cst = arith.constant dense<0.000000e+00> : vector<8xf32>
    %7 = vector.multi_reduction <add>, %6, %cst [1] : vector<8x32xf32> to vector<8xf32>
    %8 = vector.shape_cast %7 : vector<8xf32> to vector<8x1xf32>
    %cst_9 = arith.constant 3.200000e+01 : f32
    %9 = vector.broadcast %cst_9 : f32 to vector<8x1xf32>
    %10 = arith.divf %8, %9 : vector<8x1xf32>
    %cst_10 = arith.constant 9.99999997E-7 : f32
    %11 = vector.broadcast %cst_10 : f32 to vector<8x1xf32>
    %12 = arith.addf %10, %11 : vector<8x1xf32>
    %13 = math.rsqrt %12 : vector<8x1xf32>
    %14 = vector.broadcast %13 : vector<8x1xf32> to vector<8x32xf32>
    %15 = arith.mulf %1, %14 : vector<8x32xf32>
    %16 = vector.broadcast %5 : vector<1x32xf32> to vector<8x32xf32>
    %17 = arith.mulf %15, %16 : vector<8x32xf32>
    %c0_11 = arith.constant 0 : index
    %c0_12 = arith.constant 0 : index
    %c0_13 = arith.constant 0 : index
    %18 = vector.load %arg7[%c0_11, %c0_12, %c0_13] : memref<2x32x96xf32, #tpu.memory_space<vmem>>, vector<1x32x96xf32>
    %19 = vector.shape_cast %18 : vector<1x32x96xf32> to vector<32x96xf32>
    %cst_14 = arith.constant dense<0.000000e+00> : vector<8x96xf32>
    %20 = tpu.matmul %17, %19, %cst_14 {dimension_numbers = #tpu.dot_dimension_numbers<[1], [0], [0], [1], [0, 0, 1, 1], [], []>} : vector<8x32xf32>, vector<32x96xf32>, vector<8x96xf32> -> vector<8x96xf32>
    %21 = vector.extract_strided_slice %20 {offsets = [0, 0], sizes = [8, 32], strides = [1, 1]} : vector<8x96xf32> to vector<8x32xf32>
    %22 = vector.extract_strided_slice %20 {offsets = [0, 32], sizes = [8, 32], strides = [1, 1]} : vector<8x96xf32> to vector<8x32xf32>
    %23 = vector.extract_strided_slice %20 {offsets = [0, 64], sizes = [8, 32], strides = [1, 1]} : vector<8x96xf32> to vector<8x32xf32>
    %c0_15 = arith.constant 0 : index
    %c0_16 = arith.constant 0 : index
    %c0_17 = arith.constant 0 : index
    %24 = vector.load %arg8[%c0_15, %c0_16, %c0_17] : memref<2x32x32xf32, #tpu.memory_space<vmem>>, vector<1x32x32xf32>
    %25 = vector.shape_cast %24 : vector<1x32x32xf32> to vector<32x32xf32>
    %cst_18 = arith.constant 0.000000e+00 : f32
    %26 = vector.broadcast %cst_18 : f32 to vector<8x32xf32>
    %27 = vector.extract_strided_slice %21 {offsets = [0, 0], sizes = [8, 8], strides = [1, 1]} : vector<8x32xf32> to vector<8x8xf32>
    %28 = vector.extract_strided_slice %22 {offsets = [0, 0], sizes = [8, 8], strides = [1, 1]} : vector<8x32xf32> to vector<8x8xf32>
    %29 = vector.extract_strided_slice %23 {offsets = [0, 0], sizes = [8, 8], strides = [1, 1]} : vector<8x32xf32> to vector<8x8xf32>
    %cst_19 = arith.constant dense<0.000000e+00> : vector<8x8xf32>
    %30 = tpu.matmul %27, %28, %cst_19 {dimension_numbers = #tpu.dot_dimension_numbers<[1], [1], [0], [0], [0, 0, 1, 0], [], []>} : vector<8x8xf32>, vector<8x8xf32>, vector<8x8xf32> -> vector<8x8xf32>
    %31 = vector.extract_strided_slice %3 {offsets = [0, 0, 0], sizes = [1, 8, 8], strides = [1, 1, 1]} : vector<4x8x8xf32> to vector<1x8x8xf32>
    %32 = vector.shape_cast %31 : vector<1x8x8xf32> to vector<8x8xf32>
    %33 = arith.addf %30, %32 : vector<8x8xf32>
    %cst_20 = arith.constant dense<0xFF800000> : vector<8xf32>
    %34 = vector.multi_reduction <maximumf>, %33, %cst_20 [1] : vector<8x8xf32> to vector<8xf32>
    %35 = vector.shape_cast %34 : vector<8xf32> to vector<8x1xf32>
    %36 = vector.broadcast %35 : vector<8x1xf32> to vector<8x8xf32>
    %37 = arith.subf %33, %36 : vector<8x8xf32>
    %38 = math.exp %37 : vector<8x8xf32>
    %cst_21 = arith.constant dense<0.000000e+00> : vector<8xf32>
    %39 = vector.multi_reduction <add>, %38, %cst_21 [1] : vector<8x8xf32> to vector<8xf32>
    %40 = vector.shape_cast %39 : vector<8xf32> to vector<8x1xf32>
    %41 = vector.broadcast %40 : vector<8x1xf32> to vector<8x8xf32>
    %42 = arith.divf %38, %41 : vector<8x8xf32>
    %cst_22 = arith.constant dense<0.000000e+00> : vector<8x8xf32>
    %43 = tpu.matmul %42, %29, %cst_22 {dimension_numbers = #tpu.dot_dimension_numbers<[1], [0], [0], [1], [0, 0, 1, 1], [], []>} : vector<8x8xf32>, vector<8x8xf32>, vector<8x8xf32> -> vector<8x8xf32>
    %44 = vector.extract_strided_slice %25 {offsets = [0, 0], sizes = [8, 32], strides = [1, 1]} : vector<32x32xf32> to vector<8x32xf32>
    %cst_23 = arith.constant dense<0.000000e+00> : vector<8x32xf32>
    %45 = tpu.matmul %43, %44, %cst_23 {dimension_numbers = #tpu.dot_dimension_numbers<[1], [0], [0], [1], [0, 0, 1, 1], [], []>} : vector<8x8xf32>, vector<8x32xf32>, vector<8x32xf32> -> vector<8x32xf32>
    %46 = arith.addf %26, %45 : vector<8x32xf32>
    %47 = vector.extract_strided_slice %21 {offsets = [0, 8], sizes = [8, 8], strides = [1, 1]} : vector<8x32xf32> to vector<8x8xf32>
    %48 = vector.extract_strided_slice %22 {offsets = [0, 8], sizes = [8, 8], strides = [1, 1]} : vector<8x32xf32> to vector<8x8xf32>
    %49 = vector.extract_strided_slice %23 {offsets = [0, 8], sizes = [8, 8], strides = [1, 1]} : vector<8x32xf32> to vector<8x8xf32>
    %cst_24 = arith.constant dense<0.000000e+00> : vector<8x8xf32>
    %50 = tpu.matmul %47, %48, %cst_24 {dimension_numbers = #tpu.dot_dimension_numbers<[1], [1], [0], [0], [0, 0, 1, 0], [], []>} : vector<8x8xf32>, vector<8x8xf32>, vector<8x8xf32> -> vector<8x8xf32>
    %51 = vector.extract_strided_slice %3 {offsets = [1, 0, 0], sizes = [1, 8, 8], strides = [1, 1, 1]} : vector<4x8x8xf32> to vector<1x8x8xf32>
    %52 = vector.shape_cast %51 : vector<1x8x8xf32> to vector<8x8xf32>
    %53 = arith.addf %50, %52 : vector<8x8xf32>
    %cst_25 = arith.constant dense<0xFF800000> : vector<8xf32>
    %54 = vector.multi_reduction <maximumf>, %53, %cst_25 [1] : vector<8x8xf32> to vector<8xf32>
    %55 = vector.shape_cast %54 : vector<8xf32> to vector<8x1xf32>
    %56 = vector.broadcast %55 : vector<8x1xf32> to vector<8x8xf32>
    %57 = arith.subf %53, %56 : vector<8x8xf32>
    %58 = math.exp %57 : vector<8x8xf32>
    %cst_26 = arith.constant dense<0.000000e+00> : vector<8xf32>
    %59 = vector.multi_reduction <add>, %58, %cst_26 [1] : vector<8x8xf32> to vector<8xf32>
    %60 = vector.shape_cast %59 : vector<8xf32> to vector<8x1xf32>
    %61 = vector.broadcast %60 : vector<8x1xf32> to vector<8x8xf32>
    %62 = arith.divf %58, %61 : vector<8x8xf32>
    %cst_27 = arith.constant dense<0.000000e+00> : vector<8x8xf32>
    %63 = tpu.matmul %62, %49, %cst_27 {dimension_numbers = #tpu.dot_dimension_numbers<[1], [0], [0], [1], [0, 0, 1, 1], [], []>} : vector<8x8xf32>, vector<8x8xf32>, vector<8x8xf32> -> vector<8x8xf32>
    %64 = vector.extract_strided_slice %25 {offsets = [8, 0], sizes = [8, 32], strides = [1, 1]} : vector<32x32xf32> to vector<8x32xf32>
    %cst_28 = arith.constant dense<0.000000e+00> : vector<8x32xf32>
    %65 = tpu.matmul %63, %64, %cst_28 {dimension_numbers = #tpu.dot_dimension_numbers<[1], [0], [0], [1], [0, 0, 1, 1], [], []>} : vector<8x8xf32>, vector<8x32xf32>, vector<8x32xf32> -> vector<8x32xf32>
    %66 = arith.addf %46, %65 : vector<8x32xf32>
    %67 = vector.extract_strided_slice %21 {offsets = [0, 16], sizes = [8, 8], strides = [1, 1]} : vector<8x32xf32> to vector<8x8xf32>
    %68 = vector.extract_strided_slice %22 {offsets = [0, 16], sizes = [8, 8], strides = [1, 1]} : vector<8x32xf32> to vector<8x8xf32>
    %69 = vector.extract_strided_slice %23 {offsets = [0, 16], sizes = [8, 8], strides = [1, 1]} : vector<8x32xf32> to vector<8x8xf32>
    %cst_29 = arith.constant dense<0.000000e+00> : vector<8x8xf32>
    %70 = tpu.matmul %67, %68, %cst_29 {dimension_numbers = #tpu.dot_dimension_numbers<[1], [1], [0], [0], [0, 0, 1, 0], [], []>} : vector<8x8xf32>, vector<8x8xf32>, vector<8x8xf32> -> vector<8x8xf32>
    %71 = vector.extract_strided_slice %3 {offsets = [2, 0, 0], sizes = [1, 8, 8], strides = [1, 1, 1]} : vector<4x8x8xf32> to vector<1x8x8xf32>
    %72 = vector.shape_cast %71 : vector<1x8x8xf32> to vector<8x8xf32>
    %73 = arith.addf %70, %72 : vector<8x8xf32>
    %cst_30 = arith.constant dense<0xFF800000> : vector<8xf32>
    %74 = vector.multi_reduction <maximumf>, %73, %cst_30 [1] : vector<8x8xf32> to vector<8xf32>
    %75 = vector.shape_cast %74 : vector<8xf32> to vector<8x1xf32>
    %76 = vector.broadcast %75 : vector<8x1xf32> to vector<8x8xf32>
    %77 = arith.subf %73, %76 : vector<8x8xf32>
    %78 = math.exp %77 : vector<8x8xf32>
    %cst_31 = arith.constant dense<0.000000e+00> : vector<8xf32>
    %79 = vector.multi_reduction <add>, %78, %cst_31 [1] : vector<8x8xf32> to vector<8xf32>
    %80 = vector.shape_cast %79 : vector<8xf32> to vector<8x1xf32>
    %81 = vector.broadcast %80 : vector<8x1xf32> to vector<8x8xf32>
    %82 = arith.divf %78, %81 : vector<8x8xf32>
    %cst_32 = arith.constant dense<0.000000e+00> : vector<8x8xf32>
    %83 = tpu.matmul %82, %69, %cst_32 {dimension_numbers = #tpu.dot_dimension_numbers<[1], [0], [0], [1], [0, 0, 1, 1], [], []>} : vector<8x8xf32>, vector<8x8xf32>, vector<8x8xf32> -> vector<8x8xf32>
    %84 = vector.extract_strided_slice %25 {offsets = [16, 0], sizes = [8, 32], strides = [1, 1]} : vector<32x32xf32> to vector<8x32xf32>
    %cst_33 = arith.constant dense<0.000000e+00> : vector<8x32xf32>
    %85 = tpu.matmul %83, %84, %cst_33 {dimension_numbers = #tpu.dot_dimension_numbers<[1], [0], [0], [1], [0, 0, 1, 1], [], []>} : vector<8x8xf32>, vector<8x32xf32>, vector<8x32xf32> -> vector<8x32xf32>
    %86 = arith.addf %66, %85 : vector<8x32xf32>
    %87 = vector.extract_strided_slice %21 {offsets = [0, 24], sizes = [8, 8], strides = [1, 1]} : vector<8x32xf32> to vector<8x8xf32>
    %88 = vector.extract_strided_slice %22 {offsets = [0, 24], sizes = [8, 8], strides = [1, 1]} : vector<8x32xf32> to vector<8x8xf32>
    %89 = vector.extract_strided_slice %23 {offsets = [0, 24], sizes = [8, 8], strides = [1, 1]} : vector<8x32xf32> to vector<8x8xf32>
    %cst_34 = arith.constant dense<0.000000e+00> : vector<8x8xf32>
    %90 = tpu.matmul %87, %88, %cst_34 {dimension_numbers = #tpu.dot_dimension_numbers<[1], [1], [0], [0], [0, 0, 1, 0], [], []>} : vector<8x8xf32>, vector<8x8xf32>, vector<8x8xf32> -> vector<8x8xf32>
    %91 = vector.extract_strided_slice %3 {offsets = [3, 0, 0], sizes = [1, 8, 8], strides = [1, 1, 1]} : vector<4x8x8xf32> to vector<1x8x8xf32>
    %92 = vector.shape_cast %91 : vector<1x8x8xf32> to vector<8x8xf32>
    %93 = arith.addf %90, %92 : vector<8x8xf32>
    %cst_35 = arith.constant dense<0xFF800000> : vector<8xf32>
    %94 = vector.multi_reduction <maximumf>, %93, %cst_35 [1] : vector<8x8xf32> to vector<8xf32>
    %95 = vector.shape_cast %94 : vector<8xf32> to vector<8x1xf32>
    %96 = vector.broadcast %95 : vector<8x1xf32> to vector<8x8xf32>
    %97 = arith.subf %93, %96 : vector<8x8xf32>
    %98 = math.exp %97 : vector<8x8xf32>
    %cst_36 = arith.constant dense<0.000000e+00> : vector<8xf32>
    %99 = vector.multi_reduction <add>, %98, %cst_36 [1] : vector<8x8xf32> to vector<8xf32>
    %100 = vector.shape_cast %99 : vector<8xf32> to vector<8x1xf32>
    %101 = vector.broadcast %100 : vector<8x1xf32> to vector<8x8xf32>
    %102 = arith.divf %98, %101 : vector<8x8xf32>
    %cst_37 = arith.constant dense<0.000000e+00> : vector<8x8xf32>
    %103 = tpu.matmul %102, %89, %cst_37 {dimension_numbers = #tpu.dot_dimension_numbers<[1], [0], [0], [1], [0, 0, 1, 1], [], []>} : vector<8x8xf32>, vector<8x8xf32>, vector<8x8xf32> -> vector<8x8xf32>
    %104 = vector.extract_strided_slice %25 {offsets = [24, 0], sizes = [8, 32], strides = [1, 1]} : vector<32x32xf32> to vector<8x32xf32>
    %cst_38 = arith.constant dense<0.000000e+00> : vector<8x32xf32>
    %105 = tpu.matmul %103, %104, %cst_38 {dimension_numbers = #tpu.dot_dimension_numbers<[1], [0], [0], [1], [0, 0, 1, 1], [], []>} : vector<8x8xf32>, vector<8x32xf32>, vector<8x32xf32> -> vector<8x32xf32>
    %106 = arith.addf %86, %105 : vector<8x32xf32>
    %107 = arith.addf %1, %106 : vector<8x32xf32>
    %c0_39 = arith.constant 0 : index
    %c0_40 = arith.constant 0 : index
    %c0_41 = arith.constant 0 : index
    %108 = vector.load %arg9[%c0_39, %c0_40, %c0_41] : memref<2x1x32xf32, #tpu.memory_space<vmem>>, vector<1x1x32xf32>
    %109 = vector.shape_cast %108 : vector<1x1x32xf32> to vector<1x32xf32>
    %110 = arith.mulf %107, %107 : vector<8x32xf32>
    %cst_42 = arith.constant dense<0.000000e+00> : vector<8xf32>
    %111 = vector.multi_reduction <add>, %110, %cst_42 [1] : vector<8x32xf32> to vector<8xf32>
    %112 = vector.shape_cast %111 : vector<8xf32> to vector<8x1xf32>
    %cst_43 = arith.constant 3.200000e+01 : f32
    %113 = vector.broadcast %cst_43 : f32 to vector<8x1xf32>
    %114 = arith.divf %112, %113 : vector<8x1xf32>
    %cst_44 = arith.constant 9.99999997E-7 : f32
    %115 = vector.broadcast %cst_44 : f32 to vector<8x1xf32>
    %116 = arith.addf %114, %115 : vector<8x1xf32>
    %117 = math.rsqrt %116 : vector<8x1xf32>
    %118 = vector.broadcast %117 : vector<8x1xf32> to vector<8x32xf32>
    %119 = arith.mulf %107, %118 : vector<8x32xf32>
    %120 = vector.broadcast %109 : vector<1x32xf32> to vector<8x32xf32>
    %121 = arith.mulf %119, %120 : vector<8x32xf32>
    %c0_45 = arith.constant 0 : index
    %c0_46 = arith.constant 0 : index
    %c0_47 = arith.constant 0 : index
    %122 = vector.load %arg10[%c0_45, %c0_46, %c0_47] : memref<2x32x64xf32, #tpu.memory_space<vmem>>, vector<1x32x64xf32>
    %123 = vector.shape_cast %122 : vector<1x32x64xf32> to vector<32x64xf32>
    %c0_48 = arith.constant 0 : index
    %c0_49 = arith.constant 0 : index
    %c0_50 = arith.constant 0 : index
    %124 = vector.load %arg11[%c0_48, %c0_49, %c0_50] : memref<2x64x32xf32, #tpu.memory_space<vmem>>, vector<1x64x32xf32>
    %125 = vector.shape_cast %124 : vector<1x64x32xf32> to vector<64x32xf32>
    %cst_51 = arith.constant dense<0.000000e+00> : vector<8x64xf32>
    %126 = tpu.matmul %121, %123, %cst_51 {dimension_numbers = #tpu.dot_dimension_numbers<[1], [0], [0], [1], [0, 0, 1, 1], [], []>} : vector<8x32xf32>, vector<32x64xf32>, vector<8x64xf32> -> vector<8x64xf32>
    %cst_52 = arith.constant 0.000000e+00 : f32
    %127 = vector.broadcast %cst_52 : f32 to vector<8x64xf32>
    %128 = arith.maximumf %126, %127 : vector<8x64xf32>
    %cst_53 = arith.constant dense<0.000000e+00> : vector<8x32xf32>
    %129 = tpu.matmul %128, %125, %cst_53 {dimension_numbers = #tpu.dot_dimension_numbers<[1], [0], [0], [1], [0, 0, 1, 1], [], []>} : vector<8x64xf32>, vector<64x32xf32>, vector<8x32xf32> -> vector<8x32xf32>
    %130 = arith.addf %107, %129 : vector<8x32xf32>
    %c1 = arith.constant 1 : index
    %c0_54 = arith.constant 0 : index
    %c0_55 = arith.constant 0 : index
    %131 = vector.load %arg6[%c1, %c0_54, %c0_55] : memref<2x1x32xf32, #tpu.memory_space<vmem>>, vector<1x1x32xf32>
    %132 = vector.shape_cast %131 : vector<1x1x32xf32> to vector<1x32xf32>
    %133 = arith.mulf %130, %130 : vector<8x32xf32>
    %cst_56 = arith.constant dense<0.000000e+00> : vector<8xf32>
    %134 = vector.multi_reduction <add>, %133, %cst_56 [1] : vector<8x32xf32> to vector<8xf32>
    %135 = vector.shape_cast %134 : vector<8xf32> to vector<8x1xf32>
    %cst_57 = arith.constant 3.200000e+01 : f32
    %136 = vector.broadcast %cst_57 : f32 to vector<8x1xf32>
    %137 = arith.divf %135, %136 : vector<8x1xf32>
    %cst_58 = arith.constant 9.99999997E-7 : f32
    %138 = vector.broadcast %cst_58 : f32 to vector<8x1xf32>
    %139 = arith.addf %137, %138 : vector<8x1xf32>
    %140 = math.rsqrt %139 : vector<8x1xf32>
    %141 = vector.broadcast %140 : vector<8x1xf32> to vector<8x32xf32>
    %142 = arith.mulf %130, %141 : vector<8x32xf32>
    %143 = vector.broadcast %132 : vector<1x32xf32> to vector<8x32xf32>
    %144 = arith.mulf %142, %143 : vector<8x32xf32>
    %c1_59 = arith.constant 1 : index
    %c0_60 = arith.constant 0 : index
    %c0_61 = arith.constant 0 : index
    %145 = vector.load %arg7[%c1_59, %c0_60, %c0_61] : memref<2x32x96xf32, #tpu.memory_space<vmem>>, vector<1x32x96xf32>
    %146 = vector.shape_cast %145 : vector<1x32x96xf32> to vector<32x96xf32>
    %cst_62 = arith.constant dense<0.000000e+00> : vector<8x96xf32>
    %147 = tpu.matmul %144, %146, %cst_62 {dimension_numbers = #tpu.dot_dimension_numbers<[1], [0], [0], [1], [0, 0, 1, 1], [], []>} : vector<8x32xf32>, vector<32x96xf32>, vector<8x96xf32> -> vector<8x96xf32>
    %148 = vector.extract_strided_slice %147 {offsets = [0, 0], sizes = [8, 32], strides = [1, 1]} : vector<8x96xf32> to vector<8x32xf32>
    %149 = vector.extract_strided_slice %147 {offsets = [0, 32], sizes = [8, 32], strides = [1, 1]} : vector<8x96xf32> to vector<8x32xf32>
    %150 = vector.extract_strided_slice %147 {offsets = [0, 64], sizes = [8, 32], strides = [1, 1]} : vector<8x96xf32> to vector<8x32xf32>
    %c1_63 = arith.constant 1 : index
    %c0_64 = arith.constant 0 : index
    %c0_65 = arith.constant 0 : index
    %151 = vector.load %arg8[%c1_63, %c0_64, %c0_65] : memref<2x32x32xf32, #tpu.memory_space<vmem>>, vector<1x32x32xf32>
    %152 = vector.shape_cast %151 : vector<1x32x32xf32> to vector<32x32xf32>
    %cst_66 = arith.constant 0.000000e+00 : f32
    %153 = vector.broadcast %cst_66 : f32 to vector<8x32xf32>
    %154 = vector.extract_strided_slice %148 {offsets = [0, 0], sizes = [8, 8], strides = [1, 1]} : vector<8x32xf32> to vector<8x8xf32>
    %155 = vector.extract_strided_slice %149 {offsets = [0, 0], sizes = [8, 8], strides = [1, 1]} : vector<8x32xf32> to vector<8x8xf32>
    %156 = vector.extract_strided_slice %150 {offsets = [0, 0], sizes = [8, 8], strides = [1, 1]} : vector<8x32xf32> to vector<8x8xf32>
    %cst_67 = arith.constant dense<0.000000e+00> : vector<8x8xf32>
    %157 = tpu.matmul %154, %155, %cst_67 {dimension_numbers = #tpu.dot_dimension_numbers<[1], [1], [0], [0], [0, 0, 1, 0], [], []>} : vector<8x8xf32>, vector<8x8xf32>, vector<8x8xf32> -> vector<8x8xf32>
    %158 = vector.extract_strided_slice %3 {offsets = [0, 0, 0], sizes = [1, 8, 8], strides = [1, 1, 1]} : vector<4x8x8xf32> to vector<1x8x8xf32>
    %159 = vector.shape_cast %158 : vector<1x8x8xf32> to vector<8x8xf32>
    %160 = arith.addf %157, %159 : vector<8x8xf32>
    %cst_68 = arith.constant dense<0xFF800000> : vector<8xf32>
    %161 = vector.multi_reduction <maximumf>, %160, %cst_68 [1] : vector<8x8xf32> to vector<8xf32>
    %162 = vector.shape_cast %161 : vector<8xf32> to vector<8x1xf32>
    %163 = vector.broadcast %162 : vector<8x1xf32> to vector<8x8xf32>
    %164 = arith.subf %160, %163 : vector<8x8xf32>
    %165 = math.exp %164 : vector<8x8xf32>
    %cst_69 = arith.constant dense<0.000000e+00> : vector<8xf32>
    %166 = vector.multi_reduction <add>, %165, %cst_69 [1] : vector<8x8xf32> to vector<8xf32>
    %167 = vector.shape_cast %166 : vector<8xf32> to vector<8x1xf32>
    %168 = vector.broadcast %167 : vector<8x1xf32> to vector<8x8xf32>
    %169 = arith.divf %165, %168 : vector<8x8xf32>
    %cst_70 = arith.constant dense<0.000000e+00> : vector<8x8xf32>
    %170 = tpu.matmul %169, %156, %cst_70 {dimension_numbers = #tpu.dot_dimension_numbers<[1], [0], [0], [1], [0, 0, 1, 1], [], []>} : vector<8x8xf32>, vector<8x8xf32>, vector<8x8xf32> -> vector<8x8xf32>
    %171 = vector.extract_strided_slice %152 {offsets = [0, 0], sizes = [8, 32], strides = [1, 1]} : vector<32x32xf32> to vector<8x32xf32>
    %cst_71 = arith.constant dense<0.000000e+00> : vector<8x32xf32>
    %172 = tpu.matmul %170, %171, %cst_71 {dimension_numbers = #tpu.dot_dimension_numbers<[1], [0], [0], [1], [0, 0, 1, 1], [], []>} : vector<8x8xf32>, vector<8x32xf32>, vector<8x32xf32> -> vector<8x32xf32>
    %173 = arith.addf %153, %172 : vector<8x32xf32>
    %174 = vector.extract_strided_slice %148 {offsets = [0, 8], sizes = [8, 8], strides = [1, 1]} : vector<8x32xf32> to vector<8x8xf32>
    %175 = vector.extract_strided_slice %149 {offsets = [0, 8], sizes = [8, 8], strides = [1, 1]} : vector<8x32xf32> to vector<8x8xf32>
    %176 = vector.extract_strided_slice %150 {offsets = [0, 8], sizes = [8, 8], strides = [1, 1]} : vector<8x32xf32> to vector<8x8xf32>
    %cst_72 = arith.constant dense<0.000000e+00> : vector<8x8xf32>
    %177 = tpu.matmul %174, %175, %cst_72 {dimension_numbers = #tpu.dot_dimension_numbers<[1], [1], [0], [0], [0, 0, 1, 0], [], []>} : vector<8x8xf32>, vector<8x8xf32>, vector<8x8xf32> -> vector<8x8xf32>
    %178 = vector.extract_strided_slice %3 {offsets = [1, 0, 0], sizes = [1, 8, 8], strides = [1, 1, 1]} : vector<4x8x8xf32> to vector<1x8x8xf32>
    %179 = vector.shape_cast %178 : vector<1x8x8xf32> to vector<8x8xf32>
    %180 = arith.addf %177, %179 : vector<8x8xf32>
    %cst_73 = arith.constant dense<0xFF800000> : vector<8xf32>
    %181 = vector.multi_reduction <maximumf>, %180, %cst_73 [1] : vector<8x8xf32> to vector<8xf32>
    %182 = vector.shape_cast %181 : vector<8xf32> to vector<8x1xf32>
    %183 = vector.broadcast %182 : vector<8x1xf32> to vector<8x8xf32>
    %184 = arith.subf %180, %183 : vector<8x8xf32>
    %185 = math.exp %184 : vector<8x8xf32>
    %cst_74 = arith.constant dense<0.000000e+00> : vector<8xf32>
    %186 = vector.multi_reduction <add>, %185, %cst_74 [1] : vector<8x8xf32> to vector<8xf32>
    %187 = vector.shape_cast %186 : vector<8xf32> to vector<8x1xf32>
    %188 = vector.broadcast %187 : vector<8x1xf32> to vector<8x8xf32>
    %189 = arith.divf %185, %188 : vector<8x8xf32>
    %cst_75 = arith.constant dense<0.000000e+00> : vector<8x8xf32>
    %190 = tpu.matmul %189, %176, %cst_75 {dimension_numbers = #tpu.dot_dimension_numbers<[1], [0], [0], [1], [0, 0, 1, 1], [], []>} : vector<8x8xf32>, vector<8x8xf32>, vector<8x8xf32> -> vector<8x8xf32>
    %191 = vector.extract_strided_slice %152 {offsets = [8, 0], sizes = [8, 32], strides = [1, 1]} : vector<32x32xf32> to vector<8x32xf32>
    %cst_76 = arith.constant dense<0.000000e+00> : vector<8x32xf32>
    %192 = tpu.matmul %190, %191, %cst_76 {dimension_numbers = #tpu.dot_dimension_numbers<[1], [0], [0], [1], [0, 0, 1, 1], [], []>} : vector<8x8xf32>, vector<8x32xf32>, vector<8x32xf32> -> vector<8x32xf32>
    %193 = arith.addf %173, %192 : vector<8x32xf32>
    %194 = vector.extract_strided_slice %148 {offsets = [0, 16], sizes = [8, 8], strides = [1, 1]} : vector<8x32xf32> to vector<8x8xf32>
    %195 = vector.extract_strided_slice %149 {offsets = [0, 16], sizes = [8, 8], strides = [1, 1]} : vector<8x32xf32> to vector<8x8xf32>
    %196 = vector.extract_strided_slice %150 {offsets = [0, 16], sizes = [8, 8], strides = [1, 1]} : vector<8x32xf32> to vector<8x8xf32>
    %cst_77 = arith.constant dense<0.000000e+00> : vector<8x8xf32>
    %197 = tpu.matmul %194, %195, %cst_77 {dimension_numbers = #tpu.dot_dimension_numbers<[1], [1], [0], [0], [0, 0, 1, 0], [], []>} : vector<8x8xf32>, vector<8x8xf32>, vector<8x8xf32> -> vector<8x8xf32>
    %198 = vector.extract_strided_slice %3 {offsets = [2, 0, 0], sizes = [1, 8, 8], strides = [1, 1, 1]} : vector<4x8x8xf32> to vector<1x8x8xf32>
    %199 = vector.shape_cast %198 : vector<1x8x8xf32> to vector<8x8xf32>
    %200 = arith.addf %197, %199 : vector<8x8xf32>
    %cst_78 = arith.constant dense<0xFF800000> : vector<8xf32>
    %201 = vector.multi_reduction <maximumf>, %200, %cst_78 [1] : vector<8x8xf32> to vector<8xf32>
    %202 = vector.shape_cast %201 : vector<8xf32> to vector<8x1xf32>
    %203 = vector.broadcast %202 : vector<8x1xf32> to vector<8x8xf32>
    %204 = arith.subf %200, %203 : vector<8x8xf32>
    %205 = math.exp %204 : vector<8x8xf32>
    %cst_79 = arith.constant dense<0.000000e+00> : vector<8xf32>
    %206 = vector.multi_reduction <add>, %205, %cst_79 [1] : vector<8x8xf32> to vector<8xf32>
    %207 = vector.shape_cast %206 : vector<8xf32> to vector<8x1xf32>
    %208 = vector.broadcast %207 : vector<8x1xf32> to vector<8x8xf32>
    %209 = arith.divf %205, %208 : vector<8x8xf32>
    %cst_80 = arith.constant dense<0.000000e+00> : vector<8x8xf32>
    %210 = tpu.matmul %209, %196, %cst_80 {dimension_numbers = #tpu.dot_dimension_numbers<[1], [0], [0], [1], [0, 0, 1, 1], [], []>} : vector<8x8xf32>, vector<8x8xf32>, vector<8x8xf32> -> vector<8x8xf32>
    %211 = vector.extract_strided_slice %152 {offsets = [16, 0], sizes = [8, 32], strides = [1, 1]} : vector<32x32xf32> to vector<8x32xf32>
    %cst_81 = arith.constant dense<0.000000e+00> : vector<8x32xf32>
    %212 = tpu.matmul %210, %211, %cst_81 {dimension_numbers = #tpu.dot_dimension_numbers<[1], [0], [0], [1], [0, 0, 1, 1], [], []>} : vector<8x8xf32>, vector<8x32xf32>, vector<8x32xf32> -> vector<8x32xf32>
    %213 = arith.addf %193, %212 : vector<8x32xf32>
    %214 = vector.extract_strided_slice %148 {offsets = [0, 24], sizes = [8, 8], strides = [1, 1]} : vector<8x32xf32> to vector<8x8xf32>
    %215 = vector.extract_strided_slice %149 {offsets = [0, 24], sizes = [8, 8], strides = [1, 1]} : vector<8x32xf32> to vector<8x8xf32>
    %216 = vector.extract_strided_slice %150 {offsets = [0, 24], sizes = [8, 8], strides = [1, 1]} : vector<8x32xf32> to vector<8x8xf32>
    %cst_82 = arith.constant dense<0.000000e+00> : vector<8x8xf32>
    %217 = tpu.matmul %214, %215, %cst_82 {dimension_numbers = #tpu.dot_dimension_numbers<[1], [1], [0], [0], [0, 0, 1, 0], [], []>} : vector<8x8xf32>, vector<8x8xf32>, vector<8x8xf32> -> vector<8x8xf32>
    %218 = vector.extract_strided_slice %3 {offsets = [3, 0, 0], sizes = [1, 8, 8], strides = [1, 1, 1]} : vector<4x8x8xf32> to vector<1x8x8xf32>
    %219 = vector.shape_cast %218 : vector<1x8x8xf32> to vector<8x8xf32>
    %220 = arith.addf %217, %219 : vector<8x8xf32>
    %cst_83 = arith.constant dense<0xFF800000> : vector<8xf32>
    %221 = vector.multi_reduction <maximumf>, %220, %cst_83 [1] : vector<8x8xf32> to vector<8xf32>
    %222 = vector.shape_cast %221 : vector<8xf32> to vector<8x1xf32>
    %223 = vector.broadcast %222 : vector<8x1xf32> to vector<8x8xf32>
    %224 = arith.subf %220, %223 : vector<8x8xf32>
    %225 = math.exp %224 : vector<8x8xf32>
    %cst_84 = arith.constant dense<0.000000e+00> : vector<8xf32>
    %226 = vector.multi_reduction <add>, %225, %cst_84 [1] : vector<8x8xf32> to vector<8xf32>
    %227 = vector.shape_cast %226 : vector<8xf32> to vector<8x1xf32>
    %228 = vector.broadcast %227 : vector<8x1xf32> to vector<8x8xf32>
    %229 = arith.divf %225, %228 : vector<8x8xf32>
    %cst_85 = arith.constant dense<0.000000e+00> : vector<8x8xf32>
    %230 = tpu.matmul %229, %216, %cst_85 {dimension_numbers = #tpu.dot_dimension_numbers<[1], [0], [0], [1], [0, 0, 1, 1], [], []>} : vector<8x8xf32>, vector<8x8xf32>, vector<8x8xf32> -> vector<8x8xf32>
    %231 = vector.extract_strided_slice %152 {offsets = [24, 0], sizes = [8, 32], strides = [1, 1]} : vector<32x32xf32> to vector<8x32xf32>
    %cst_86 = arith.constant dense<0.000000e+00> : vector<8x32xf32>
    %232 = tpu.matmul %230, %231, %cst_86 {dimension_numbers = #tpu.dot_dimension_numbers<[1], [0], [0], [1], [0, 0, 1, 1], [], []>} : vector<8x8xf32>, vector<8x32xf32>, vector<8x32xf32> -> vector<8x32xf32>
    %233 = arith.addf %213, %232 : vector<8x32xf32>
    %234 = arith.addf %130, %233 : vector<8x32xf32>
    %c1_87 = arith.constant 1 : index
    %c0_88 = arith.constant 0 : index
    %c0_89 = arith.constant 0 : index
    %235 = vector.load %arg9[%c1_87, %c0_88, %c0_89] : memref<2x1x32xf32, #tpu.memory_space<vmem>>, vector<1x1x32xf32>
    %236 = vector.shape_cast %235 : vector<1x1x32xf32> to vector<1x32xf32>
    %237 = arith.mulf %234, %234 : vector<8x32xf32>
    %cst_90 = arith.constant dense<0.000000e+00> : vector<8xf32>
    %238 = vector.multi_reduction <add>, %237, %cst_90 [1] : vector<8x32xf32> to vector<8xf32>
    %239 = vector.shape_cast %238 : vector<8xf32> to vector<8x1xf32>
    %cst_91 = arith.constant 3.200000e+01 : f32
    %240 = vector.broadcast %cst_91 : f32 to vector<8x1xf32>
    %241 = arith.divf %239, %240 : vector<8x1xf32>
    %cst_92 = arith.constant 9.99999997E-7 : f32
    %242 = vector.broadcast %cst_92 : f32 to vector<8x1xf32>
    %243 = arith.addf %241, %242 : vector<8x1xf32>
    %244 = math.rsqrt %243 : vector<8x1xf32>
    %245 = vector.broadcast %244 : vector<8x1xf32> to vector<8x32xf32>
    %246 = arith.mulf %234, %245 : vector<8x32xf32>
    %247 = vector.broadcast %236 : vector<1x32xf32> to vector<8x32xf32>
    %248 = arith.mulf %246, %247 : vector<8x32xf32>
    %c1_93 = arith.constant 1 : index
    %c0_94 = arith.constant 0 : index
    %c0_95 = arith.constant 0 : index
    %249 = vector.load %arg10[%c1_93, %c0_94, %c0_95] : memref<2x32x64xf32, #tpu.memory_space<vmem>>, vector<1x32x64xf32>
    %250 = vector.shape_cast %249 : vector<1x32x64xf32> to vector<32x64xf32>
    %c1_96 = arith.constant 1 : index
    %c0_97 = arith.constant 0 : index
    %c0_98 = arith.constant 0 : index
    %251 = vector.load %arg11[%c1_96, %c0_97, %c0_98] : memref<2x64x32xf32, #tpu.memory_space<vmem>>, vector<1x64x32xf32>
    %252 = vector.shape_cast %251 : vector<1x64x32xf32> to vector<64x32xf32>
    %cst_99 = arith.constant dense<0.000000e+00> : vector<8x64xf32>
    %253 = tpu.matmul %248, %250, %cst_99 {dimension_numbers = #tpu.dot_dimension_numbers<[1], [0], [0], [1], [0, 0, 1, 1], [], []>} : vector<8x32xf32>, vector<32x64xf32>, vector<8x64xf32> -> vector<8x64xf32>
    %cst_100 = arith.constant 0.000000e+00 : f32
    %254 = vector.broadcast %cst_100 : f32 to vector<8x64xf32>
    %255 = arith.maximumf %253, %254 : vector<8x64xf32>
    %cst_101 = arith.constant dense<0.000000e+00> : vector<8x32xf32>
    %256 = tpu.matmul %255, %252, %cst_101 {dimension_numbers = #tpu.dot_dimension_numbers<[1], [0], [0], [1], [0, 0, 1, 1], [], []>} : vector<8x64xf32>, vector<64x32xf32>, vector<8x32xf32> -> vector<8x32xf32>
    %257 = arith.addf %234, %256 : vector<8x32xf32>
    %c0_102 = arith.constant 0 : index
    %c0_103 = arith.constant 0 : index
    %258 = vector.load %arg12[%c0_102, %c0_103] : memref<1x32xf32, #tpu.memory_space<vmem>>, vector<1x32xf32>
    %259 = arith.mulf %257, %257 : vector<8x32xf32>
    %cst_104 = arith.constant dense<0.000000e+00> : vector<8xf32>
    %260 = vector.multi_reduction <add>, %259, %cst_104 [1] : vector<8x32xf32> to vector<8xf32>
    %261 = vector.shape_cast %260 : vector<8xf32> to vector<8x1xf32>
    %cst_105 = arith.constant 3.200000e+01 : f32
    %262 = vector.broadcast %cst_105 : f32 to vector<8x1xf32>
    %263 = arith.divf %261, %262 : vector<8x1xf32>
    %cst_106 = arith.constant 9.99999997E-7 : f32
    %264 = vector.broadcast %cst_106 : f32 to vector<8x1xf32>
    %265 = arith.addf %263, %264 : vector<8x1xf32>
    %266 = math.rsqrt %265 : vector<8x1xf32>
    %267 = vector.broadcast %266 : vector<8x1xf32> to vector<8x32xf32>
    %268 = arith.mulf %257, %267 : vector<8x32xf32>
    %269 = vector.broadcast %258 : vector<1x32xf32> to vector<8x32xf32>
    %270 = arith.mulf %268, %269 : vector<8x32xf32>
    %c0_107 = arith.constant 0 : index
    %c0_108 = arith.constant 0 : index
    %c0_109 = arith.constant 0 : index
    %271 = vector.load %arg3[%c0_107, %c0_108, %c0_109] : memref<1x1x8xf32, #tpu.memory_space<vmem>>, vector<1x1x8xf32>
    %272 = vector.shape_cast %271 : vector<1x1x8xf32> to vector<1x8xf32>
    %cst_110 = arith.constant dense<0.000000e+00> : vector<1x32xf32>
    %273 = tpu.matmul %272, %270, %cst_110 {dimension_numbers = #tpu.dot_dimension_numbers<[1], [0], [0], [1], [0, 0, 1, 1], [], []>} : vector<1x8xf32>, vector<8x32xf32>, vector<1x32xf32> -> vector<1x32xf32>
    %cst_111 = arith.constant dense<0.000000e+00> : vector<1xf32>
    %274 = vector.multi_reduction <add>, %272, %cst_111 [1] : vector<1x8xf32> to vector<1xf32>
    %275 = vector.shape_cast %274 : vector<1xf32> to vector<1x1xf32>
    %cst_112 = arith.constant 9.99999971E-10 : f32
    %276 = vector.broadcast %cst_112 : f32 to vector<1x1xf32>
    %277 = arith.maximumf %275, %276 : vector<1x1xf32>
    %278 = vector.broadcast %277 : vector<1x1xf32> to vector<1x32xf32>
    %279 = arith.divf %273, %278 : vector<1x32xf32>
    %c0_113 = arith.constant 0 : index
    %c0_114 = arith.constant 0 : index
    %280 = vector.load %arg13[%c0_113, %c0_114] : memref<32x32xf32, #tpu.memory_space<vmem>>, vector<32x32xf32>
    %cst_115 = arith.constant dense<0.000000e+00> : vector<1x32xf32>
    %281 = tpu.matmul %279, %280, %cst_115 {dimension_numbers = #tpu.dot_dimension_numbers<[1], [0], [0], [1], [0, 0, 1, 1], [], []>} : vector<1x32xf32>, vector<32x32xf32>, vector<1x32xf32> -> vector<1x32xf32>
    %c0_116 = arith.constant 0 : index
    %c0_117 = arith.constant 0 : index
    %282 = vector.load %arg14[%c0_116, %c0_117] : memref<1x32xf32, #tpu.memory_space<vmem>>, vector<1x32xf32>
    %283 = arith.addf %281, %282 : vector<1x32xf32>
    %284 = vector.shape_cast %283 : vector<1x32xf32> to vector<1x32xf32>
    %285 = vector.broadcast %284 : vector<1x32xf32> to vector<8x32xf32>
    %c0_118 = arith.constant 0 : index
    %c0_119 = arith.constant 0 : index
    %c0_120 = arith.constant 0 : index
    %c0_121 = arith.constant 0 : index
    %286 = vector.load %arg4[%c0_118, %c0_119, %c0_120, %c0_121] : memref<1x4x8x8xf32, #tpu.memory_space<vmem>>, vector<1x4x8x8xf32>
    %287 = vector.shape_cast %286 : vector<1x4x8x8xf32> to vector<4x8x8xf32>
    %c0_122 = arith.constant 0 : index
    %c0_123 = arith.constant 0 : index
    %c0_124 = arith.constant 0 : index
    %288 = vector.load %arg15[%c0_122, %c0_123, %c0_124] : memref<2x1x32xf32, #tpu.memory_space<vmem>>, vector<1x1x32xf32>
    %289 = vector.shape_cast %288 : vector<1x1x32xf32> to vector<1x32xf32>
    %290 = arith.mulf %285, %285 : vector<8x32xf32>
    %cst_125 = arith.constant dense<0.000000e+00> : vector<8xf32>
    %291 = vector.multi_reduction <add>, %290, %cst_125 [1] : vector<8x32xf32> to vector<8xf32>
    %292 = vector.shape_cast %291 : vector<8xf32> to vector<8x1xf32>
    %cst_126 = arith.constant 3.200000e+01 : f32
    %293 = vector.broadcast %cst_126 : f32 to vector<8x1xf32>
    %294 = arith.divf %292, %293 : vector<8x1xf32>
    %cst_127 = arith.constant 9.99999997E-7 : f32
    %295 = vector.broadcast %cst_127 : f32 to vector<8x1xf32>
    %296 = arith.addf %294, %295 : vector<8x1xf32>
    %297 = math.rsqrt %296 : vector<8x1xf32>
    %298 = vector.broadcast %297 : vector<8x1xf32> to vector<8x32xf32>
    %299 = arith.mulf %285, %298 : vector<8x32xf32>
    %300 = vector.broadcast %289 : vector<1x32xf32> to vector<8x32xf32>
    %301 = arith.mulf %299, %300 : vector<8x32xf32>
    %c0_128 = arith.constant 0 : index
    %c0_129 = arith.constant 0 : index
    %c0_130 = arith.constant 0 : index
    %302 = vector.load %arg16[%c0_128, %c0_129, %c0_130] : memref<2x32x96xf32, #tpu.memory_space<vmem>>, vector<1x32x96xf32>
    %303 = vector.shape_cast %302 : vector<1x32x96xf32> to vector<32x96xf32>
    %cst_131 = arith.constant dense<0.000000e+00> : vector<8x96xf32>
    %304 = tpu.matmul %301, %303, %cst_131 {dimension_numbers = #tpu.dot_dimension_numbers<[1], [0], [0], [1], [0, 0, 1, 1], [], []>} : vector<8x32xf32>, vector<32x96xf32>, vector<8x96xf32> -> vector<8x96xf32>
    %305 = vector.extract_strided_slice %304 {offsets = [0, 0], sizes = [8, 32], strides = [1, 1]} : vector<8x96xf32> to vector<8x32xf32>
    %306 = vector.extract_strided_slice %304 {offsets = [0, 32], sizes = [8, 32], strides = [1, 1]} : vector<8x96xf32> to vector<8x32xf32>
    %307 = vector.extract_strided_slice %304 {offsets = [0, 64], sizes = [8, 32], strides = [1, 1]} : vector<8x96xf32> to vector<8x32xf32>
    %c0_132 = arith.constant 0 : index
    %c0_133 = arith.constant 0 : index
    %c0_134 = arith.constant 0 : index
    %308 = vector.load %arg17[%c0_132, %c0_133, %c0_134] : memref<2x32x32xf32, #tpu.memory_space<vmem>>, vector<1x32x32xf32>
    %309 = vector.shape_cast %308 : vector<1x32x32xf32> to vector<32x32xf32>
    %cst_135 = arith.constant 0.000000e+00 : f32
    %310 = vector.broadcast %cst_135 : f32 to vector<8x32xf32>
    %311 = vector.extract_strided_slice %305 {offsets = [0, 0], sizes = [8, 8], strides = [1, 1]} : vector<8x32xf32> to vector<8x8xf32>
    %312 = vector.extract_strided_slice %306 {offsets = [0, 0], sizes = [8, 8], strides = [1, 1]} : vector<8x32xf32> to vector<8x8xf32>
    %313 = vector.extract_strided_slice %307 {offsets = [0, 0], sizes = [8, 8], strides = [1, 1]} : vector<8x32xf32> to vector<8x8xf32>
    %cst_136 = arith.constant dense<0.000000e+00> : vector<8x8xf32>
    %314 = tpu.matmul %311, %312, %cst_136 {dimension_numbers = #tpu.dot_dimension_numbers<[1], [1], [0], [0], [0, 0, 1, 0], [], []>} : vector<8x8xf32>, vector<8x8xf32>, vector<8x8xf32> -> vector<8x8xf32>
    %315 = vector.extract_strided_slice %287 {offsets = [0, 0, 0], sizes = [1, 8, 8], strides = [1, 1, 1]} : vector<4x8x8xf32> to vector<1x8x8xf32>
    %316 = vector.shape_cast %315 : vector<1x8x8xf32> to vector<8x8xf32>
    %317 = arith.addf %314, %316 : vector<8x8xf32>
    %cst_137 = arith.constant dense<0xFF800000> : vector<8xf32>
    %318 = vector.multi_reduction <maximumf>, %317, %cst_137 [1] : vector<8x8xf32> to vector<8xf32>
    %319 = vector.shape_cast %318 : vector<8xf32> to vector<8x1xf32>
    %320 = vector.broadcast %319 : vector<8x1xf32> to vector<8x8xf32>
    %321 = arith.subf %317, %320 : vector<8x8xf32>
    %322 = math.exp %321 : vector<8x8xf32>
    %cst_138 = arith.constant dense<0.000000e+00> : vector<8xf32>
    %323 = vector.multi_reduction <add>, %322, %cst_138 [1] : vector<8x8xf32> to vector<8xf32>
    %324 = vector.shape_cast %323 : vector<8xf32> to vector<8x1xf32>
    %325 = vector.broadcast %324 : vector<8x1xf32> to vector<8x8xf32>
    %326 = arith.divf %322, %325 : vector<8x8xf32>
    %cst_139 = arith.constant dense<0.000000e+00> : vector<8x8xf32>
    %327 = tpu.matmul %326, %313, %cst_139 {dimension_numbers = #tpu.dot_dimension_numbers<[1], [0], [0], [1], [0, 0, 1, 1], [], []>} : vector<8x8xf32>, vector<8x8xf32>, vector<8x8xf32> -> vector<8x8xf32>
    %328 = vector.extract_strided_slice %309 {offsets = [0, 0], sizes = [8, 32], strides = [1, 1]} : vector<32x32xf32> to vector<8x32xf32>
    %cst_140 = arith.constant dense<0.000000e+00> : vector<8x32xf32>
    %329 = tpu.matmul %327, %328, %cst_140 {dimension_numbers = #tpu.dot_dimension_numbers<[1], [0], [0], [1], [0, 0, 1, 1], [], []>} : vector<8x8xf32>, vector<8x32xf32>, vector<8x32xf32> -> vector<8x32xf32>
    %330 = arith.addf %310, %329 : vector<8x32xf32>
    %331 = vector.extract_strided_slice %305 {offsets = [0, 8], sizes = [8, 8], strides = [1, 1]} : vector<8x32xf32> to vector<8x8xf32>
    %332 = vector.extract_strided_slice %306 {offsets = [0, 8], sizes = [8, 8], strides = [1, 1]} : vector<8x32xf32> to vector<8x8xf32>
    %333 = vector.extract_strided_slice %307 {offsets = [0, 8], sizes = [8, 8], strides = [1, 1]} : vector<8x32xf32> to vector<8x8xf32>
    %cst_141 = arith.constant dense<0.000000e+00> : vector<8x8xf32>
    %334 = tpu.matmul %331, %332, %cst_141 {dimension_numbers = #tpu.dot_dimension_numbers<[1], [1], [0], [0], [0, 0, 1, 0], [], []>} : vector<8x8xf32>, vector<8x8xf32>, vector<8x8xf32> -> vector<8x8xf32>
    %335 = vector.extract_strided_slice %287 {offsets = [1, 0, 0], sizes = [1, 8, 8], strides = [1, 1, 1]} : vector<4x8x8xf32> to vector<1x8x8xf32>
    %336 = vector.shape_cast %335 : vector<1x8x8xf32> to vector<8x8xf32>
    %337 = arith.addf %334, %336 : vector<8x8xf32>
    %cst_142 = arith.constant dense<0xFF800000> : vector<8xf32>
    %338 = vector.multi_reduction <maximumf>, %337, %cst_142 [1] : vector<8x8xf32> to vector<8xf32>
    %339 = vector.shape_cast %338 : vector<8xf32> to vector<8x1xf32>
    %340 = vector.broadcast %339 : vector<8x1xf32> to vector<8x8xf32>
    %341 = arith.subf %337, %340 : vector<8x8xf32>
    %342 = math.exp %341 : vector<8x8xf32>
    %cst_143 = arith.constant dense<0.000000e+00> : vector<8xf32>
    %343 = vector.multi_reduction <add>, %342, %cst_143 [1] : vector<8x8xf32> to vector<8xf32>
    %344 = vector.shape_cast %343 : vector<8xf32> to vector<8x1xf32>
    %345 = vector.broadcast %344 : vector<8x1xf32> to vector<8x8xf32>
    %346 = arith.divf %342, %345 : vector<8x8xf32>
    %cst_144 = arith.constant dense<0.000000e+00> : vector<8x8xf32>
    %347 = tpu.matmul %346, %333, %cst_144 {dimension_numbers = #tpu.dot_dimension_numbers<[1], [0], [0], [1], [0, 0, 1, 1], [], []>} : vector<8x8xf32>, vector<8x8xf32>, vector<8x8xf32> -> vector<8x8xf32>
    %348 = vector.extract_strided_slice %309 {offsets = [8, 0], sizes = [8, 32], strides = [1, 1]} : vector<32x32xf32> to vector<8x32xf32>
    %cst_145 = arith.constant dense<0.000000e+00> : vector<8x32xf32>
    %349 = tpu.matmul %347, %348, %cst_145 {dimension_numbers = #tpu.dot_dimension_numbers<[1], [0], [0], [1], [0, 0, 1, 1], [], []>} : vector<8x8xf32>, vector<8x32xf32>, vector<8x32xf32> -> vector<8x32xf32>
    %350 = arith.addf %330, %349 : vector<8x32xf32>
    %351 = vector.extract_strided_slice %305 {offsets = [0, 16], sizes = [8, 8], strides = [1, 1]} : vector<8x32xf32> to vector<8x8xf32>
    %352 = vector.extract_strided_slice %306 {offsets = [0, 16], sizes = [8, 8], strides = [1, 1]} : vector<8x32xf32> to vector<8x8xf32>
    %353 = vector.extract_strided_slice %307 {offsets = [0, 16], sizes = [8, 8], strides = [1, 1]} : vector<8x32xf32> to vector<8x8xf32>
    %cst_146 = arith.constant dense<0.000000e+00> : vector<8x8xf32>
    %354 = tpu.matmul %351, %352, %cst_146 {dimension_numbers = #tpu.dot_dimension_numbers<[1], [1], [0], [0], [0, 0, 1, 0], [], []>} : vector<8x8xf32>, vector<8x8xf32>, vector<8x8xf32> -> vector<8x8xf32>
    %355 = vector.extract_strided_slice %287 {offsets = [2, 0, 0], sizes = [1, 8, 8], strides = [1, 1, 1]} : vector<4x8x8xf32> to vector<1x8x8xf32>
    %356 = vector.shape_cast %355 : vector<1x8x8xf32> to vector<8x8xf32>
    %357 = arith.addf %354, %356 : vector<8x8xf32>
    %cst_147 = arith.constant dense<0xFF800000> : vector<8xf32>
    %358 = vector.multi_reduction <maximumf>, %357, %cst_147 [1] : vector<8x8xf32> to vector<8xf32>
    %359 = vector.shape_cast %358 : vector<8xf32> to vector<8x1xf32>
    %360 = vector.broadcast %359 : vector<8x1xf32> to vector<8x8xf32>
    %361 = arith.subf %357, %360 : vector<8x8xf32>
    %362 = math.exp %361 : vector<8x8xf32>
    %cst_148 = arith.constant dense<0.000000e+00> : vector<8xf32>
    %363 = vector.multi_reduction <add>, %362, %cst_148 [1] : vector<8x8xf32> to vector<8xf32>
    %364 = vector.shape_cast %363 : vector<8xf32> to vector<8x1xf32>
    %365 = vector.broadcast %364 : vector<8x1xf32> to vector<8x8xf32>
    %366 = arith.divf %362, %365 : vector<8x8xf32>
    %cst_149 = arith.constant dense<0.000000e+00> : vector<8x8xf32>
    %367 = tpu.matmul %366, %353, %cst_149 {dimension_numbers = #tpu.dot_dimension_numbers<[1], [0], [0], [1], [0, 0, 1, 1], [], []>} : vector<8x8xf32>, vector<8x8xf32>, vector<8x8xf32> -> vector<8x8xf32>
    %368 = vector.extract_strided_slice %309 {offsets = [16, 0], sizes = [8, 32], strides = [1, 1]} : vector<32x32xf32> to vector<8x32xf32>
    %cst_150 = arith.constant dense<0.000000e+00> : vector<8x32xf32>
    %369 = tpu.matmul %367, %368, %cst_150 {dimension_numbers = #tpu.dot_dimension_numbers<[1], [0], [0], [1], [0, 0, 1, 1], [], []>} : vector<8x8xf32>, vector<8x32xf32>, vector<8x32xf32> -> vector<8x32xf32>
    %370 = arith.addf %350, %369 : vector<8x32xf32>
    %371 = vector.extract_strided_slice %305 {offsets = [0, 24], sizes = [8, 8], strides = [1, 1]} : vector<8x32xf32> to vector<8x8xf32>
    %372 = vector.extract_strided_slice %306 {offsets = [0, 24], sizes = [8, 8], strides = [1, 1]} : vector<8x32xf32> to vector<8x8xf32>
    %373 = vector.extract_strided_slice %307 {offsets = [0, 24], sizes = [8, 8], strides = [1, 1]} : vector<8x32xf32> to vector<8x8xf32>
    %cst_151 = arith.constant dense<0.000000e+00> : vector<8x8xf32>
    %374 = tpu.matmul %371, %372, %cst_151 {dimension_numbers = #tpu.dot_dimension_numbers<[1], [1], [0], [0], [0, 0, 1, 0], [], []>} : vector<8x8xf32>, vector<8x8xf32>, vector<8x8xf32> -> vector<8x8xf32>
    %375 = vector.extract_strided_slice %287 {offsets = [3, 0, 0], sizes = [1, 8, 8], strides = [1, 1, 1]} : vector<4x8x8xf32> to vector<1x8x8xf32>
    %376 = vector.shape_cast %375 : vector<1x8x8xf32> to vector<8x8xf32>
    %377 = arith.addf %374, %376 : vector<8x8xf32>
    %cst_152 = arith.constant dense<0xFF800000> : vector<8xf32>
    %378 = vector.multi_reduction <maximumf>, %377, %cst_152 [1] : vector<8x8xf32> to vector<8xf32>
    %379 = vector.shape_cast %378 : vector<8xf32> to vector<8x1xf32>
    %380 = vector.broadcast %379 : vector<8x1xf32> to vector<8x8xf32>
    %381 = arith.subf %377, %380 : vector<8x8xf32>
    %382 = math.exp %381 : vector<8x8xf32>
    %cst_153 = arith.constant dense<0.000000e+00> : vector<8xf32>
    %383 = vector.multi_reduction <add>, %382, %cst_153 [1] : vector<8x8xf32> to vector<8xf32>
    %384 = vector.shape_cast %383 : vector<8xf32> to vector<8x1xf32>
    %385 = vector.broadcast %384 : vector<8x1xf32> to vector<8x8xf32>
    %386 = arith.divf %382, %385 : vector<8x8xf32>
    %cst_154 = arith.constant dense<0.000000e+00> : vector<8x8xf32>
    %387 = tpu.matmul %386, %373, %cst_154 {dimension_numbers = #tpu.dot_dimension_numbers<[1], [0], [0], [1], [0, 0, 1, 1], [], []>} : vector<8x8xf32>, vector<8x8xf32>, vector<8x8xf32> -> vector<8x8xf32>
    %388 = vector.extract_strided_slice %309 {offsets = [24, 0], sizes = [8, 32], strides = [1, 1]} : vector<32x32xf32> to vector<8x32xf32>
    %cst_155 = arith.constant dense<0.000000e+00> : vector<8x32xf32>
    %389 = tpu.matmul %387, %388, %cst_155 {dimension_numbers = #tpu.dot_dimension_numbers<[1], [0], [0], [1], [0, 0, 1, 1], [], []>} : vector<8x8xf32>, vector<8x32xf32>, vector<8x32xf32> -> vector<8x32xf32>
    %390 = arith.addf %370, %389 : vector<8x32xf32>
    %391 = arith.addf %285, %390 : vector<8x32xf32>
    %c0_156 = arith.constant 0 : index
    %c0_157 = arith.constant 0 : index
    %c0_158 = arith.constant 0 : index
    %392 = vector.load %arg18[%c0_156, %c0_157, %c0_158] : memref<2x1x32xf32, #tpu.memory_space<vmem>>, vector<1x1x32xf32>
    %393 = vector.shape_cast %392 : vector<1x1x32xf32> to vector<1x32xf32>
    %394 = arith.mulf %391, %391 : vector<8x32xf32>
    %cst_159 = arith.constant dense<0.000000e+00> : vector<8xf32>
    %395 = vector.multi_reduction <add>, %394, %cst_159 [1] : vector<8x32xf32> to vector<8xf32>
    %396 = vector.shape_cast %395 : vector<8xf32> to vector<8x1xf32>
    %cst_160 = arith.constant 3.200000e+01 : f32
    %397 = vector.broadcast %cst_160 : f32 to vector<8x1xf32>
    %398 = arith.divf %396, %397 : vector<8x1xf32>
    %cst_161 = arith.constant 9.99999997E-7 : f32
    %399 = vector.broadcast %cst_161 : f32 to vector<8x1xf32>
    %400 = arith.addf %398, %399 : vector<8x1xf32>
    %401 = math.rsqrt %400 : vector<8x1xf32>
    %402 = vector.broadcast %401 : vector<8x1xf32> to vector<8x32xf32>
    %403 = arith.mulf %391, %402 : vector<8x32xf32>
    %404 = vector.broadcast %393 : vector<1x32xf32> to vector<8x32xf32>
    %405 = arith.mulf %403, %404 : vector<8x32xf32>
    %c0_162 = arith.constant 0 : index
    %c0_163 = arith.constant 0 : index
    %c0_164 = arith.constant 0 : index
    %406 = vector.load %arg19[%c0_162, %c0_163, %c0_164] : memref<2x32x32xf32, #tpu.memory_space<vmem>>, vector<1x32x32xf32>
    %407 = vector.shape_cast %406 : vector<1x32x32xf32> to vector<32x32xf32>
    %cst_165 = arith.constant dense<0.000000e+00> : vector<8x32xf32>
    %408 = tpu.matmul %405, %407, %cst_165 {dimension_numbers = #tpu.dot_dimension_numbers<[1], [0], [0], [1], [0, 0, 1, 1], [], []>} : vector<8x32xf32>, vector<32x32xf32>, vector<8x32xf32> -> vector<8x32xf32>
    %c0_166 = arith.constant 0 : index
    %c0_167 = arith.constant 0 : index
    %c0_168 = arith.constant 0 : index
    %409 = vector.load %arg20[%c0_166, %c0_167, %c0_168] : memref<2x32x64xf32, #tpu.memory_space<vmem>>, vector<1x32x64xf32>
    %410 = vector.shape_cast %409 : vector<1x32x64xf32> to vector<32x64xf32>
    %cst_169 = arith.constant dense<0.000000e+00> : vector<8x64xf32>
    %411 = tpu.matmul %285, %410, %cst_169 {dimension_numbers = #tpu.dot_dimension_numbers<[1], [0], [0], [1], [0, 0, 1, 1], [], []>} : vector<8x32xf32>, vector<32x64xf32>, vector<8x64xf32> -> vector<8x64xf32>
    %412 = vector.extract_strided_slice %411 {offsets = [0, 0], sizes = [8, 32], strides = [1, 1]} : vector<8x64xf32> to vector<8x32xf32>
    %413 = vector.extract_strided_slice %411 {offsets = [0, 32], sizes = [8, 32], strides = [1, 1]} : vector<8x64xf32> to vector<8x32xf32>
    %c0_170 = arith.constant 0 : index
    %c0_171 = arith.constant 0 : index
    %c0_172 = arith.constant 0 : index
    %414 = vector.load %arg21[%c0_170, %c0_171, %c0_172] : memref<2x32x32xf32, #tpu.memory_space<vmem>>, vector<1x32x32xf32>
    %415 = vector.shape_cast %414 : vector<1x32x32xf32> to vector<32x32xf32>
    %cst_173 = arith.constant 0.000000e+00 : f32
    %416 = vector.broadcast %cst_173 : f32 to vector<8x32xf32>
    %417 = vector.extract_strided_slice %408 {offsets = [0, 0], sizes = [8, 8], strides = [1, 1]} : vector<8x32xf32> to vector<8x8xf32>
    %418 = vector.extract_strided_slice %412 {offsets = [0, 0], sizes = [8, 8], strides = [1, 1]} : vector<8x32xf32> to vector<8x8xf32>
    %419 = vector.extract_strided_slice %413 {offsets = [0, 0], sizes = [8, 8], strides = [1, 1]} : vector<8x32xf32> to vector<8x8xf32>
    %cst_174 = arith.constant dense<0.000000e+00> : vector<8x8xf32>
    %420 = tpu.matmul %417, %418, %cst_174 {dimension_numbers = #tpu.dot_dimension_numbers<[1], [1], [0], [0], [0, 0, 1, 0], [], []>} : vector<8x8xf32>, vector<8x8xf32>, vector<8x8xf32> -> vector<8x8xf32>
    %cst_175 = arith.constant dense<0xFF800000> : vector<8xf32>
    %421 = vector.multi_reduction <maximumf>, %420, %cst_175 [1] : vector<8x8xf32> to vector<8xf32>
    %422 = vector.shape_cast %421 : vector<8xf32> to vector<8x1xf32>
    %423 = vector.broadcast %422 : vector<8x1xf32> to vector<8x8xf32>
    %424 = arith.subf %420, %423 : vector<8x8xf32>
    %425 = math.exp %424 : vector<8x8xf32>
    %cst_176 = arith.constant dense<0.000000e+00> : vector<8xf32>
    %426 = vector.multi_reduction <add>, %425, %cst_176 [1] : vector<8x8xf32> to vector<8xf32>
    %427 = vector.shape_cast %426 : vector<8xf32> to vector<8x1xf32>
    %428 = vector.broadcast %427 : vector<8x1xf32> to vector<8x8xf32>
    %429 = arith.divf %425, %428 : vector<8x8xf32>
    %cst_177 = arith.constant dense<0.000000e+00> : vector<8x8xf32>
    %430 = tpu.matmul %429, %419, %cst_177 {dimension_numbers = #tpu.dot_dimension_numbers<[1], [0], [0], [1], [0, 0, 1, 1], [], []>} : vector<8x8xf32>, vector<8x8xf32>, vector<8x8xf32> -> vector<8x8xf32>
    %431 = vector.extract_strided_slice %415 {offsets = [0, 0], sizes = [8, 32], strides = [1, 1]} : vector<32x32xf32> to vector<8x32xf32>
    %cst_178 = arith.constant dense<0.000000e+00> : vector<8x32xf32>
    %432 = tpu.matmul %430, %431, %cst_178 {dimension_numbers = #tpu.dot_dimension_numbers<[1], [0], [0], [1], [0, 0, 1, 1], [], []>} : vector<8x8xf32>, vector<8x32xf32>, vector<8x32xf32> -> vector<8x32xf32>
    %433 = arith.addf %416, %432 : vector<8x32xf32>
    %434 = vector.extract_strided_slice %408 {offsets = [0, 8], sizes = [8, 8], strides = [1, 1]} : vector<8x32xf32> to vector<8x8xf32>
    %435 = vector.extract_strided_slice %412 {offsets = [0, 8], sizes = [8, 8], strides = [1, 1]} : vector<8x32xf32> to vector<8x8xf32>
    %436 = vector.extract_strided_slice %413 {offsets = [0, 8], sizes = [8, 8], strides = [1, 1]} : vector<8x32xf32> to vector<8x8xf32>
    %cst_179 = arith.constant dense<0.000000e+00> : vector<8x8xf32>
    %437 = tpu.matmul %434, %435, %cst_179 {dimension_numbers = #tpu.dot_dimension_numbers<[1], [1], [0], [0], [0, 0, 1, 0], [], []>} : vector<8x8xf32>, vector<8x8xf32>, vector<8x8xf32> -> vector<8x8xf32>
    %cst_180 = arith.constant dense<0xFF800000> : vector<8xf32>
    %438 = vector.multi_reduction <maximumf>, %437, %cst_180 [1] : vector<8x8xf32> to vector<8xf32>
    %439 = vector.shape_cast %438 : vector<8xf32> to vector<8x1xf32>
    %440 = vector.broadcast %439 : vector<8x1xf32> to vector<8x8xf32>
    %441 = arith.subf %437, %440 : vector<8x8xf32>
    %442 = math.exp %441 : vector<8x8xf32>
    %cst_181 = arith.constant dense<0.000000e+00> : vector<8xf32>
    %443 = vector.multi_reduction <add>, %442, %cst_181 [1] : vector<8x8xf32> to vector<8xf32>
    %444 = vector.shape_cast %443 : vector<8xf32> to vector<8x1xf32>
    %445 = vector.broadcast %444 : vector<8x1xf32> to vector<8x8xf32>
    %446 = arith.divf %442, %445 : vector<8x8xf32>
    %cst_182 = arith.constant dense<0.000000e+00> : vector<8x8xf32>
    %447 = tpu.matmul %446, %436, %cst_182 {dimension_numbers = #tpu.dot_dimension_numbers<[1], [0], [0], [1], [0, 0, 1, 1], [], []>} : vector<8x8xf32>, vector<8x8xf32>, vector<8x8xf32> -> vector<8x8xf32>
    %448 = vector.extract_strided_slice %415 {offsets = [8, 0], sizes = [8, 32], strides = [1, 1]} : vector<32x32xf32> to vector<8x32xf32>
    %cst_183 = arith.constant dense<0.000000e+00> : vector<8x32xf32>
    %449 = tpu.matmul %447, %448, %cst_183 {dimension_numbers = #tpu.dot_dimension_numbers<[1], [0], [0], [1], [0, 0, 1, 1], [], []>} : vector<8x8xf32>, vector<8x32xf32>, vector<8x32xf32> -> vector<8x32xf32>
    %450 = arith.addf %433, %449 : vector<8x32xf32>
    %451 = vector.extract_strided_slice %408 {offsets = [0, 16], sizes = [8, 8], strides = [1, 1]} : vector<8x32xf32> to vector<8x8xf32>
    %452 = vector.extract_strided_slice %412 {offsets = [0, 16], sizes = [8, 8], strides = [1, 1]} : vector<8x32xf32> to vector<8x8xf32>
    %453 = vector.extract_strided_slice %413 {offsets = [0, 16], sizes = [8, 8], strides = [1, 1]} : vector<8x32xf32> to vector<8x8xf32>
    %cst_184 = arith.constant dense<0.000000e+00> : vector<8x8xf32>
    %454 = tpu.matmul %451, %452, %cst_184 {dimension_numbers = #tpu.dot_dimension_numbers<[1], [1], [0], [0], [0, 0, 1, 0], [], []>} : vector<8x8xf32>, vector<8x8xf32>, vector<8x8xf32> -> vector<8x8xf32>
    %cst_185 = arith.constant dense<0xFF800000> : vector<8xf32>
    %455 = vector.multi_reduction <maximumf>, %454, %cst_185 [1] : vector<8x8xf32> to vector<8xf32>
    %456 = vector.shape_cast %455 : vector<8xf32> to vector<8x1xf32>
    %457 = vector.broadcast %456 : vector<8x1xf32> to vector<8x8xf32>
    %458 = arith.subf %454, %457 : vector<8x8xf32>
    %459 = math.exp %458 : vector<8x8xf32>
    %cst_186 = arith.constant dense<0.000000e+00> : vector<8xf32>
    %460 = vector.multi_reduction <add>, %459, %cst_186 [1] : vector<8x8xf32> to vector<8xf32>
    %461 = vector.shape_cast %460 : vector<8xf32> to vector<8x1xf32>
    %462 = vector.broadcast %461 : vector<8x1xf32> to vector<8x8xf32>
    %463 = arith.divf %459, %462 : vector<8x8xf32>
    %cst_187 = arith.constant dense<0.000000e+00> : vector<8x8xf32>
    %464 = tpu.matmul %463, %453, %cst_187 {dimension_numbers = #tpu.dot_dimension_numbers<[1], [0], [0], [1], [0, 0, 1, 1], [], []>} : vector<8x8xf32>, vector<8x8xf32>, vector<8x8xf32> -> vector<8x8xf32>
    %465 = vector.extract_strided_slice %415 {offsets = [16, 0], sizes = [8, 32], strides = [1, 1]} : vector<32x32xf32> to vector<8x32xf32>
    %cst_188 = arith.constant dense<0.000000e+00> : vector<8x32xf32>
    %466 = tpu.matmul %464, %465, %cst_188 {dimension_numbers = #tpu.dot_dimension_numbers<[1], [0], [0], [1], [0, 0, 1, 1], [], []>} : vector<8x8xf32>, vector<8x32xf32>, vector<8x32xf32> -> vector<8x32xf32>
    %467 = arith.addf %450, %466 : vector<8x32xf32>
    %468 = vector.extract_strided_slice %408 {offsets = [0, 24], sizes = [8, 8], strides = [1, 1]} : vector<8x32xf32> to vector<8x8xf32>
    %469 = vector.extract_strided_slice %412 {offsets = [0, 24], sizes = [8, 8], strides = [1, 1]} : vector<8x32xf32> to vector<8x8xf32>
    %470 = vector.extract_strided_slice %413 {offsets = [0, 24], sizes = [8, 8], strides = [1, 1]} : vector<8x32xf32> to vector<8x8xf32>
    %cst_189 = arith.constant dense<0.000000e+00> : vector<8x8xf32>
    %471 = tpu.matmul %468, %469, %cst_189 {dimension_numbers = #tpu.dot_dimension_numbers<[1], [1], [0], [0], [0, 0, 1, 0], [], []>} : vector<8x8xf32>, vector<8x8xf32>, vector<8x8xf32> -> vector<8x8xf32>
    %cst_190 = arith.constant dense<0xFF800000> : vector<8xf32>
    %472 = vector.multi_reduction <maximumf>, %471, %cst_190 [1] : vector<8x8xf32> to vector<8xf32>
    %473 = vector.shape_cast %472 : vector<8xf32> to vector<8x1xf32>
    %474 = vector.broadcast %473 : vector<8x1xf32> to vector<8x8xf32>
    %475 = arith.subf %471, %474 : vector<8x8xf32>
    %476 = math.exp %475 : vector<8x8xf32>
    %cst_191 = arith.constant dense<0.000000e+00> : vector<8xf32>
    %477 = vector.multi_reduction <add>, %476, %cst_191 [1] : vector<8x8xf32> to vector<8xf32>
    %478 = vector.shape_cast %477 : vector<8xf32> to vector<8x1xf32>
    %479 = vector.broadcast %478 : vector<8x1xf32> to vector<8x8xf32>
    %480 = arith.divf %476, %479 : vector<8x8xf32>
    %cst_192 = arith.constant dense<0.000000e+00> : vector<8x8xf32>
    %481 = tpu.matmul %480, %470, %cst_192 {dimension_numbers = #tpu.dot_dimension_numbers<[1], [0], [0], [1], [0, 0, 1, 1], [], []>} : vector<8x8xf32>, vector<8x8xf32>, vector<8x8xf32> -> vector<8x8xf32>
    %482 = vector.extract_strided_slice %415 {offsets = [24, 0], sizes = [8, 32], strides = [1, 1]} : vector<32x32xf32> to vector<8x32xf32>
    %cst_193 = arith.constant dense<0.000000e+00> : vector<8x32xf32>
    %483 = tpu.matmul %481, %482, %cst_193 {dimension_numbers = #tpu.dot_dimension_numbers<[1], [0], [0], [1], [0, 0, 1, 1], [], []>} : vector<8x8xf32>, vector<8x32xf32>, vector<8x32xf32> -> vector<8x32xf32>
    %484 = arith.addf %467, %483 : vector<8x32xf32>
    %485 = arith.addf %391, %484 : vector<8x32xf32>
    %c0_194 = arith.constant 0 : index
    %c0_195 = arith.constant 0 : index
    %c0_196 = arith.constant 0 : index
    %486 = vector.load %arg22[%c0_194, %c0_195, %c0_196] : memref<2x1x32xf32, #tpu.memory_space<vmem>>, vector<1x1x32xf32>
    %487 = vector.shape_cast %486 : vector<1x1x32xf32> to vector<1x32xf32>
    %488 = arith.mulf %485, %485 : vector<8x32xf32>
    %cst_197 = arith.constant dense<0.000000e+00> : vector<8xf32>
    %489 = vector.multi_reduction <add>, %488, %cst_197 [1] : vector<8x32xf32> to vector<8xf32>
    %490 = vector.shape_cast %489 : vector<8xf32> to vector<8x1xf32>
    %cst_198 = arith.constant 3.200000e+01 : f32
    %491 = vector.broadcast %cst_198 : f32 to vector<8x1xf32>
    %492 = arith.divf %490, %491 : vector<8x1xf32>
    %cst_199 = arith.constant 9.99999997E-7 : f32
    %493 = vector.broadcast %cst_199 : f32 to vector<8x1xf32>
    %494 = arith.addf %492, %493 : vector<8x1xf32>
    %495 = math.rsqrt %494 : vector<8x1xf32>
    %496 = vector.broadcast %495 : vector<8x1xf32> to vector<8x32xf32>
    %497 = arith.mulf %485, %496 : vector<8x32xf32>
    %498 = vector.broadcast %487 : vector<1x32xf32> to vector<8x32xf32>
    %499 = arith.mulf %497, %498 : vector<8x32xf32>
    %c0_200 = arith.constant 0 : index
    %c0_201 = arith.constant 0 : index
    %c0_202 = arith.constant 0 : index
    %500 = vector.load %arg23[%c0_200, %c0_201, %c0_202] : memref<2x32x64xf32, #tpu.memory_space<vmem>>, vector<1x32x64xf32>
    %501 = vector.shape_cast %500 : vector<1x32x64xf32> to vector<32x64xf32>
    %c0_203 = arith.constant 0 : index
    %c0_204 = arith.constant 0 : index
    %c0_205 = arith.constant 0 : index
    %502 = vector.load %arg24[%c0_203, %c0_204, %c0_205] : memref<2x64x32xf32, #tpu.memory_space<vmem>>, vector<1x64x32xf32>
    %503 = vector.shape_cast %502 : vector<1x64x32xf32> to vector<64x32xf32>
    %cst_206 = arith.constant dense<0.000000e+00> : vector<8x64xf32>
    %504 = tpu.matmul %499, %501, %cst_206 {dimension_numbers = #tpu.dot_dimension_numbers<[1], [0], [0], [1], [0, 0, 1, 1], [], []>} : vector<8x32xf32>, vector<32x64xf32>, vector<8x64xf32> -> vector<8x64xf32>
    %cst_207 = arith.constant 0.000000e+00 : f32
    %505 = vector.broadcast %cst_207 : f32 to vector<8x64xf32>
    %506 = arith.maximumf %504, %505 : vector<8x64xf32>
    %cst_208 = arith.constant dense<0.000000e+00> : vector<8x32xf32>
    %507 = tpu.matmul %506, %503, %cst_208 {dimension_numbers = #tpu.dot_dimension_numbers<[1], [0], [0], [1], [0, 0, 1, 1], [], []>} : vector<8x64xf32>, vector<64x32xf32>, vector<8x32xf32> -> vector<8x32xf32>
    %508 = arith.addf %485, %507 : vector<8x32xf32>
    %c1_209 = arith.constant 1 : index
    %c0_210 = arith.constant 0 : index
    %c0_211 = arith.constant 0 : index
    %509 = vector.load %arg15[%c1_209, %c0_210, %c0_211] : memref<2x1x32xf32, #tpu.memory_space<vmem>>, vector<1x1x32xf32>
    %510 = vector.shape_cast %509 : vector<1x1x32xf32> to vector<1x32xf32>
    %511 = arith.mulf %508, %508 : vector<8x32xf32>
    %cst_212 = arith.constant dense<0.000000e+00> : vector<8xf32>
    %512 = vector.multi_reduction <add>, %511, %cst_212 [1] : vector<8x32xf32> to vector<8xf32>
    %513 = vector.shape_cast %512 : vector<8xf32> to vector<8x1xf32>
    %cst_213 = arith.constant 3.200000e+01 : f32
    %514 = vector.broadcast %cst_213 : f32 to vector<8x1xf32>
    %515 = arith.divf %513, %514 : vector<8x1xf32>
    %cst_214 = arith.constant 9.99999997E-7 : f32
    %516 = vector.broadcast %cst_214 : f32 to vector<8x1xf32>
    %517 = arith.addf %515, %516 : vector<8x1xf32>
    %518 = math.rsqrt %517 : vector<8x1xf32>
    %519 = vector.broadcast %518 : vector<8x1xf32> to vector<8x32xf32>
    %520 = arith.mulf %508, %519 : vector<8x32xf32>
    %521 = vector.broadcast %510 : vector<1x32xf32> to vector<8x32xf32>
    %522 = arith.mulf %520, %521 : vector<8x32xf32>
    %c1_215 = arith.constant 1 : index
    %c0_216 = arith.constant 0 : index
    %c0_217 = arith.constant 0 : index
    %523 = vector.load %arg16[%c1_215, %c0_216, %c0_217] : memref<2x32x96xf32, #tpu.memory_space<vmem>>, vector<1x32x96xf32>
    %524 = vector.shape_cast %523 : vector<1x32x96xf32> to vector<32x96xf32>
    %cst_218 = arith.constant dense<0.000000e+00> : vector<8x96xf32>
    %525 = tpu.matmul %522, %524, %cst_218 {dimension_numbers = #tpu.dot_dimension_numbers<[1], [0], [0], [1], [0, 0, 1, 1], [], []>} : vector<8x32xf32>, vector<32x96xf32>, vector<8x96xf32> -> vector<8x96xf32>
    %526 = vector.extract_strided_slice %525 {offsets = [0, 0], sizes = [8, 32], strides = [1, 1]} : vector<8x96xf32> to vector<8x32xf32>
    %527 = vector.extract_strided_slice %525 {offsets = [0, 32], sizes = [8, 32], strides = [1, 1]} : vector<8x96xf32> to vector<8x32xf32>
    %528 = vector.extract_strided_slice %525 {offsets = [0, 64], sizes = [8, 32], strides = [1, 1]} : vector<8x96xf32> to vector<8x32xf32>
    %c1_219 = arith.constant 1 : index
    %c0_220 = arith.constant 0 : index
    %c0_221 = arith.constant 0 : index
    %529 = vector.load %arg17[%c1_219, %c0_220, %c0_221] : memref<2x32x32xf32, #tpu.memory_space<vmem>>, vector<1x32x32xf32>
    %530 = vector.shape_cast %529 : vector<1x32x32xf32> to vector<32x32xf32>
    %cst_222 = arith.constant 0.000000e+00 : f32
    %531 = vector.broadcast %cst_222 : f32 to vector<8x32xf32>
    %532 = vector.extract_strided_slice %526 {offsets = [0, 0], sizes = [8, 8], strides = [1, 1]} : vector<8x32xf32> to vector<8x8xf32>
    %533 = vector.extract_strided_slice %527 {offsets = [0, 0], sizes = [8, 8], strides = [1, 1]} : vector<8x32xf32> to vector<8x8xf32>
    %534 = vector.extract_strided_slice %528 {offsets = [0, 0], sizes = [8, 8], strides = [1, 1]} : vector<8x32xf32> to vector<8x8xf32>
    %cst_223 = arith.constant dense<0.000000e+00> : vector<8x8xf32>
    %535 = tpu.matmul %532, %533, %cst_223 {dimension_numbers = #tpu.dot_dimension_numbers<[1], [1], [0], [0], [0, 0, 1, 0], [], []>} : vector<8x8xf32>, vector<8x8xf32>, vector<8x8xf32> -> vector<8x8xf32>
    %536 = vector.extract_strided_slice %287 {offsets = [0, 0, 0], sizes = [1, 8, 8], strides = [1, 1, 1]} : vector<4x8x8xf32> to vector<1x8x8xf32>
    %537 = vector.shape_cast %536 : vector<1x8x8xf32> to vector<8x8xf32>
    %538 = arith.addf %535, %537 : vector<8x8xf32>
    %cst_224 = arith.constant dense<0xFF800000> : vector<8xf32>
    %539 = vector.multi_reduction <maximumf>, %538, %cst_224 [1] : vector<8x8xf32> to vector<8xf32>
    %540 = vector.shape_cast %539 : vector<8xf32> to vector<8x1xf32>
    %541 = vector.broadcast %540 : vector<8x1xf32> to vector<8x8xf32>
    %542 = arith.subf %538, %541 : vector<8x8xf32>
    %543 = math.exp %542 : vector<8x8xf32>
    %cst_225 = arith.constant dense<0.000000e+00> : vector<8xf32>
    %544 = vector.multi_reduction <add>, %543, %cst_225 [1] : vector<8x8xf32> to vector<8xf32>
    %545 = vector.shape_cast %544 : vector<8xf32> to vector<8x1xf32>
    %546 = vector.broadcast %545 : vector<8x1xf32> to vector<8x8xf32>
    %547 = arith.divf %543, %546 : vector<8x8xf32>
    %cst_226 = arith.constant dense<0.000000e+00> : vector<8x8xf32>
    %548 = tpu.matmul %547, %534, %cst_226 {dimension_numbers = #tpu.dot_dimension_numbers<[1], [0], [0], [1], [0, 0, 1, 1], [], []>} : vector<8x8xf32>, vector<8x8xf32>, vector<8x8xf32> -> vector<8x8xf32>
    %549 = vector.extract_strided_slice %530 {offsets = [0, 0], sizes = [8, 32], strides = [1, 1]} : vector<32x32xf32> to vector<8x32xf32>
    %cst_227 = arith.constant dense<0.000000e+00> : vector<8x32xf32>
    %550 = tpu.matmul %548, %549, %cst_227 {dimension_numbers = #tpu.dot_dimension_numbers<[1], [0], [0], [1], [0, 0, 1, 1], [], []>} : vector<8x8xf32>, vector<8x32xf32>, vector<8x32xf32> -> vector<8x32xf32>
    %551 = arith.addf %531, %550 : vector<8x32xf32>
    %552 = vector.extract_strided_slice %526 {offsets = [0, 8], sizes = [8, 8], strides = [1, 1]} : vector<8x32xf32> to vector<8x8xf32>
    %553 = vector.extract_strided_slice %527 {offsets = [0, 8], sizes = [8, 8], strides = [1, 1]} : vector<8x32xf32> to vector<8x8xf32>
    %554 = vector.extract_strided_slice %528 {offsets = [0, 8], sizes = [8, 8], strides = [1, 1]} : vector<8x32xf32> to vector<8x8xf32>
    %cst_228 = arith.constant dense<0.000000e+00> : vector<8x8xf32>
    %555 = tpu.matmul %552, %553, %cst_228 {dimension_numbers = #tpu.dot_dimension_numbers<[1], [1], [0], [0], [0, 0, 1, 0], [], []>} : vector<8x8xf32>, vector<8x8xf32>, vector<8x8xf32> -> vector<8x8xf32>
    %556 = vector.extract_strided_slice %287 {offsets = [1, 0, 0], sizes = [1, 8, 8], strides = [1, 1, 1]} : vector<4x8x8xf32> to vector<1x8x8xf32>
    %557 = vector.shape_cast %556 : vector<1x8x8xf32> to vector<8x8xf32>
    %558 = arith.addf %555, %557 : vector<8x8xf32>
    %cst_229 = arith.constant dense<0xFF800000> : vector<8xf32>
    %559 = vector.multi_reduction <maximumf>, %558, %cst_229 [1] : vector<8x8xf32> to vector<8xf32>
    %560 = vector.shape_cast %559 : vector<8xf32> to vector<8x1xf32>
    %561 = vector.broadcast %560 : vector<8x1xf32> to vector<8x8xf32>
    %562 = arith.subf %558, %561 : vector<8x8xf32>
    %563 = math.exp %562 : vector<8x8xf32>
    %cst_230 = arith.constant dense<0.000000e+00> : vector<8xf32>
    %564 = vector.multi_reduction <add>, %563, %cst_230 [1] : vector<8x8xf32> to vector<8xf32>
    %565 = vector.shape_cast %564 : vector<8xf32> to vector<8x1xf32>
    %566 = vector.broadcast %565 : vector<8x1xf32> to vector<8x8xf32>
    %567 = arith.divf %563, %566 : vector<8x8xf32>
    %cst_231 = arith.constant dense<0.000000e+00> : vector<8x8xf32>
    %568 = tpu.matmul %567, %554, %cst_231 {dimension_numbers = #tpu.dot_dimension_numbers<[1], [0], [0], [1], [0, 0, 1, 1], [], []>} : vector<8x8xf32>, vector<8x8xf32>, vector<8x8xf32> -> vector<8x8xf32>
    %569 = vector.extract_strided_slice %530 {offsets = [8, 0], sizes = [8, 32], strides = [1, 1]} : vector<32x32xf32> to vector<8x32xf32>
    %cst_232 = arith.constant dense<0.000000e+00> : vector<8x32xf32>
    %570 = tpu.matmul %568, %569, %cst_232 {dimension_numbers = #tpu.dot_dimension_numbers<[1], [0], [0], [1], [0, 0, 1, 1], [], []>} : vector<8x8xf32>, vector<8x32xf32>, vector<8x32xf32> -> vector<8x32xf32>
    %571 = arith.addf %551, %570 : vector<8x32xf32>
    %572 = vector.extract_strided_slice %526 {offsets = [0, 16], sizes = [8, 8], strides = [1, 1]} : vector<8x32xf32> to vector<8x8xf32>
    %573 = vector.extract_strided_slice %527 {offsets = [0, 16], sizes = [8, 8], strides = [1, 1]} : vector<8x32xf32> to vector<8x8xf32>
    %574 = vector.extract_strided_slice %528 {offsets = [0, 16], sizes = [8, 8], strides = [1, 1]} : vector<8x32xf32> to vector<8x8xf32>
    %cst_233 = arith.constant dense<0.000000e+00> : vector<8x8xf32>
    %575 = tpu.matmul %572, %573, %cst_233 {dimension_numbers = #tpu.dot_dimension_numbers<[1], [1], [0], [0], [0, 0, 1, 0], [], []>} : vector<8x8xf32>, vector<8x8xf32>, vector<8x8xf32> -> vector<8x8xf32>
    %576 = vector.extract_strided_slice %287 {offsets = [2, 0, 0], sizes = [1, 8, 8], strides = [1, 1, 1]} : vector<4x8x8xf32> to vector<1x8x8xf32>
    %577 = vector.shape_cast %576 : vector<1x8x8xf32> to vector<8x8xf32>
    %578 = arith.addf %575, %577 : vector<8x8xf32>
    %cst_234 = arith.constant dense<0xFF800000> : vector<8xf32>
    %579 = vector.multi_reduction <maximumf>, %578, %cst_234 [1] : vector<8x8xf32> to vector<8xf32>
    %580 = vector.shape_cast %579 : vector<8xf32> to vector<8x1xf32>
    %581 = vector.broadcast %580 : vector<8x1xf32> to vector<8x8xf32>
    %582 = arith.subf %578, %581 : vector<8x8xf32>
    %583 = math.exp %582 : vector<8x8xf32>
    %cst_235 = arith.constant dense<0.000000e+00> : vector<8xf32>
    %584 = vector.multi_reduction <add>, %583, %cst_235 [1] : vector<8x8xf32> to vector<8xf32>
    %585 = vector.shape_cast %584 : vector<8xf32> to vector<8x1xf32>
    %586 = vector.broadcast %585 : vector<8x1xf32> to vector<8x8xf32>
    %587 = arith.divf %583, %586 : vector<8x8xf32>
    %cst_236 = arith.constant dense<0.000000e+00> : vector<8x8xf32>
    %588 = tpu.matmul %587, %574, %cst_236 {dimension_numbers = #tpu.dot_dimension_numbers<[1], [0], [0], [1], [0, 0, 1, 1], [], []>} : vector<8x8xf32>, vector<8x8xf32>, vector<8x8xf32> -> vector<8x8xf32>
    %589 = vector.extract_strided_slice %530 {offsets = [16, 0], sizes = [8, 32], strides = [1, 1]} : vector<32x32xf32> to vector<8x32xf32>
    %cst_237 = arith.constant dense<0.000000e+00> : vector<8x32xf32>
    %590 = tpu.matmul %588, %589, %cst_237 {dimension_numbers = #tpu.dot_dimension_numbers<[1], [0], [0], [1], [0, 0, 1, 1], [], []>} : vector<8x8xf32>, vector<8x32xf32>, vector<8x32xf32> -> vector<8x32xf32>
    %591 = arith.addf %571, %590 : vector<8x32xf32>
    %592 = vector.extract_strided_slice %526 {offsets = [0, 24], sizes = [8, 8], strides = [1, 1]} : vector<8x32xf32> to vector<8x8xf32>
    %593 = vector.extract_strided_slice %527 {offsets = [0, 24], sizes = [8, 8], strides = [1, 1]} : vector<8x32xf32> to vector<8x8xf32>
    %594 = vector.extract_strided_slice %528 {offsets = [0, 24], sizes = [8, 8], strides = [1, 1]} : vector<8x32xf32> to vector<8x8xf32>
    %cst_238 = arith.constant dense<0.000000e+00> : vector<8x8xf32>
    %595 = tpu.matmul %592, %593, %cst_238 {dimension_numbers = #tpu.dot_dimension_numbers<[1], [1], [0], [0], [0, 0, 1, 0], [], []>} : vector<8x8xf32>, vector<8x8xf32>, vector<8x8xf32> -> vector<8x8xf32>
    %596 = vector.extract_strided_slice %287 {offsets = [3, 0, 0], sizes = [1, 8, 8], strides = [1, 1, 1]} : vector<4x8x8xf32> to vector<1x8x8xf32>
    %597 = vector.shape_cast %596 : vector<1x8x8xf32> to vector<8x8xf32>
    %598 = arith.addf %595, %597 : vector<8x8xf32>
    %cst_239 = arith.constant dense<0xFF800000> : vector<8xf32>
    %599 = vector.multi_reduction <maximumf>, %598, %cst_239 [1] : vector<8x8xf32> to vector<8xf32>
    %600 = vector.shape_cast %599 : vector<8xf32> to vector<8x1xf32>
    %601 = vector.broadcast %600 : vector<8x1xf32> to vector<8x8xf32>
    %602 = arith.subf %598, %601 : vector<8x8xf32>
    %603 = math.exp %602 : vector<8x8xf32>
    %cst_240 = arith.constant dense<0.000000e+00> : vector<8xf32>
    %604 = vector.multi_reduction <add>, %603, %cst_240 [1] : vector<8x8xf32> to vector<8xf32>
    %605 = vector.shape_cast %604 : vector<8xf32> to vector<8x1xf32>
    %606 = vector.broadcast %605 : vector<8x1xf32> to vector<8x8xf32>
    %607 = arith.divf %603, %606 : vector<8x8xf32>
    %cst_241 = arith.constant dense<0.000000e+00> : vector<8x8xf32>
    %608 = tpu.matmul %607, %594, %cst_241 {dimension_numbers = #tpu.dot_dimension_numbers<[1], [0], [0], [1], [0, 0, 1, 1], [], []>} : vector<8x8xf32>, vector<8x8xf32>, vector<8x8xf32> -> vector<8x8xf32>
    %609 = vector.extract_strided_slice %530 {offsets = [24, 0], sizes = [8, 32], strides = [1, 1]} : vector<32x32xf32> to vector<8x32xf32>
    %cst_242 = arith.constant dense<0.000000e+00> : vector<8x32xf32>
    %610 = tpu.matmul %608, %609, %cst_242 {dimension_numbers = #tpu.dot_dimension_numbers<[1], [0], [0], [1], [0, 0, 1, 1], [], []>} : vector<8x8xf32>, vector<8x32xf32>, vector<8x32xf32> -> vector<8x32xf32>
    %611 = arith.addf %591, %610 : vector<8x32xf32>
    %612 = arith.addf %508, %611 : vector<8x32xf32>
    %c1_243 = arith.constant 1 : index
    %c0_244 = arith.constant 0 : index
    %c0_245 = arith.constant 0 : index
    %613 = vector.load %arg18[%c1_243, %c0_244, %c0_245] : memref<2x1x32xf32, #tpu.memory_space<vmem>>, vector<1x1x32xf32>
    %614 = vector.shape_cast %613 : vector<1x1x32xf32> to vector<1x32xf32>
    %615 = arith.mulf %612, %612 : vector<8x32xf32>
    %cst_246 = arith.constant dense<0.000000e+00> : vector<8xf32>
    %616 = vector.multi_reduction <add>, %615, %cst_246 [1] : vector<8x32xf32> to vector<8xf32>
    %617 = vector.shape_cast %616 : vector<8xf32> to vector<8x1xf32>
    %cst_247 = arith.constant 3.200000e+01 : f32
    %618 = vector.broadcast %cst_247 : f32 to vector<8x1xf32>
    %619 = arith.divf %617, %618 : vector<8x1xf32>
    %cst_248 = arith.constant 9.99999997E-7 : f32
    %620 = vector.broadcast %cst_248 : f32 to vector<8x1xf32>
    %621 = arith.addf %619, %620 : vector<8x1xf32>
    %622 = math.rsqrt %621 : vector<8x1xf32>
    %623 = vector.broadcast %622 : vector<8x1xf32> to vector<8x32xf32>
    %624 = arith.mulf %612, %623 : vector<8x32xf32>
    %625 = vector.broadcast %614 : vector<1x32xf32> to vector<8x32xf32>
    %626 = arith.mulf %624, %625 : vector<8x32xf32>
    %c1_249 = arith.constant 1 : index
    %c0_250 = arith.constant 0 : index
    %c0_251 = arith.constant 0 : index
    %627 = vector.load %arg19[%c1_249, %c0_250, %c0_251] : memref<2x32x32xf32, #tpu.memory_space<vmem>>, vector<1x32x32xf32>
    %628 = vector.shape_cast %627 : vector<1x32x32xf32> to vector<32x32xf32>
    %cst_252 = arith.constant dense<0.000000e+00> : vector<8x32xf32>
    %629 = tpu.matmul %626, %628, %cst_252 {dimension_numbers = #tpu.dot_dimension_numbers<[1], [0], [0], [1], [0, 0, 1, 1], [], []>} : vector<8x32xf32>, vector<32x32xf32>, vector<8x32xf32> -> vector<8x32xf32>
    %c1_253 = arith.constant 1 : index
    %c0_254 = arith.constant 0 : index
    %c0_255 = arith.constant 0 : index
    %630 = vector.load %arg20[%c1_253, %c0_254, %c0_255] : memref<2x32x64xf32, #tpu.memory_space<vmem>>, vector<1x32x64xf32>
    %631 = vector.shape_cast %630 : vector<1x32x64xf32> to vector<32x64xf32>
    %cst_256 = arith.constant dense<0.000000e+00> : vector<8x64xf32>
    %632 = tpu.matmul %285, %631, %cst_256 {dimension_numbers = #tpu.dot_dimension_numbers<[1], [0], [0], [1], [0, 0, 1, 1], [], []>} : vector<8x32xf32>, vector<32x64xf32>, vector<8x64xf32> -> vector<8x64xf32>
    %633 = vector.extract_strided_slice %632 {offsets = [0, 0], sizes = [8, 32], strides = [1, 1]} : vector<8x64xf32> to vector<8x32xf32>
    %634 = vector.extract_strided_slice %632 {offsets = [0, 32], sizes = [8, 32], strides = [1, 1]} : vector<8x64xf32> to vector<8x32xf32>
    %c1_257 = arith.constant 1 : index
    %c0_258 = arith.constant 0 : index
    %c0_259 = arith.constant 0 : index
    %635 = vector.load %arg21[%c1_257, %c0_258, %c0_259] : memref<2x32x32xf32, #tpu.memory_space<vmem>>, vector<1x32x32xf32>
    %636 = vector.shape_cast %635 : vector<1x32x32xf32> to vector<32x32xf32>
    %cst_260 = arith.constant 0.000000e+00 : f32
    %637 = vector.broadcast %cst_260 : f32 to vector<8x32xf32>
    %638 = vector.extract_strided_slice %629 {offsets = [0, 0], sizes = [8, 8], strides = [1, 1]} : vector<8x32xf32> to vector<8x8xf32>
    %639 = vector.extract_strided_slice %633 {offsets = [0, 0], sizes = [8, 8], strides = [1, 1]} : vector<8x32xf32> to vector<8x8xf32>
    %640 = vector.extract_strided_slice %634 {offsets = [0, 0], sizes = [8, 8], strides = [1, 1]} : vector<8x32xf32> to vector<8x8xf32>
    %cst_261 = arith.constant dense<0.000000e+00> : vector<8x8xf32>
    %641 = tpu.matmul %638, %639, %cst_261 {dimension_numbers = #tpu.dot_dimension_numbers<[1], [1], [0], [0], [0, 0, 1, 0], [], []>} : vector<8x8xf32>, vector<8x8xf32>, vector<8x8xf32> -> vector<8x8xf32>
    %cst_262 = arith.constant dense<0xFF800000> : vector<8xf32>
    %642 = vector.multi_reduction <maximumf>, %641, %cst_262 [1] : vector<8x8xf32> to vector<8xf32>
    %643 = vector.shape_cast %642 : vector<8xf32> to vector<8x1xf32>
    %644 = vector.broadcast %643 : vector<8x1xf32> to vector<8x8xf32>
    %645 = arith.subf %641, %644 : vector<8x8xf32>
    %646 = math.exp %645 : vector<8x8xf32>
    %cst_263 = arith.constant dense<0.000000e+00> : vector<8xf32>
    %647 = vector.multi_reduction <add>, %646, %cst_263 [1] : vector<8x8xf32> to vector<8xf32>
    %648 = vector.shape_cast %647 : vector<8xf32> to vector<8x1xf32>
    %649 = vector.broadcast %648 : vector<8x1xf32> to vector<8x8xf32>
    %650 = arith.divf %646, %649 : vector<8x8xf32>
    %cst_264 = arith.constant dense<0.000000e+00> : vector<8x8xf32>
    %651 = tpu.matmul %650, %640, %cst_264 {dimension_numbers = #tpu.dot_dimension_numbers<[1], [0], [0], [1], [0, 0, 1, 1], [], []>} : vector<8x8xf32>, vector<8x8xf32>, vector<8x8xf32> -> vector<8x8xf32>
    %652 = vector.extract_strided_slice %636 {offsets = [0, 0], sizes = [8, 32], strides = [1, 1]} : vector<32x32xf32> to vector<8x32xf32>
    %cst_265 = arith.constant dense<0.000000e+00> : vector<8x32xf32>
    %653 = tpu.matmul %651, %652, %cst_265 {dimension_numbers = #tpu.dot_dimension_numbers<[1], [0], [0], [1], [0, 0, 1, 1], [], []>} : vector<8x8xf32>, vector<8x32xf32>, vector<8x32xf32> -> vector<8x32xf32>
    %654 = arith.addf %637, %653 : vector<8x32xf32>
    %655 = vector.extract_strided_slice %629 {offsets = [0, 8], sizes = [8, 8], strides = [1, 1]} : vector<8x32xf32> to vector<8x8xf32>
    %656 = vector.extract_strided_slice %633 {offsets = [0, 8], sizes = [8, 8], strides = [1, 1]} : vector<8x32xf32> to vector<8x8xf32>
    %657 = vector.extract_strided_slice %634 {offsets = [0, 8], sizes = [8, 8], strides = [1, 1]} : vector<8x32xf32> to vector<8x8xf32>
    %cst_266 = arith.constant dense<0.000000e+00> : vector<8x8xf32>
    %658 = tpu.matmul %655, %656, %cst_266 {dimension_numbers = #tpu.dot_dimension_numbers<[1], [1], [0], [0], [0, 0, 1, 0], [], []>} : vector<8x8xf32>, vector<8x8xf32>, vector<8x8xf32> -> vector<8x8xf32>
    %cst_267 = arith.constant dense<0xFF800000> : vector<8xf32>
    %659 = vector.multi_reduction <maximumf>, %658, %cst_267 [1] : vector<8x8xf32> to vector<8xf32>
    %660 = vector.shape_cast %659 : vector<8xf32> to vector<8x1xf32>
    %661 = vector.broadcast %660 : vector<8x1xf32> to vector<8x8xf32>
    %662 = arith.subf %658, %661 : vector<8x8xf32>
    %663 = math.exp %662 : vector<8x8xf32>
    %cst_268 = arith.constant dense<0.000000e+00> : vector<8xf32>
    %664 = vector.multi_reduction <add>, %663, %cst_268 [1] : vector<8x8xf32> to vector<8xf32>
    %665 = vector.shape_cast %664 : vector<8xf32> to vector<8x1xf32>
    %666 = vector.broadcast %665 : vector<8x1xf32> to vector<8x8xf32>
    %667 = arith.divf %663, %666 : vector<8x8xf32>
    %cst_269 = arith.constant dense<0.000000e+00> : vector<8x8xf32>
    %668 = tpu.matmul %667, %657, %cst_269 {dimension_numbers = #tpu.dot_dimension_numbers<[1], [0], [0], [1], [0, 0, 1, 1], [], []>} : vector<8x8xf32>, vector<8x8xf32>, vector<8x8xf32> -> vector<8x8xf32>
    %669 = vector.extract_strided_slice %636 {offsets = [8, 0], sizes = [8, 32], strides = [1, 1]} : vector<32x32xf32> to vector<8x32xf32>
    %cst_270 = arith.constant dense<0.000000e+00> : vector<8x32xf32>
    %670 = tpu.matmul %668, %669, %cst_270 {dimension_numbers = #tpu.dot_dimension_numbers<[1], [0], [0], [1], [0, 0, 1, 1], [], []>} : vector<8x8xf32>, vector<8x32xf32>, vector<8x32xf32> -> vector<8x32xf32>
    %671 = arith.addf %654, %670 : vector<8x32xf32>
    %672 = vector.extract_strided_slice %629 {offsets = [0, 16], sizes = [8, 8], strides = [1, 1]} : vector<8x32xf32> to vector<8x8xf32>
    %673 = vector.extract_strided_slice %633 {offsets = [0, 16], sizes = [8, 8], strides = [1, 1]} : vector<8x32xf32> to vector<8x8xf32>
    %674 = vector.extract_strided_slice %634 {offsets = [0, 16], sizes = [8, 8], strides = [1, 1]} : vector<8x32xf32> to vector<8x8xf32>
    %cst_271 = arith.constant dense<0.000000e+00> : vector<8x8xf32>
    %675 = tpu.matmul %672, %673, %cst_271 {dimension_numbers = #tpu.dot_dimension_numbers<[1], [1], [0], [0], [0, 0, 1, 0], [], []>} : vector<8x8xf32>, vector<8x8xf32>, vector<8x8xf32> -> vector<8x8xf32>
    %cst_272 = arith.constant dense<0xFF800000> : vector<8xf32>
    %676 = vector.multi_reduction <maximumf>, %675, %cst_272 [1] : vector<8x8xf32> to vector<8xf32>
    %677 = vector.shape_cast %676 : vector<8xf32> to vector<8x1xf32>
    %678 = vector.broadcast %677 : vector<8x1xf32> to vector<8x8xf32>
    %679 = arith.subf %675, %678 : vector<8x8xf32>
    %680 = math.exp %679 : vector<8x8xf32>
    %cst_273 = arith.constant dense<0.000000e+00> : vector<8xf32>
    %681 = vector.multi_reduction <add>, %680, %cst_273 [1] : vector<8x8xf32> to vector<8xf32>
    %682 = vector.shape_cast %681 : vector<8xf32> to vector<8x1xf32>
    %683 = vector.broadcast %682 : vector<8x1xf32> to vector<8x8xf32>
    %684 = arith.divf %680, %683 : vector<8x8xf32>
    %cst_274 = arith.constant dense<0.000000e+00> : vector<8x8xf32>
    %685 = tpu.matmul %684, %674, %cst_274 {dimension_numbers = #tpu.dot_dimension_numbers<[1], [0], [0], [1], [0, 0, 1, 1], [], []>} : vector<8x8xf32>, vector<8x8xf32>, vector<8x8xf32> -> vector<8x8xf32>
    %686 = vector.extract_strided_slice %636 {offsets = [16, 0], sizes = [8, 32], strides = [1, 1]} : vector<32x32xf32> to vector<8x32xf32>
    %cst_275 = arith.constant dense<0.000000e+00> : vector<8x32xf32>
    %687 = tpu.matmul %685, %686, %cst_275 {dimension_numbers = #tpu.dot_dimension_numbers<[1], [0], [0], [1], [0, 0, 1, 1], [], []>} : vector<8x8xf32>, vector<8x32xf32>, vector<8x32xf32> -> vector<8x32xf32>
    %688 = arith.addf %671, %687 : vector<8x32xf32>
    %689 = vector.extract_strided_slice %629 {offsets = [0, 24], sizes = [8, 8], strides = [1, 1]} : vector<8x32xf32> to vector<8x8xf32>
    %690 = vector.extract_strided_slice %633 {offsets = [0, 24], sizes = [8, 8], strides = [1, 1]} : vector<8x32xf32> to vector<8x8xf32>
    %691 = vector.extract_strided_slice %634 {offsets = [0, 24], sizes = [8, 8], strides = [1, 1]} : vector<8x32xf32> to vector<8x8xf32>
    %cst_276 = arith.constant dense<0.000000e+00> : vector<8x8xf32>
    %692 = tpu.matmul %689, %690, %cst_276 {dimension_numbers = #tpu.dot_dimension_numbers<[1], [1], [0], [0], [0, 0, 1, 0], [], []>} : vector<8x8xf32>, vector<8x8xf32>, vector<8x8xf32> -> vector<8x8xf32>
    %cst_277 = arith.constant dense<0xFF800000> : vector<8xf32>
    %693 = vector.multi_reduction <maximumf>, %692, %cst_277 [1] : vector<8x8xf32> to vector<8xf32>
    %694 = vector.shape_cast %693 : vector<8xf32> to vector<8x1xf32>
    %695 = vector.broadcast %694 : vector<8x1xf32> to vector<8x8xf32>
    %696 = arith.subf %692, %695 : vector<8x8xf32>
    %697 = math.exp %696 : vector<8x8xf32>
    %cst_278 = arith.constant dense<0.000000e+00> : vector<8xf32>
    %698 = vector.multi_reduction <add>, %697, %cst_278 [1] : vector<8x8xf32> to vector<8xf32>
    %699 = vector.shape_cast %698 : vector<8xf32> to vector<8x1xf32>
    %700 = vector.broadcast %699 : vector<8x1xf32> to vector<8x8xf32>
    %701 = arith.divf %697, %700 : vector<8x8xf32>
    %cst_279 = arith.constant dense<0.000000e+00> : vector<8x8xf32>
    %702 = tpu.matmul %701, %691, %cst_279 {dimension_numbers = #tpu.dot_dimension_numbers<[1], [0], [0], [1], [0, 0, 1, 1], [], []>} : vector<8x8xf32>, vector<8x8xf32>, vector<8x8xf32> -> vector<8x8xf32>
    %703 = vector.extract_strided_slice %636 {offsets = [24, 0], sizes = [8, 32], strides = [1, 1]} : vector<32x32xf32> to vector<8x32xf32>
    %cst_280 = arith.constant dense<0.000000e+00> : vector<8x32xf32>
    %704 = tpu.matmul %702, %703, %cst_280 {dimension_numbers = #tpu.dot_dimension_numbers<[1], [0], [0], [1], [0, 0, 1, 1], [], []>} : vector<8x8xf32>, vector<8x32xf32>, vector<8x32xf32> -> vector<8x32xf32>
    %705 = arith.addf %688, %704 : vector<8x32xf32>
    %706 = arith.addf %612, %705 : vector<8x32xf32>
    %c1_281 = arith.constant 1 : index
    %c0_282 = arith.constant 0 : index
    %c0_283 = arith.constant 0 : index
    %707 = vector.load %arg22[%c1_281, %c0_282, %c0_283] : memref<2x1x32xf32, #tpu.memory_space<vmem>>, vector<1x1x32xf32>
    %708 = vector.shape_cast %707 : vector<1x1x32xf32> to vector<1x32xf32>
    %709 = arith.mulf %706, %706 : vector<8x32xf32>
    %cst_284 = arith.constant dense<0.000000e+00> : vector<8xf32>
    %710 = vector.multi_reduction <add>, %709, %cst_284 [1] : vector<8x32xf32> to vector<8xf32>
    %711 = vector.shape_cast %710 : vector<8xf32> to vector<8x1xf32>
    %cst_285 = arith.constant 3.200000e+01 : f32
    %712 = vector.broadcast %cst_285 : f32 to vector<8x1xf32>
    %713 = arith.divf %711, %712 : vector<8x1xf32>
    %cst_286 = arith.constant 9.99999997E-7 : f32
    %714 = vector.broadcast %cst_286 : f32 to vector<8x1xf32>
    %715 = arith.addf %713, %714 : vector<8x1xf32>
    %716 = math.rsqrt %715 : vector<8x1xf32>
    %717 = vector.broadcast %716 : vector<8x1xf32> to vector<8x32xf32>
    %718 = arith.mulf %706, %717 : vector<8x32xf32>
    %719 = vector.broadcast %708 : vector<1x32xf32> to vector<8x32xf32>
    %720 = arith.mulf %718, %719 : vector<8x32xf32>
    %c1_287 = arith.constant 1 : index
    %c0_288 = arith.constant 0 : index
    %c0_289 = arith.constant 0 : index
    %721 = vector.load %arg23[%c1_287, %c0_288, %c0_289] : memref<2x32x64xf32, #tpu.memory_space<vmem>>, vector<1x32x64xf32>
    %722 = vector.shape_cast %721 : vector<1x32x64xf32> to vector<32x64xf32>
    %c1_290 = arith.constant 1 : index
    %c0_291 = arith.constant 0 : index
    %c0_292 = arith.constant 0 : index
    %723 = vector.load %arg24[%c1_290, %c0_291, %c0_292] : memref<2x64x32xf32, #tpu.memory_space<vmem>>, vector<1x64x32xf32>
    %724 = vector.shape_cast %723 : vector<1x64x32xf32> to vector<64x32xf32>
    %cst_293 = arith.constant dense<0.000000e+00> : vector<8x64xf32>
    %725 = tpu.matmul %720, %722, %cst_293 {dimension_numbers = #tpu.dot_dimension_numbers<[1], [0], [0], [1], [0, 0, 1, 1], [], []>} : vector<8x32xf32>, vector<32x64xf32>, vector<8x64xf32> -> vector<8x64xf32>
    %cst_294 = arith.constant 0.000000e+00 : f32
    %726 = vector.broadcast %cst_294 : f32 to vector<8x64xf32>
    %727 = arith.maximumf %725, %726 : vector<8x64xf32>
    %cst_295 = arith.constant dense<0.000000e+00> : vector<8x32xf32>
    %728 = tpu.matmul %727, %724, %cst_295 {dimension_numbers = #tpu.dot_dimension_numbers<[1], [0], [0], [1], [0, 0, 1, 1], [], []>} : vector<8x64xf32>, vector<64x32xf32>, vector<8x32xf32> -> vector<8x32xf32>
    %729 = arith.addf %706, %728 : vector<8x32xf32>
    %c0_296 = arith.constant 0 : index
    %c0_297 = arith.constant 0 : index
    %730 = vector.load %arg25[%c0_296, %c0_297] : memref<1x32xf32, #tpu.memory_space<vmem>>, vector<1x32xf32>
    %731 = arith.mulf %729, %729 : vector<8x32xf32>
    %cst_298 = arith.constant dense<0.000000e+00> : vector<8xf32>
    %732 = vector.multi_reduction <add>, %731, %cst_298 [1] : vector<8x32xf32> to vector<8xf32>
    %733 = vector.shape_cast %732 : vector<8xf32> to vector<8x1xf32>
    %cst_299 = arith.constant 3.200000e+01 : f32
    %734 = vector.broadcast %cst_299 : f32 to vector<8x1xf32>
    %735 = arith.divf %733, %734 : vector<8x1xf32>
    %cst_300 = arith.constant 9.99999997E-7 : f32
    %736 = vector.broadcast %cst_300 : f32 to vector<8x1xf32>
    %737 = arith.addf %735, %736 : vector<8x1xf32>
    %738 = math.rsqrt %737 : vector<8x1xf32>
    %739 = vector.broadcast %738 : vector<8x1xf32> to vector<8x32xf32>
    %740 = arith.mulf %729, %739 : vector<8x32xf32>
    %741 = vector.broadcast %730 : vector<1x32xf32> to vector<8x32xf32>
    %742 = arith.mulf %740, %741 : vector<8x32xf32>
    %c0_301 = arith.constant 0 : index
    %c0_302 = arith.constant 0 : index
    %743 = vector.load %arg26[%c0_301, %c0_302] : memref<32x128xf32, #tpu.memory_space<vmem>>, vector<32x128xf32>
    %cst_303 = arith.constant dense<0.000000e+00> : vector<8x128xf32>
    %744 = tpu.matmul %742, %743, %cst_303 {dimension_numbers = #tpu.dot_dimension_numbers<[1], [0], [0], [1], [0, 0, 1, 1], [], []>} : vector<8x32xf32>, vector<32x128xf32>, vector<8x128xf32> -> vector<8x128xf32>
    %c0_304 = arith.constant 0 : index
    %c0_305 = arith.constant 0 : index
    %745 = vector.load %arg27[%c0_304, %c0_305] : memref<1x128xf32, #tpu.memory_space<vmem>>, vector<1x128xf32>
    %746 = vector.broadcast %745 : vector<1x128xf32> to vector<8x128xf32>
    %747 = arith.addf %744, %746 : vector<8x128xf32>
    %748 = vector.shape_cast %747 : vector<8x128xf32> to vector<1x8x128xf32>
    %c0_306 = arith.constant 0 : index
    %c0_307 = arith.constant 0 : index
    %c0_308 = arith.constant 0 : index
    %749 = vector.load %arg28[%c0_306, %c0_307, %c0_308] : memref<1x8x128xf32, #tpu.memory_space<vmem>>, vector<1x8x128xf32>
    tpu.vector_store %arg28[%c0_306, %c0_307, %c0_308], %748 {strides = array<i32>} : memref<1x8x128xf32, #tpu.memory_space<vmem>>, vector<1x8x128xf32>,
    %c0_309 = arith.constant 0 : index
    %c0_310 = arith.constant 0 : index
    %c0_311 = arith.constant 0 : index
    %750 = vector.load %arg5[%c0_309, %c0_310, %c0_311] : memref<1x8x1xi32, #tpu.memory_space<vmem>>, vector<1x8x1xi32>
    %751 = vector.shape_cast %750 : vector<1x8x1xi32> to vector<8x1xi32>
    %752 = tpu.iota {dimensions = array<i32: 1>} : vector<8x128xi32>
    %753 = vector.broadcast %751 : vector<8x1xi32> to vector<8x128xi32>
    %754 = arith.cmpi eq, %752, %753 : vector<8x128xi32>
    %cst_312 = arith.constant 0.000000e+00 : f32
    %755 = vector.broadcast %cst_312 : f32 to vector<8x128xf32>
    %756 = arith.select %754, %747, %755 : vector<8x128xi1>, vector<8x128xf32>
    %cst_313 = arith.constant dense<0.000000e+00> : vector<8xf32>
    %757 = vector.multi_reduction <add>, %756, %cst_313 [1] : vector<8x128xf32> to vector<8xf32>
    %758 = vector.shape_cast %757 : vector<8xf32> to vector<8x1xf32>
    %cst_314 = arith.constant dense<0xFF800000> : vector<8xf32>
    %759 = vector.multi_reduction <maximumf>, %747, %cst_314 [1] : vector<8x128xf32> to vector<8xf32>
    %760 = vector.shape_cast %759 : vector<8xf32> to vector<8x1xf32>
    %761 = vector.broadcast %760 : vector<8x1xf32> to vector<8x128xf32>
    %762 = arith.subf %747, %761 : vector<8x128xf32>
    %763 = math.exp %762 : vector<8x128xf32>
    %cst_315 = arith.constant dense<0.000000e+00> : vector<8xf32>
    %764 = vector.multi_reduction <add>, %763, %cst_315 [1] : vector<8x128xf32> to vector<8xf32>
    %765 = vector.shape_cast %764 : vector<8xf32> to vector<8x1xf32>
    %766 = math.log %765 : vector<8x1xf32>
    %767 = arith.addf %766, %760 : vector<8x1xf32>
    %768 = arith.subf %767, %758 : vector<8x1xf32>
    %cst_316 = arith.constant dense<0.000000e+00> : vector<1xf32>
    %769 = vector.multi_reduction <add>, %768, %cst_316 [0] : vector<8x1xf32> to vector<1xf32>
    %770 = vector.shape_cast %769 : vector<1xf32> to vector<1x1xf32>
    %771 = vector.shape_cast %770 : vector<1x1xf32> to vector<1x1x1xf32>
    %c0_317 = arith.constant 0 : index
    %c0_318 = arith.constant 0 : index
    %c0_319 = arith.constant 0 : index
    %772 = vector.load %arg29[%c0_317, %c0_318, %c0_319] : memref<1x1x1xf32, #tpu.memory_space<vmem>>, vector<1x1x1xf32>
    tpu.vector_store %arg29[%c0_317, %c0_318, %c0_319], %771 {strides = array<i32>} : memref<1x1x1xf32, #tpu.memory_space<vmem>>, vector<1x1x1xf32>,
    return
  }
  func.func @transform_0(%arg0: i32) -> (i32, i32, i32) {
    %c0_i32 = arith.constant 0 : i32
    %c0_i32_0 = arith.constant 0 : i32
    %c0_i32_1 = arith.constant 0 : i32
    return %arg0, %c0_i32, %c0_i32_0 : i32, i32, i32
  }
  func.func @transform_1(%arg0: i32) -> (i32, i32, i32, i32) {
    %c0_i32 = arith.constant 0 : i32
    %c0_i32_0 = arith.constant 0 : i32
    %c0_i32_1 = arith.constant 0 : i32
    %c0_i32_2 = arith.constant 0 : i32
    return %arg0, %c0_i32, %c0_i32_0, %c0_i32_1 : i32, i32, i32, i32
  }
  func.func @transform_2(%arg0: i32) -> (i32, i32, i32) {
    %c0_i32 = arith.constant 0 : i32
    %c0_i32_0 = arith.constant 0 : i32
    %c0_i32_1 = arith.constant 0 : i32
    return %arg0, %c0_i32, %c0_i32_0 : i32, i32, i32
  }
  func.func @transform_3(%arg0: i32) -> (i32, i32, i32, i32) {
    %c0_i32 = arith.constant 0 : i32
    %c0_i32_0 = arith.constant 0 : i32
    %c0_i32_1 = arith.constant 0 : i32
    %c0_i32_2 = arith.constant 0 : i32
    return %arg0, %c0_i32, %c0_i32_0, %c0_i32_1 : i32, i32, i32, i32
  }
  func.func @transform_4(%arg0: i32) -> (i32, i32, i32) {
    %c0_i32 = arith.constant 0 : i32
    %c0_i32_0 = arith.constant 0 : i32
    %c0_i32_1 = arith.constant 0 : i32
    return %arg0, %c0_i32, %c0_i32_0 : i32, i32, i32
  }
  func.func @transform_5(%arg0: i32) -> (i32, i32, i32) {
    %c0_i32 = arith.constant 0 : i32
    %c0_i32_0 = arith.constant 0 : i32
    %c0_i32_1 = arith.constant 0 : i32
    %c0_i32_2 = arith.constant 0 : i32
    return %c0_i32, %c0_i32_0, %c0_i32_1 : i32, i32, i32
  }
  func.func @transform_6(%arg0: i32) -> (i32, i32, i32) {
    %c0_i32 = arith.constant 0 : i32
    %c0_i32_0 = arith.constant 0 : i32
    %c0_i32_1 = arith.constant 0 : i32
    %c0_i32_2 = arith.constant 0 : i32
    return %c0_i32, %c0_i32_0, %c0_i32_1 : i32, i32, i32
  }
  func.func @transform_7(%arg0: i32) -> (i32, i32, i32) {
    %c0_i32 = arith.constant 0 : i32
    %c0_i32_0 = arith.constant 0 : i32
    %c0_i32_1 = arith.constant 0 : i32
    %c0_i32_2 = arith.constant 0 : i32
    return %c0_i32, %c0_i32_0, %c0_i32_1 : i32, i32, i32
  }
  func.func @transform_8(%arg0: i32) -> (i32, i32, i32) {
    %c0_i32 = arith.constant 0 : i32
    %c0_i32_0 = arith.constant 0 : i32
    %c0_i32_1 = arith.constant 0 : i32
    %c0_i32_2 = arith.constant 0 : i32
    return %c0_i32, %c0_i32_0, %c0_i32_1 : i32, i32, i32
  }
  func.func @transform_9(%arg0: i32) -> (i32, i32, i32) {
    %c0_i32 = arith.constant 0 : i32
    %c0_i32_0 = arith.constant 0 : i32
    %c0_i32_1 = arith.constant 0 : i32
    %c0_i32_2 = arith.constant 0 : i32
    return %c0_i32, %c0_i32_0, %c0_i32_1 : i32, i32, i32
  }
  func.func @transform_10(%arg0: i32) -> (i32, i32, i32) {
    %c0_i32 = arith.constant 0 : i32
    %c0_i32_0 = arith.constant 0 : i32
    %c0_i32_1 = arith.constant 0 : i32
    %c0_i32_2 = arith.constant 0 : i32
    return %c0_i32, %c0_i32_0, %c0_i32_1 : i32, i32, i32
  }
  func.func @transform_11(%arg0: i32) -> (i32, i32) {
    %c0_i32 = arith.constant 0 : i32
    %c0_i32_0 = arith.constant 0 : i32
    %c0_i32_1 = arith.constant 0 : i32
    return %c0_i32, %c0_i32_0 : i32, i32
  }
  func.func @transform_12(%arg0: i32) -> (i32, i32) {
    %c0_i32 = arith.constant 0 : i32
    %c0_i32_0 = arith.constant 0 : i32
    %c0_i32_1 = arith.constant 0 : i32
    return %c0_i32, %c0_i32_0 : i32, i32
  }
  func.func @transform_13(%arg0: i32) -> (i32, i32) {
    %c0_i32 = arith.constant 0 : i32
    %c0_i32_0 = arith.constant 0 : i32
    %c0_i32_1 = arith.constant 0 : i32
    return %c0_i32, %c0_i32_0 : i32, i32
  }
  func.func @transform_14(%arg0: i32) -> (i32, i32, i32) {
    %c0_i32 = arith.constant 0 : i32
    %c0_i32_0 = arith.constant 0 : i32
    %c0_i32_1 = arith.constant 0 : i32
    %c0_i32_2 = arith.constant 0 : i32
    return %c0_i32, %c0_i32_0, %c0_i32_1 : i32, i32, i32
  }
  func.func @transform_15(%arg0: i32) -> (i32, i32, i32) {
    %c0_i32 = arith.constant 0 : i32
    %c0_i32_0 = arith.constant 0 : i32
    %c0_i32_1 = arith.constant 0 : i32
    %c0_i32_2 = arith.constant 0 : i32
    return %c0_i32, %c0_i32_0, %c0_i32_1 : i32, i32, i32
  }
  func.func @transform_16(%arg0: i32) -> (i32, i32, i32) {
    %c0_i32 = arith.constant 0 : i32
    %c0_i32_0 = arith.constant 0 : i32
    %c0_i32_1 = arith.constant 0 : i32
    %c0_i32_2 = arith.constant 0 : i32
    return %c0_i32, %c0_i32_0, %c0_i32_1 : i32, i32, i32
  }
  func.func @transform_17(%arg0: i32) -> (i32, i32, i32) {
    %c0_i32 = arith.constant 0 : i32
    %c0_i32_0 = arith.constant 0 : i32
    %c0_i32_1 = arith.constant 0 : i32
    %c0_i32_2 = arith.constant 0 : i32
    return %c0_i32, %c0_i32_0, %c0_i32_1 : i32, i32, i32
  }
  func.func @transform_18(%arg0: i32) -> (i32, i32, i32) {
    %c0_i32 = arith.constant 0 : i32
    %c0_i32_0 = arith.constant 0 : i32
    %c0_i32_1 = arith.constant 0 : i32
    %c0_i32_2 = arith.constant 0 : i32
    return %c0_i32, %c0_i32_0, %c0_i32_1 : i32, i32, i32
  }
  func.func @transform_19(%arg0: i32) -> (i32, i32, i32) {
    %c0_i32 = arith.constant 0 : i32
    %c0_i32_0 = arith.constant 0 : i32
    %c0_i32_1 = arith.constant 0 : i32
    %c0_i32_2 = arith.constant 0 : i32
    return %c0_i32, %c0_i32_0, %c0_i32_1 : i32, i32, i32
  }
  func.func @transform_20(%arg0: i32) -> (i32, i32, i32) {
    %c0_i32 = arith.constant 0 : i32
    %c0_i32_0 = arith.constant 0 : i32
    %c0_i32_1 = arith.constant 0 : i32
    %c0_i32_2 = arith.constant 0 : i32
    return %c0_i32, %c0_i32_0, %c0_i32_1 : i32, i32, i32
  }
  func.func @transform_21(%arg0: i32) -> (i32, i32, i32) {
    %c0_i32 = arith.constant 0 : i32
    %c0_i32_0 = arith.constant 0 : i32
    %c0_i32_1 = arith.constant 0 : i32
    %c0_i32_2 = arith.constant 0 : i32
    return %c0_i32, %c0_i32_0, %c0_i32_1 : i32, i32, i32
  }
  func.func @transform_22(%arg0: i32) -> (i32, i32, i32) {
    %c0_i32 = arith.constant 0 : i32
    %c0_i32_0 = arith.constant 0 : i32
    %c0_i32_1 = arith.constant 0 : i32
    %c0_i32_2 = arith.constant 0 : i32
    return %c0_i32, %c0_i32_0, %c0_i32_1 : i32, i32, i32
  }
  func.func @transform_23(%arg0: i32) -> (i32, i32, i32) {
    %c0_i32 = arith.constant 0 : i32
    %c0_i32_0 = arith.constant 0 : i32
    %c0_i32_1 = arith.constant 0 : i32
    %c0_i32_2 = arith.constant 0 : i32
    return %c0_i32, %c0_i32_0, %c0_i32_1 : i32, i32, i32
  }
  func.func @transform_24(%arg0: i32) -> (i32, i32) {
    %c0_i32 = arith.constant 0 : i32
    %c0_i32_0 = arith.constant 0 : i32
    %c0_i32_1 = arith.constant 0 : i32
    return %c0_i32, %c0_i32_0 : i32, i32
  }
  func.func @transform_25(%arg0: i32) -> (i32, i32) {
    %c0_i32 = arith.constant 0 : i32
    %c0_i32_0 = arith.constant 0 : i32
    %c0_i32_1 = arith.constant 0 : i32
    return %c0_i32, %c0_i32_0 : i32, i32
  }
  func.func @transform_26(%arg0: i32) -> (i32, i32) {
    %c0_i32 = arith.constant 0 : i32
    %c0_i32_0 = arith.constant 0 : i32
    %c0_i32_1 = arith.constant 0 : i32
    return %c0_i32, %c0_i32_0 : i32, i32
  }
  func.func @transform_27(%arg0: i32) -> (i32, i32, i32) {
    %c0_i32 = arith.constant 0 : i32
    %c0_i32_0 = arith.constant 0 : i32
    %c0_i32_1 = arith.constant 0 : i32
    return %arg0, %c0_i32, %c0_i32_0 : i32, i32, i32
  }
  func.func @transform_28(%arg0: i32) -> (i32, i32, i32) {
    %c0_i32 = arith.constant 0 : i32
    %c0_i32_0 = arith.constant 0 : i32
    %c0_i32_1 = arith.constant 0 : i32
    return %arg0, %c0_i32, %c0_i32_0 : i32, i32, i32
  }
}

</mosaic_0001>

<bundles_post_ra>
// kernel: _lambda_.1
= control target key start
LH: loop header
LB: loop body
LE: loop exit
PB: predicated region body
PF: predicated region fallthrough
CT: control target
= control target key end

     0   :  { %s11360_s0 = inlined_call_operand.vmem [shape: f32[2,8,32], index: 0, kind: input, shape index: {}]   ;;  %s11361_s1 = inlined_call_operand.vmem [shape: f32[2,4,8,8], index: 1, kind: input, shape index: {}]   ;;  %s11362_s2 = inlined_call_operand.vmem [shape: f32[2,1,8], index: 2, kind: input, shape index: {}]   ;;  %s11363_s3 = inlined_call_operand.vmem [shape: f32[2,4,8,8], index: 3, kind: input, shape index: {}]   ;;  %s11364_s4 = inlined_call_operand.vmem [shape: s32[2,8,1], index: 4, kind: input, shape index: {}]   ;;  %s11365_s5 = inlined_call_operand.vmem [shape: f32[2,1,32], index: 5, kind: input, shape index: {}]   ;;  %s11366_s6 = inlined_call_operand.vmem [shape: f32[2,32,96], index: 6, kind: input, shape index: {}]   ;;  %s11367_s7 = inlined_call_operand.vmem [shape: f32[2,32,32], index: 7, kind: input, shape index: {}]   ;;  %s11368_s8 = inlined_call_operand.vmem [shape: f32[2,1,32], index: 8, kind: input, shape index: {}]   ;;  %s11369_s9 = inlined_call_operand.vmem [shape: f32[2,32,64], index: 9, kind: input, shape index: {}]   ;;  %s11370_s10 = inlined_call_operand.vmem [shape: f32[2,64,32], index: 10, kind: input, shape index: {}]   ;;  %s11371_s11 = inlined_call_operand.vmem [shape: f32[1,32], index: 11, kind: input, shape index: {}]   ;;  %s11372_s12 = inlined_call_operand.vmem [shape: f32[32,32], index: 12, kind: input, shape index: {}]   ;;  %s11373_s13 = inlined_call_operand.vmem [shape: f32[1,32], index: 13, kind: input, shape index: {}]   ;;  %s11374_s14 = inlined_call_operand.vmem [shape: f32[2,1,32], index: 14, kind: input, shape index: {}]   ;;  %s11375_s15 = inlined_call_operand.vmem [shape: f32[2,32,96], index: 15, kind: input, shape index: {}]   ;;  %s11376_s16 = inlined_call_operand.vmem [shape: f32[2,32,32], index: 16, kind: input, shape index: {}]   ;;  %s11377_s17 = inlined_call_operand.vmem [shape: f32[2,1,32], index: 17, kind: input, shape index: {}]   ;;  %s11378_s18 = inlined_call_operand.vmem [shape: f32[2,32,32], index: 18, kind: input, shape index: {}]   ;;  %s11379_s19 = inlined_call_operand.vmem [shape: f32[2,32,64], index: 19, kind: input, shape index: {}]   ;;  %s11380_s20 = inlined_call_operand.vmem [shape: f32[2,32,32], index: 20, kind: input, shape index: {}]   ;;  %s11381_s21 = inlined_call_operand.vmem [shape: f32[2,1,32], index: 21, kind: input, shape index: {}]   ;;  %s11382_s22 = inlined_call_operand.vmem [shape: f32[2,32,64], index: 22, kind: input, shape index: {}]   ;;  %s11383_s23 = inlined_call_operand.vmem [shape: f32[2,64,32], index: 23, kind: input, shape index: {}]   ;;  %s11384_s24 = inlined_call_operand.vmem [shape: f32[1,32], index: 24, kind: input, shape index: {}]   ;;  %s11385_s25 = inlined_call_operand.vmem [shape: f32[32,128], index: 25, kind: input, shape index: {}]   ;;  %s11386_s26 = inlined_call_operand.vmem [shape: f32[1,128], index: 26, kind: input, shape index: {}]   ;;  %s11387_s27 = inlined_call_operand.hbm [shape: f32[2,8,128], index: 27, kind: output, shape index: {0}]   ;;  %s11388_s28 = inlined_call_operand.vmem [shape: f32[2,1,1], index: 28, kind: output, shape index: {1}]  }
   0x1   :  { %11444 = sst [smem:[#allocation14_spill]] %s11360_s0 }
   0x2   :  { %11445 = sst [smem:[#allocation15_spill]] %s11361_s1 }
   0x3   :  { %11446 = sst [smem:[#allocation16_spill]] %s11362_s2 }
   0x4   :  { %11447 = sst [smem:[#allocation17_spill]] %s11363_s3 }
   0x5   :  { %11448 = sst [smem:[#allocation18_spill]] %s11364_s4 }
   0x6   :  { %11449 = sst [smem:[#allocation19_spill]] %s11365_s5 }
   0x7   :  { %11450 = sst [smem:[#allocation20_spill]] %s11366_s6 }
   0x8   :  { %11451 = sst [smem:[#allocation21_spill]] %s11367_s7 }
   0x9   :  { %11452 = sst [smem:[#allocation22_spill]] %s11368_s8 }
   0xa   :  { %11453 = sst [smem:[#allocation23_spill]] %s11369_s9 }
   0xb   :  { %11454 = sst [smem:[#allocation24_spill]] %s11370_s10 }
   0xc   :  { %11455 = sst [smem:[#allocation25_spill]] %s11371_s11 }
   0xd   :  { %11456 = sst [smem:[#allocation26_spill]] %s11372_s12 }
   0xe   :  { %11457 = sst [smem:[#allocation27_spill]] %s11373_s13 }
   0xf   :  { %11458 = sst [smem:[#allocation28_spill]] %s11377_s17 }
  0x10   :  { %11459 = sst [smem:[#allocation29_spill]] %s11380_s20 }
  0x11   :  { %11460 = sst [smem:[#allocation30_spill]] %s11381_s21 }
  0x12   :  { %11461 = sst [smem:[#allocation31_spill]] %s11382_s22 }
  0x13   :  { %11462 = sst [smem:[#allocation32_spill]] %s11383_s23 }
  0x14   :  { %11463 = sst [smem:[#allocation33_spill]] %s11384_s24 }
  0x15   :  { %11464 = sst [smem:[#allocation34_spill]] %s11385_s25 }
  0x16   :  { %11465 = sst [smem:[#allocation35_spill]] %s11386_s26 }
  0x17   :  { %11466 = sst [smem:[#allocation36_spill]] %s11387_s27 }
  0x18   :  { %11467 = sst [smem:[#allocation37_spill]] %s11388_s28 }
  0x19   :  { %34 = vsyncpa [#allocation3], 0 }
  0x1a   :  { %36 = vsyncpa [#allocation3 + $0x1], 0  ;;  %s10149_s8 = smov 0   ;;  %s10151_s5 = smov 0  }
  0x1b   :  { %s10153_s9 = smov 0   ;;  %s10155_s30 = smov 0  }
  0x1c LB: > { %11468 = sst [smem:[#allocation5_spill]] %s9974_s8  ;;  %s10170_s3 = sadd.s32 4294967295, %s9986_s30   ;;  %s9986_s30 = sphi %s10155_s30, %s11524_s30   ;;  %s9982_s9 = sphi %s10153_s9, %s11527_s9   ;;  %s9978_s5 = sphi %s10151_s5, %s11526_s5   ;;  %s9974_s8 = sphi %s10149_s8, %s11525_s8  }
  0x1d   : > { %11469 = sst [smem:[#allocation6_spill]] %s9978_s5  ;;  %s8561_s6 = sadd.s32 4294967294, %s9986_s30  }
  0x1e   : > { %11470 = sst [smem:[#allocation7_spill]] %s9982_s9  ;;  %s10174_s10 = sadd.s32 1, %s9986_s30  }
  0x1f   : > { %11471 = sst [smem:[#allocation8_spill]] %s9986_s30  ;;  %s641_s0 = sadd.s32 1, %s9982_s9 }
  0x20   : > { %11472 = sst [smem:[#allocation9_spill]] %s10170_s3  ;;  %s638_s11 = ssub.s32 %s9986_s30, %s10174_s10 }
  0x21   : > { %11473 = sst [smem:[#allocation10_spill]] %s10174_s10  ;;  %p651_p0 = scmp.ne.s32.totalorder %s9982_s9, %s9978_s5 }
  0x22   : > { %p639_p1 = scmp.eq.s32.totalorder %s638_s11, 0  ;;  %p652_p2 = scmp.eq.s32.totalorder %s10170_s3, 1 }
  0x23   : > { %p657_p3 = scmp.ne.s32.totalorder %s9978_s5, %s9974_s8  ;;  %p658_p4 = scmp.eq.s32.totalorder %s8561_s6, 1 }
  0x24   : > { %s10185_s29 = scalar_select %p639_p1, %s9982_s9, %s641_s0  }
  0x25   : > { %p10187_p5 = por %p652_p2, %p651_p0  ;;  %p10191_p6 = por %p658_p4, %p657_p3 }
  0x26   : > { %11474 = sst [smem:[#allocation11_spill]] %s10185_s29  ;;  %p8564_p7 = scmp.ge.s32.totalorder %s9986_s30, 1 }
  0x27   : > { %s11475_s2 = scalar_select %p10187_p5, 1, 0 }
  0x28   : > { %s11477_s7 = scalar_select %p10191_p6, 1, 0 }
  0x29   : > { %11476 = sst [smem:[#allocation12_spill]] %s11475_s2  ;;  %p804_p8 = scmp.lt.s32.totalorder %s9986_s30, 3 }
  0x2a   : > { %11478 = sst [smem:[#allocation13_spill]] %s11477_s7 }
  0x2b   : > { %p805_p9 = pnand %p8564_p7, %p804_p8 }
  0x2c   : > { %p897_p10 = scmp.lt.s32.totalorder (!%p805_p9), %s10170_s3, 1  ;;  %s11479_s0 = sld [smem:[#allocation14_spill]] (!%p805_p9)  ;;  %vm928_vm0 = vcmask (!%p805_p9), 261120   ;;  %v9988_v6 = vmov (!%p805_p9), 0.0|0.0   ;;  %vm9989_vm1 = vmmov (!%p805_p9), 0   ;;  %v9990_v9 = vmov (!%p805_p9), 0.0  }
  0x2d   : > { %808 = sbr.rel (%p805_p9) target bundleno = 20081 (0x4e71), region = 128  ;;  %s11480_s10 = sld [smem:[#allocation20_spill]] (!%p805_p9)  ;;  %9610 = vmatprep.subr.bf16.mxu0 (!%p805_p9), %v9988_v6  ;;  %9023 = vmatprep.mubr.msk.f32.mxu0 (!%p805_p9), %vm9989_vm1, %v9990_v9  ;;  %vm1028_vm2 = vcmask (!%p805_p9), 64512   ;;  %vm2082_vm3 = vcmask (!%p805_p9), 523264   ;;  %vm3480_vm4 = vcmask (!%p805_p9), 57344  }
  0x2e   : > { %9026 = vmatprep.subr.mxu1 (!%p805_p9), %v9990_v9  ;;  %9028 = vmatprep.mubr.msk.f32.mxu1 (!%p805_p9), %vm9989_vm1, %v9990_v9  ;;  %s11481_s30 = sld [smem:[#allocation19_spill]] (!%p805_p9)  ;;  %s11424_s7 = smov (!%p805_p9), 88  }
  0x2f   : > { %s11406_s4 = smov (!%p805_p9), 120   ;;  %s11483_s9 = sld [smem:[#allocation15_spill]] (!%p805_p9) }
  0x30   : > { %s11420_s8 = smov (!%p805_p9), 64   ;;  %s11489_s27 = smov (!%p805_p9), 96  }
  0x31   : > { %s11491_s2 = smov (!%p805_p9), 64   ;;  %s11494_s28 = smov (!%p805_p9), 56  }
  0x32   : > { %s11498_s26 = smov (!%p805_p9), 40   ;;  %s11499_s24 = sld [smem:[#allocation16_spill]] (!%p805_p9) }
  0x33   : > { %v944_v3 = vld [vmem:[%s11480_s10] sm:$0xff] (!%p805_p9)  ;;  %v945_v4 = vld [vmem:[%s11480_s10 + $0x8] sm:$0xff] (!%p805_p9)  ;;  %v946_v5 = vld [vmem:[%s11480_s10 + $0x10] sm:$0xff] (!%p805_p9)  ;;  %s11500_s5 = sld [smem:[#allocation25_spill]] (!%p805_p9)  ;;  %s11501_s22 = sld [smem:[#allocation26_spill]] (!%p805_p9) }
  0x34   : > { %s10199_s12 = scalar_select %p897_p10, %s10170_s3, 1  ;;  %v9611_v7 = vpack.c.bf16 %v945_v4, %v944_v3  ;;  %v947_v8 = vld [vmem:[%s11480_s10 + $0x18] sm:$0xff]  ;;  %v8572_v15 = vld [vmem:[%s11481_s30] ss:$0 sm:$0xff] }
  0x35   : > { %v9614_v10 = vpack.c.bf16 %v947_v8, %v946_v5  ;;  %s11482_s29 = smov %s11481_s30  ;;  %s11490_s3 = smov 120  }
  0x36   : > { %s11402_s1 = sshll.u32 %s10199_s12, 3  ;;  %9612 = vmatpush3.bf16.msra.mxu0 %v9611_v7  ;;  %s11403_s6 = sshll.u32 %s10199_s12, 5 }
  0x37   : > { %s900_s11 = scalar_lea.vmem %s11479_s0, %s11402_s1  ;;  %9613 = vmatprep.subr.bf16.mxu0 %v9988_v6  ;;  %s10264_s30 = scalar_lea.vmem %s11483_s9, %s11403_s6 }
  0x38   : > { %v10207_v0 = vld [vmem:[%s900_s11] sm:$0xff]  ;;  %s11422_s11 = smov 96   ;;  %v10270_v24 = vld [vmem:[%s10264_s30 + $0x8] sm:$0xff]  ;;  %s11404_s0 = smov 56  }
  0x39   : > { %v927_v1 = vmul.f32 %v10207_v0, %v10207_v0  ;;  %v10267_v23 = vld [vmem:[%s10264_s30] sm:$0xff]  ;;  %s11418_s9 = smov 80   ;;  %s11408_s1 = smov 112  }
  0x3a   : > { %9615 = vmatpush3.bf16.msra.mxu0 %v9614_v10  ;;  %s11410_s6 = smov 72   ;;  %s11502_s13 = sld [smem:[#allocation27_spill]] }
  0x3b   : > { %v929_v2 = vsel %vm928_vm0, %v927_v1, 0.0  ;;  %9036 = vmatprep.subr.mxu0 %v9990_v9  ;;  %v10314_v1 = vld [vmem:[%s10264_s30 + $0x10] sm:$0xff]  ;;  %s11504_s23 = sld [smem:[#allocation17_spill]]  ;;  %s11510_s17 = sld [smem:[#allocation34_spill]] }
  0x3c   : > { %930 = vadd.xlane.f32.xlu0 %v929_v2  ;;  %s11512_s21 = sld [smem:[#allocation33_spill]]  ;;  %s11516_s20 = sld [smem:[#allocation18_spill]] }
  0xc9   : > { %v931_v11 = vpop.xlane.xlu0 %930 }
  0xca   : > { %v933_v12 = vmul.f32 0.03125, %v931_v11 }
  0xcc   : > { %v934_v13 = vadd.f32 1e-06, %v933_v12 }
  0xce   : > { %9798 = vrsqrt.f32 %v934_v13 }
  0xd8   : > { %v9799_v14 = vpop.eup %9798 }
  0xd9   : > { %v936_v16 = vmul.f32 %v9799_v14, %v10207_v0 }
  0xdb   : > { %v943_v17 = vmul.f32 %v8572_v15, %v936_v16 }
  0xdd   : > { %9024 = vmatmul.mubr.msk.f32.vlgmr.msra.gmra.mrb[0].mxu0 %vm928_vm0, %v943_v17 }
  0xde   : > { %9038 = vmatprep.mubr.msk.f32.mxu0 %vm9989_vm1, %v9990_v9 }
 0x1b0   : > { %v10239_v18 = vpop.f32.mrb[0].mxu0 }
 0x1b1   : > { %1192 = vrot.lane.b32.xlu1 %v10239_v18, %s11424_s7  ;;  %1026 = vrot.lane.b32.xlu0 %v10239_v18, %s11422_s11  ;;  %v9025_v19 = vpop.f32.mrb[1].mxu0  ;;  %s11493_s11 = smov 112   ;;  %s11495_s7 = smov 48  }
 0x1b5   : > { %1190 = vrot.lane.b32.xlu1 %v10239_v18, %s11406_s4  ;;  %s11484_s4 = sld [smem:[#allocation21_spill]] }
 0x1bb   : > { %v1022_v43 = vld [vmem:[%s11484_s4 + $0x8] sm:$0xff]  ;;  %v1021_v52 = vld [vmem:[%s11484_s4] sm:$0xff] }
 0x223   : > { %v1193_v20 = vpop.permute.xlu1 %1192  ;;  %v1027_v21 = vpop.permute.xlu0 %1026 }
 0x224   : > { %9027 = vmatpush3.xpose.msk.msra.mxu1 %vm1028_vm2, %v1027_v21  ;;  %9037 = vmatpush3.xpose.msk.msra.mxu0 %vm1028_vm2, %v1193_v20  ;;  %v1023_v20 = vld [vmem:[%s11484_s4 + $0x10] sm:$0xff] }
 0x225   : > { %9031 = vmatprep.subr.mxu1 %v9990_v9  ;;  %9046 = vmatprep.subr.mxu0 %v9990_v9 }
 0x227   : > { %v1191_v22 = vpop.permute.xlu1 %1190  ;;  %9029 = vmatmul.mubr.msk.f32.vlgmr.msra.gmra.mrb[0].mxu1 %vm1028_vm2, %v10239_v18 }
 0x228   : > { %9039 = vmatmul.mubr.msk.f32.vlgmr.msra.gmra.mrb[2].mxu0 %vm1028_vm2, %v1191_v22  ;;  %9033 = vmatprep.mubr.msk.f32.mxu1 %vm9989_vm1, %v9990_v9 }
 0x229   : > { %9048 = vmatprep.mubr.msk.f32.mxu0 %vm9989_vm1, %v9990_v9  ;;  %9047 = vmatpush3.msra.mxu0 %v1022_v43 }
 0x22a   : > { %9056 = vmatprep.subr.mxu0 %v9990_v9 }
 0x2fa   : > { %v1099_v25 = vpop.f32.mrb[0].mxu1 }
 0x2fb   : > { %v1100_v26 = vadd.f32 %v1099_v25, %v10267_v23  ;;  %v9030_v27 = vpop.f32.mrb[1].mxu1  ;;  %v1264_v28 = vpop.f32.mrb[2].mxu0  ;;  %v10340_v25 = vld [vmem:[%s10264_s30 + $0x18] sm:$0xff]  ;;  %s11488_s30 = smov 88  }
 0x2fc   : > { %v1265_v29 = vadd.f32 %v1264_v28, %v10270_v24  ;;  %v9040_v30 = vpop.f32.mrb[3].mxu0 }
 0x2fd   : > { %v1103_v31 = vsel %vm1028_vm2, %v1100_v26, -inf }
 0x2fe   : > { %1104 = vmax.xlane.f32.xlu1 %v1103_v31  ;;  %v1268_v32 = vsel %vm1028_vm2, %v1265_v29, -inf }
 0x2ff   : > { %1269 = vmax.xlane.f32.xlu0 %v1268_v32 }
 0x315   : > { %1279 = vrot.lane.b32.xlu0 %v10239_v18, %s11404_s0  ;;  %s11412_s0 = smov 104  }
 0x38b   : > { %v1105_v33 = vpop.xlane.xlu1 %1104 }
 0x38c   : > { %v1106_v34 = vsub.f32 %v1100_v26, %v1105_v33  ;;  %v1270_v35 = vpop.xlane.xlu0 %1269 }
 0x38d   : > { %v1271_v36 = vsub.f32 %v1265_v29, %v1270_v35 }
 0x38e   : > { %v1107_v37 = vmul.f32 1.442695, %v1106_v34 }
 0x38f   : > { %v1272_v38 = vmul.f32 1.442695, %v1271_v36 }
 0x390   : > { %9800 = vpow2.f32 %v1107_v37  ;;  %v1280_v49 = vpop.permute.xlu0 %1279 }
 0x391   : > { %9802 = vpow2.f32 %v1272_v38 }
 0x39a   : > { %v9801_v39 = vpop.eup %9800 }
 0x39b   : > { %v1109_v40 = vsel %vm1028_vm2, %v9801_v39, 0.0  ;;  %v9803_v41 = vpop.eup %9802 }
 0x39c   : > { %1110 = vadd.xlane.f32.xlu1 %v1109_v40  ;;  %v1274_v42 = vsel %vm1028_vm2, %v9803_v41, 0.0 }
 0x3a0   : > { %1275 = vadd.xlane.f32.xlu1 %v1274_v42 }
 0x3b1   : > { %1114 = vrot.lane.b32.xlu1 %v10239_v18, %s11420_s8  ;;  %s11496_s8 = smov 104  }
 0x3b5   : > { %1503 = vrot.lane.b32.xlu1 %v10239_v18, %s11418_s9  ;;  %s11492_s9 = smov 80  }
 0x3b9   : > { %1501 = vrot.lane.b32.xlu1 %v10239_v18, %s11408_s1  ;;  %s11416_s1 = smov 48  }
 0x429   : > { %v1111_v44 = vpop.xlane.xlu1 %1110 }
 0x42a   : > { %9804 = vrcp.f32 %v1111_v44 }
 0x42d   : > { %v1276_v45 = vpop.xlane.xlu1 %1275 }
 0x42e   : > { %9806 = vrcp.f32 %v1276_v45 }
 0x431   : > { %v1115_v46 = vpop.permute.xlu1 %1114 }
 0x432   : > { %9032 = vmatpush3.msra.mxu1 %v1115_v46 }
 0x433   : > { %9041 = vmatprep.subr.mxu1 %v9990_v9 }
 0x434   : > { %v9805_v47 = vpop.eup %9804 }
 0x435   : > { %v1113_v48 = vmul.f32 %v9805_v47, %v9801_v39  ;;  %v1504_v55 = vpop.permute.xlu1 %1503 }
 0x437   : > { %9034 = vmatmul.mubr.msk.f32.vlgmr.msra.gmra.mrb[2].mxu1 %vm1028_vm2, %v1113_v48 }
 0x438   : > { %v9807_v50 = vpop.eup %9806  ;;  %9042 = vmatpush3.msra.mxu1 %v1280_v49  ;;  %9043 = vmatprep.mubr.msk.f32.mxu1 %vm9989_vm1, %v9990_v9 }
 0x439   : > { %v1278_v51 = vmul.f32 %v9807_v50, %v9803_v41  ;;  %9051 = vmatprep.subr.mxu1 %v9990_v9  ;;  %v1502_v58 = vpop.permute.xlu1 %1501 }
 0x43b   : > { %9044 = vmatmul.mubr.msk.f32.vlgmr.msra.gmra.mrb[4].mxu1 %vm1028_vm2, %v1278_v51 }
 0x43c   : > { %9053 = vmatprep.mubr.msk.f32.mxu1 %vm9989_vm1, %v9990_v9  ;;  %9052 = vmatpush3.msra.mxu1 %v1021_v52 }
 0x43d   : > { %9061 = vmatprep.subr.mxu1 %v9990_v9 }
 0x50a   : > { %v1186_v53 = vpop.f32.mrb[2].mxu1 }
 0x50b   : > { %v9035_v54 = vpop.f32.mrb[3].mxu1  ;;  %9054 = vmatmul.mubr.msk.f32.vlgmr.msra.gmra.mrb[6].mxu1 %vm1028_vm2, %v1186_v53 }
 0x50c   : > { %9063 = vmatprep.mubr.msk.f32.mxu1 %vm9989_vm1, %v9990_v9 }
 0x50e   : > { %v1351_v56 = vpop.f32.mrb[4].mxu1 }
 0x50f   : > { %v9045_v57 = vpop.f32.mrb[5].mxu1  ;;  %9049 = vmatmul.mubr.msk.f32.vlgmr.msra.gmra.mrb[4].mxu0 %vm1028_vm2, %v1351_v56 }
 0x510   : > { %9057 = vmatpush3.xpose.msk.msra.mxu0 %vm1028_vm2, %v1504_v55  ;;  %9058 = vmatprep.mubr.msk.f32.mxu0 %vm9989_vm1, %v9990_v9 }
 0x511   : > { %9066 = vmatprep.subr.mxu0 %v9990_v9 }
 0x513   : > { %9059 = vmatmul.mubr.msk.f32.vlgmr.msra.gmra.mrb[6].mxu0 %vm1028_vm2, %v1502_v58 }
 0x514   : > { %9068 = vmatprep.mubr.msk.f32.mxu0 %vm9989_vm1, %v9990_v9  ;;  %9067 = vmatpush3.msra.mxu0 %v1023_v20 }
 0x515   : > { %9076 = vmatprep.subr.mxu0 %v9990_v9 }
 0x5de   : > { %v1497_v59 = vpop.f32.mrb[6].mxu1 }
 0x5df   : > { %v9055_v60 = vpop.f32.mrb[7].mxu1 }
 0x5e2   : > { %v1424_v61 = vpop.f32.mrb[4].mxu0 }
 0x5e3   : > { %v1498_v62 = vadd.f32 %v1497_v59, %v1424_v61  ;;  %v9050_v63 = vpop.f32.mrb[5].mxu0 }
 0x5e6   : > { %v1575_v2 = vpop.f32.mrb[6].mxu0 }
 0x5e7   : > { %v1576_v3 = vadd.f32 %v1575_v2, %v10314_v1  ;;  %v9060_v4 = vpop.f32.mrb[7].mxu0 }
 0x5e9   : > { %v1579_v5 = vsel %vm1028_vm2, %v1576_v3, -inf }
 0x5ea   : > { %1580 = vmax.xlane.f32.xlu1 %v1579_v5 }
 0x5fb   : > { %1742 = vrot.lane.b32.xlu1 %v10239_v18, %s11410_s6  ;;  %s11414_s6 = smov 40  }
 0x5ff   : > { %1740 = vrot.lane.b32.xlu1 %v10239_v18, %s11412_s0  ;;  %s11487_s0 = sld [smem:[#allocation22_spill]] }
 0x677   : > { %v1581_v7 = vpop.xlane.xlu1 %1580 }
 0x678   : > { %v1582_v8 = vsub.f32 %v1576_v3, %v1581_v7  ;;  %v8590_v7 = vld [vmem:[%s11487_s0] ss:$0 sm:$0xff] }
 0x67a   : > { %v1583_v10 = vmul.f32 1.442695, %v1582_v8 }
 0x67b   : > { %v1743_v16 = vpop.permute.xlu1 %1742 }
 0x67c   : > { %9808 = vpow2.f32 %v1583_v10 }
 0x67f   : > { %v1741_v19 = vpop.permute.xlu1 %1740 }
 0x686   : > { %v9809_v11 = vpop.eup %9808 }
 0x687   : > { %v1585_v12 = vsel %vm1028_vm2, %v9809_v11, 0.0 }
 0x688   : > { %1586 = vadd.xlane.f32.xlu0 %v1585_v12 }
 0x69e   : > { %1590 = vrot.lane.b32.xlu0 %v10239_v18, %s11416_s1  ;;  %s11486_s1 = sld [smem:[#allocation24_spill]] }
 0x6a4   : > { %v2000_v55 = vld [vmem:[%s11486_s1] sm:$0xff]  ;;  %v2001_v56 = vld [vmem:[%s11486_s1 + $0x8] sm:$0xff]  ;;  %v2002_v57 = vld [vmem:[%s11486_s1 + $0x10] sm:$0xff] }
 0x6a5   : > { %v9623_v58 = vpack.c.bf16 %v2001_v56, %v2000_v55  ;;  %v2003_v59 = vld [vmem:[%s11486_s1 + $0x18] sm:$0xff]  ;;  %v2004_v61 = vld [vmem:[%s11486_s1 + $0x20] sm:$0xff] }
 0x6a6   : > { %v9626_v60 = vpack.c.bf16 %v2003_v59, %v2002_v57  ;;  %v2007_v12 = vld [vmem:[%s11486_s1 + $0x38] sm:$0xff]  ;;  %v8601_v59 = vld [vmem:[%s11484_s4 + $0x28] sm:$0xff] }
 0x715   : > { %v1587_v13 = vpop.xlane.xlu0 %1586 }
 0x716   : > { %9810 = vrcp.f32 %v1587_v13 }
 0x719   : > { %v1591_v14 = vpop.permute.xlu0 %1590 }
 0x71a   : > { %9062 = vmatpush3.msra.mxu1 %v1591_v14 }
 0x71b   : > { %9071 = vmatprep.subr.mxu1 %v9990_v9 }
 0x720   : > { %v9811_v15 = vpop.eup %9810 }
 0x721   : > { %v1589_v17 = vmul.f32 %v9811_v15, %v9809_v11  ;;  %v2006_v11 = vld [vmem:[%s11486_s1 + $0x30] sm:$0xff] }
 0x722   : > { %v9632_v13 = vpack.c.bf16 %v2007_v12, %v2006_v11 }
 0x723   : > { %9064 = vmatmul.mubr.msk.f32.vlgmr.msra.gmra.mrb[8].mxu1 %vm1028_vm2, %v1589_v17 }
 0x724   : > { %9072 = vmatpush3.xpose.msk.msra.mxu1 %vm1028_vm2, %v1743_v16  ;;  %9073 = vmatprep.mubr.msk.f32.mxu1 %vm9989_vm1, %v9990_v9 }
 0x725   : > { %9081 = vmatprep.subr.mxu1 %v9990_v9 }
 0x727   : > { %9074 = vmatmul.mubr.msk.f32.vlgmr.msra.gmra.mrb[10].mxu1 %vm1028_vm2, %v1741_v19 }
 0x728   : > { %9083 = vmatprep.mubr.msk.f32.mxu1 %vm9989_vm1, %v9990_v9 }
 0x7f6   : > { %v1662_v21 = vpop.f32.mrb[8].mxu1 }
 0x7f7   : > { %v9065_v22 = vpop.f32.mrb[9].mxu1  ;;  %9069 = vmatmul.mubr.msk.f32.vlgmr.msra.gmra.mrb[8].mxu0 %vm1028_vm2, %v1662_v21 }
 0x7f8   : > { %9078 = vmatprep.mubr.msk.f32.mxu0 %vm9989_vm1, %v9990_v9 }
 0x7fa   : > { %v1814_v26 = vpop.f32.mrb[10].mxu1 }
 0x7fb   : > { %v1815_v27 = vadd.f32 %v1814_v26, %v10340_v25  ;;  %v9075_v28 = vpop.f32.mrb[11].mxu1  ;;  %v8595_v26 = vld [vmem:[%s11480_s10 + $0x20] sm:$0xff] }
 0x7fd   : > { %v1818_v29 = vsel %vm1028_vm2, %v1815_v27, -inf }
 0x7fe   : > { %1819 = vmax.xlane.f32.xlu0 %v1818_v29  ;;  %v8597_v29 = vld [vmem:[%s11480_s10 + $0x30] sm:$0xff] }
 0x814   : > { %1829 = vrot.lane.b32.xlu0 %v10239_v18, %s11414_s6  ;;  %v1024_v18 = vld [vmem:[%s11484_s4 + $0x18] sm:$0xff]  ;;  %s11485_s6 = sld [smem:[#allocation23_spill]] }
 0x815   : > { %9082 = vmatpush3.msra.mxu1 %v1024_v18 }
 0x816   : > { %9622 = vmatprep.subr.bf16.mxu1 %v9988_v6 }
 0x81a   : > { %v1996_v50 = vld [vmem:[%s11485_s6] sm:$0xff]  ;;  %v1997_v51 = vld [vmem:[%s11485_s6 + $0x8] sm:$0xff]  ;;  %v1999_v53 = vld [vmem:[%s11485_s6 + $0x18] sm:$0xff] }
 0x81b   : > { %v9617_v52 = vpack.c.bf16 %v1997_v51, %v1996_v50 }
 0x88b   : > { %v1820_v30 = vpop.xlane.xlu0 %1819 }
 0x88c   : > { %v1821_v31 = vsub.f32 %v1815_v27, %v1820_v30  ;;  %v8596_v27 = vld [vmem:[%s11480_s10 + $0x28] sm:$0xff]  ;;  %v8598_v30 = vld [vmem:[%s11480_s10 + $0x38] sm:$0xff]  ;;  %s11497_s10 = smov 72  }
 0x88d   : > { %v9635_v28 = vpack.c.bf16 %v8596_v27, %v8595_v26 }
 0x88e   : > { %v1822_v32 = vmul.f32 1.442695, %v1821_v31  ;;  %v9638_v31 = vpack.c.bf16 %v8598_v30, %v8597_v29 }
 0x88f   : > { %v1830_v33 = vpop.permute.xlu0 %1829 }
 0x890   : > { %9812 = vpow2.f32 %v1822_v32  ;;  %9077 = vmatpush3.msra.mxu0 %v1830_v33 }
 0x891   : > { %9616 = vmatprep.subr.bf16.mxu0 %v9988_v6 }
 0x89a   : > { %v9813_v34 = vpop.eup %9812 }
 0x89b   : > { %v1824_v35 = vsel %vm1028_vm2, %v9813_v34, 0.0 }
 0x89c   : > { %1825 = vadd.xlane.f32.xlu1 %v1824_v35 }
 0x8ca   : > { %v1735_v36 = vpop.f32.mrb[8].mxu0 }
 0x8cb   : > { %v1739_v37 = vadd.f32 %v1735_v36, %v1498_v62  ;;  %v9070_v38 = vpop.f32.mrb[9].mxu0  ;;  %v2005_v62 = vld [vmem:[%s11486_s1 + $0x28] sm:$0xff]  ;;  %v8594_v36 = vld [vmem:[%s11482_s29 + $0x1] ss:$0 sm:$0xff]  ;;  %s908_s29 = scalar_lea.vmem %s11499_s24, %s10199_s12  ;;  %s11507_s24 = sld [smem:[#allocation31_spill]] }
 0x8cc   : > { %v9629_v63 = vpack.c.bf16 %v2005_v62, %v2004_v61 }
 0x929   : > { %v1826_v39 = vpop.xlane.xlu1 %1825 }
 0x92a   : > { %9814 = vrcp.f32 %v1826_v39 }
 0x934   : > { %v9815_v40 = vpop.eup %9814 }
 0x935   : > { %v1828_v41 = vmul.f32 %v9815_v40, %v9813_v34 }
 0x937   : > { %9079 = vmatmul.mubr.msk.f32.vlgmr.msra.gmra.mrb[10].mxu0 %vm1028_vm2, %v1828_v41 }
 0x938   : > { %9094 = vmatprep.mubr.msk.f32.mxu0 %vm9989_vm1, %v9990_v9  ;;  %9618 = vmatpush3.bf16.msra.mxu0 %v9617_v52 }
 0x939   : > { %9619 = vmatprep.subr.bf16.mxu0 %v9988_v6 }
 0xa0a   : > { %v1901_v42 = vpop.f32.mrb[10].mxu0 }
 0xa0b   : > { %v9080_v43 = vpop.f32.mrb[11].mxu0  ;;  %9084 = vmatmul.mubr.msk.f32.vlgmr.msra.gmra.mrb[12].mxu1 %vm1028_vm2, %v1901_v42 }
 0xa0c   : > { %9113 = vmatprep.mubr.msk.f32.mxu1 %vm9989_vm1, %v9990_v9  ;;  %9624 = vmatpush3.bf16.msra.mxu1 %v9623_v58 }
 0xa0d   : > { %9625 = vmatprep.subr.bf16.mxu1 %v9988_v6 }
 0xa10   : > { %9627 = vmatpush3.bf16.msra.mxu1 %v9626_v60 }
 0xa11   : > { %9628 = vmatprep.subr.bf16.mxu1 %v9988_v6 }
 0xa14   : > { %9630 = vmatpush3.bf16.msra.mxu1 %v9629_v63 }
 0xa15   : > { %9631 = vmatprep.subr.bf16.mxu1 %v9988_v6 }
 0xa18   : > { %9633 = vmatpush3.bf16.msra.mxu1 %v9632_v13 }
 0xa19   : > { %9132 = vmatprep.subr.mxu1 %v9990_v9 }
 0xade   : > { %v1974_v44 = vpop.f32.mrb[12].mxu1 }
 0xadf   : > { %v1978_v45 = vadd.f32 %v1974_v44, %v1739_v37  ;;  %v9085_v46 = vpop.f32.mrb[13].mxu1 }
 0xae1   : > { %v1979_v47 = vadd.f32 %v1978_v45, %v10207_v0  ;;  %v1998_v0 = vld [vmem:[%s11485_s6 + $0x10] sm:$0xff] }
 0xae2   : > { %v9620_v54 = vpack.c.bf16 %v1999_v53, %v1998_v0 }
 0xae3   : > { %v1981_v48 = vmul.f32 %v1979_v47, %v1979_v47 }
 0xae4   : > { %9621 = vmatpush3.bf16.msra.mxu0 %v9620_v54 }
 0xae5   : > { %v1982_v49 = vsel %vm928_vm0, %v1981_v48, 0.0  ;;  %9634 = vmatprep.subr.bf16.mxu0 %v9988_v6 }
 0xae6   : > { %1983 = vadd.xlane.f32.xlu1 %v1982_v49 }
 0xb73   : > { %v1984_v2 = vpop.xlane.xlu1 %1983 }
 0xb74   : > { %v1985_v3 = vmul.f32 0.03125, %v1984_v2 }
 0xb76   : > { %v1986_v4 = vadd.f32 1e-06, %v1985_v3 }
 0xb78   : > { %9816 = vrsqrt.f32 %v1986_v4 }
 0xb82   : > { %v9817_v5 = vpop.eup %9816 }
 0xb83   : > { %v1988_v8 = vmul.f32 %v9817_v5, %v1979_v47  ;;  %v8600_v5 = vld [vmem:[%s11484_s4 + $0x20] sm:$0xff] }
 0xb85   : > { %v1995_v10 = vmul.f32 %v8590_v7, %v1988_v8 }
 0xb87   : > { %9095 = vmatmul.mubr.msk.f32.vlgmr.msra.gmra.mrb[12].mxu0 %vm928_vm0, %v1995_v10 }
 0xb88   : > { %9124 = vmatprep.mubr.msk.f32.mxu0 %vm9989_vm1, %v9990_v9  ;;  %9636 = vmatpush3.bf16.msra.mxu0 %v9635_v28 }
 0xb89   : > { %9637 = vmatprep.subr.bf16.mxu0 %v9988_v6 }
 0xb8c   : > { %9639 = vmatpush3.bf16.msra.mxu0 %v9638_v31 }
 0xb8d   : > { %9127 = vmatprep.subr.mxu0 %v9990_v9 }
 0xc5a   : > { %v2077_v14 = vpop.f32.mrb[12].mxu0 }
 0xc5b   : > { %v2081_v15 = vmax.f32 %v2077_v14, 0.0  ;;  %v9096_v16 = vpop.f32.mrb[13].mxu0 }
 0xc5d   : > { %9114 = vmatmul.mubr.msk.f32.vlgmr.msra.gmra.mrb[14].mxu1 %vm2082_vm3, %v2081_v15 }
 0xc5e   : > { %9134 = vmatprep.mubr.msk.f32.mxu1 %vm9989_vm1, %v9990_v9 }
 0xd30   : > { %v2152_v17 = vpop.f32.mrb[14].mxu1 }
 0xd31   : > { %v10413_v19 = vadd.f32 %v2152_v17, %v1979_v47  ;;  %v9115_v20 = vpop.f32.mrb[15].mxu1 }
 0xd33   : > { %v2159_v21 = vmul.f32 %v10413_v19, %v10413_v19 }
 0xd35   : > { %v2160_v22 = vsel %vm928_vm0, %v2159_v21, 0.0 }
 0xd36   : > { %2161 = vadd.xlane.f32.xlu1 %v2160_v22 }
 0xdc3   : > { %v2162_v32 = vpop.xlane.xlu1 %2161 }
 0xdc4   : > { %v2163_v33 = vmul.f32 0.03125, %v2162_v32 }
 0xdc6   : > { %v2164_v34 = vadd.f32 1e-06, %v2163_v33 }
 0xdc8   : > { %9818 = vrsqrt.f32 %v2164_v34 }
 0xdd2   : > { %v9819_v35 = vpop.eup %9818 }
 0xdd3   : > { %v2166_v37 = vmul.f32 %v9819_v35, %v10413_v19 }
 0xdd5   : > { %v2173_v38 = vmul.f32 %v8594_v36, %v2166_v37 }
 0xdd7   : > { %9125 = vmatmul.mubr.msk.f32.vlgmr.msra.gmra.mrb[14].mxu0 %vm928_vm0, %v2173_v38  ;;  %v8602_v38 = vld [vmem:[%s11484_s4 + $0x30] sm:$0xff] }
 0xdd8   : > { %9129 = vmatprep.mubr.msk.f32.mxu0 %vm9989_vm1, %v9990_v9 }
 0xeaa   : > { %v10439_v39 = vpop.f32.mrb[14].mxu0 }
 0xeab   : > { %2423 = vrot.lane.b32.xlu0 %v10439_v39, %s11488_s30  ;;  %2258 = vrot.lane.b32.xlu1 %v10439_v39, %s11489_s27  ;;  %v9126_v40 = vpop.f32.mrb[15].mxu0 }
 0xeaf   : > { %2421 = vrot.lane.b32.xlu0 %v10439_v39, %s11490_s3 }
 0xf1d   : > { %v2259_v41 = vpop.permute.xlu1 %2258  ;;  %v2424_v18 = vpop.permute.xlu0 %2423 }
 0xf1e   : > { %9128 = vmatpush3.xpose.msk.msra.mxu0 %vm1028_vm2, %v2259_v41 }
 0xf1f   : > { %9137 = vmatprep.subr.mxu0 %v9990_v9 }
 0xf21   : > { %9130 = vmatmul.mubr.msk.f32.vlgmr.msra.gmra.mrb[16].mxu0 %vm1028_vm2, %v10439_v39  ;;  %v2422_v42 = vpop.permute.xlu0 %2421 }
 0xf22   : > { %9138 = vmatpush3.xpose.msk.msra.mxu0 %vm1028_vm2, %v2424_v18  ;;  %9139 = vmatprep.mubr.msk.f32.mxu0 %vm9989_vm1, %v9990_v9 }
 0xf23   : > { %9147 = vmatprep.subr.mxu0 %v9990_v9 }
 0xf25   : > { %9140 = vmatmul.mubr.msk.f32.vlgmr.msra.gmra.mrb[18].mxu0 %vm1028_vm2, %v2422_v42 }
 0xf26   : > { %9149 = vmatprep.mubr.msk.f32.mxu0 %vm9989_vm1, %v9990_v9  ;;  %9148 = vmatpush3.msra.mxu0 %v8601_v59 }
 0xf27   : > { %9157 = vmatprep.subr.mxu0 %v9990_v9 }
 0xff4   : > { %v2330_v43 = vpop.f32.mrb[16].mxu0 }
 0xff5   : > { %v2331_v44 = vadd.f32 %v2330_v43, %v10267_v23  ;;  %v9131_v45 = vpop.f32.mrb[17].mxu0 }
 0xff7   : > { %v2334_v46 = vsel %vm1028_vm2, %v2331_v44, -inf }
 0xff8   : > { %2335 = vmax.xlane.f32.xlu0 %v2334_v46  ;;  %v2495_v47 = vpop.f32.mrb[18].mxu0 }
 0xff9   : > { %v2496_v48 = vadd.f32 %v2495_v47, %v10270_v24  ;;  %v9141_v49 = vpop.f32.mrb[19].mxu0 }
 0xffb   : > { %v2499_v50 = vsel %vm1028_vm2, %v2496_v48, -inf }
 0xffc   : > { %2500 = vmax.xlane.f32.xlu1 %v2499_v50 }
0x100d   : > { %2345 = vrot.lane.b32.xlu1 %v10439_v39, %s11491_s2 }
0x1011   : > { %2734 = vrot.lane.b32.xlu1 %v10439_v39, %s11492_s9 }
0x1015   : > { %2732 = vrot.lane.b32.xlu1 %v10439_v39, %s11493_s11 }
0x1085   : > { %v2336_v23 = vpop.xlane.xlu0 %2335 }
0x1086   : > { %v2337_v51 = vsub.f32 %v2331_v44, %v2336_v23 }
0x1088   : > { %v2338_v52 = vmul.f32 1.442695, %v2337_v51 }
0x1089   : > { %v2501_v0 = vpop.xlane.xlu1 %2500 }
0x108a   : > { %9820 = vpow2.f32 %v2338_v52  ;;  %v2502_v53 = vsub.f32 %v2496_v48, %v2501_v0 }
0x108c   : > { %v2503_v24 = vmul.f32 1.442695, %v2502_v53 }
0x108d   : > { %v2346_v54 = vpop.permute.xlu1 %2345 }
0x108e   : > { %9822 = vpow2.f32 %v2503_v24  ;;  %9133 = vmatpush3.msra.mxu1 %v2346_v54 }
0x108f   : > { %9142 = vmatprep.subr.mxu1 %v9990_v9 }
0x1091   : > { %v2735_v10 = vpop.permute.xlu1 %2734 }
0x1094   : > { %v9821_v55 = vpop.eup %9820 }
0x1095   : > { %v2340_v56 = vsel %vm1028_vm2, %v9821_v55, 0.0  ;;  %v2733_v13 = vpop.permute.xlu1 %2732 }
0x1096   : > { %2341 = vadd.xlane.f32.xlu0 %v2340_v56 }
0x1098   : > { %v9823_v57 = vpop.eup %9822 }
0x1099   : > { %v2505_v58 = vsel %vm1028_vm2, %v9823_v57, 0.0 }
0x109a   : > { %2506 = vadd.xlane.f32.xlu0 %v2505_v58 }
0x10b0   : > { %2510 = vrot.lane.b32.xlu0 %v10439_v39, %s11494_s28 }
0x1123   : > { %v2342_v60 = vpop.xlane.xlu0 %2341 }
0x1124   : > { %9824 = vrcp.f32 %v2342_v60 }
0x1127   : > { %v2507_v61 = vpop.xlane.xlu0 %2506 }
0x1128   : > { %9826 = vrcp.f32 %v2507_v61  ;;  %v8622_v61 = vld [vmem:[%s11485_s6 + $0x20] sm:$0xff] }
0x112b   : > { %v2511_v2 = vpop.permute.xlu0 %2510 }
0x112e   : > { %v9825_v62 = vpop.eup %9824 }
0x112f   : > { %v2344_v63 = vmul.f32 %v9825_v62, %v9821_v55  ;;  %v8623_v62 = vld [vmem:[%s11485_s6 + $0x28] sm:$0xff] }
0x1131   : > { %9135 = vmatmul.mubr.msk.f32.vlgmr.msra.gmra.mrb[16].mxu1 %vm1028_vm2, %v2344_v63  ;;  %v9641_v63 = vpack.c.bf16 %v8623_v62, %v8622_v61 }
0x1132   : > { %v9827_v3 = vpop.eup %9826  ;;  %9143 = vmatpush3.msra.mxu1 %v2511_v2  ;;  %9144 = vmatprep.mubr.msk.f32.mxu1 %vm9989_vm1, %v9990_v9  ;;  %v8625_v2 = vld [vmem:[%s11485_s6 + $0x38] sm:$0xff] }
0x1133   : > { %v2509_v4 = vmul.f32 %v9827_v3, %v9823_v57  ;;  %9152 = vmatprep.subr.mxu1 %v9990_v9 }
0x1135   : > { %9145 = vmatmul.mubr.msk.f32.vlgmr.msra.gmra.mrb[18].mxu1 %vm1028_vm2, %v2509_v4  ;;  %v8626_v4 = vld [vmem:[%s11486_s1 + $0x40] sm:$0xff] }
0x1136   : > { %9154 = vmatprep.mubr.msk.f32.mxu1 %vm9989_vm1, %v9990_v9  ;;  %9153 = vmatpush3.msra.mxu1 %v8600_v5  ;;  %v8627_v5 = vld [vmem:[%s11486_s1 + $0x48] sm:$0xff] }
0x1137   : > { %9162 = vmatprep.subr.mxu1 %v9990_v9 }
0x1204   : > { %v2417_v7 = vpop.f32.mrb[16].mxu1 }
0x1205   : > { %v9136_v8 = vpop.f32.mrb[17].mxu1  ;;  %9155 = vmatmul.mubr.msk.f32.vlgmr.msra.gmra.mrb[20].mxu1 %vm1028_vm2, %v2417_v7  ;;  %v8628_v7 = vld [vmem:[%s11486_s1 + $0x50] sm:$0xff] }
0x1206   : > { %9164 = vmatprep.mubr.msk.f32.mxu1 %vm9989_vm1, %v9990_v9  ;;  %v9647_v8 = vpack.c.bf16 %v8627_v5, %v8626_v4  ;;  %v3592_v4 = vld [vmem:[%s11375_s15 + $0x18] sm:$0xff] }
0x1208   : > { %v2582_v11 = vpop.f32.mrb[18].mxu1 }
0x1209   : > { %v9146_v12 = vpop.f32.mrb[19].mxu1  ;;  %9150 = vmatmul.mubr.msk.f32.vlgmr.msra.gmra.mrb[20].mxu0 %vm1028_vm2, %v2582_v11 }
0x120a   : > { %9158 = vmatpush3.xpose.msk.msra.mxu0 %vm1028_vm2, %v2735_v10  ;;  %9159 = vmatprep.mubr.msk.f32.mxu0 %vm9989_vm1, %v9990_v9  ;;  %v8629_v10 = vld [vmem:[%s11486_s1 + $0x58] sm:$0xff]  ;;  %v8630_v12 = vld [vmem:[%s11486_s1 + $0x60] sm:$0xff] }
0x120b   : > { %9167 = vmatprep.subr.mxu0 %v9990_v9  ;;  %v9650_v11 = vpack.c.bf16 %v8629_v10, %v8628_v7 }
0x120d   : > { %9160 = vmatmul.mubr.msk.f32.vlgmr.msra.gmra.mrb[22].mxu0 %vm1028_vm2, %v2733_v13  ;;  %v8631_v13 = vld [vmem:[%s11486_s1 + $0x68] sm:$0xff] }
0x120e   : > { %9169 = vmatprep.mubr.msk.f32.mxu0 %vm9989_vm1, %v9990_v9  ;;  %9168 = vmatpush3.msra.mxu0 %v8602_v38 }
0x120f   : > { %9177 = vmatprep.subr.mxu0 %v9990_v9 }
0x12d8   : > { %v2728_v14 = vpop.f32.mrb[20].mxu1 }
0x12d9   : > { %v9156_v15 = vpop.f32.mrb[21].mxu1 }
0x12dc   : > { %v2655_v16 = vpop.f32.mrb[20].mxu0 }
0x12dd   : > { %v2729_v17 = vadd.f32 %v2728_v14, %v2655_v16  ;;  %v9151_v20 = vpop.f32.mrb[21].mxu0  ;;  %v9653_v14 = vpack.c.bf16 %v8631_v13, %v8630_v12  ;;  %v8639_v12 = vld [vmem:[%s11374_s14] ss:$0 sm:$0xff] }
0x12e0   : > { %v2806_v21 = vpop.f32.mrb[22].mxu0 }
0x12e1   : > { %v2807_v22 = vadd.f32 %v2806_v21, %v10314_v1  ;;  %v9161_v26 = vpop.f32.mrb[23].mxu0  ;;  %v8621_v21 = vld [vmem:[%s11487_s0 + $0x1] ss:$0 sm:$0xff]  ;;  %s11508_s0 = sld [smem:[#allocation32_spill]] }
0x12e3   : > { %v2810_v27 = vsel %vm1028_vm2, %v2807_v22, -inf }
0x12e4   : > { %2811 = vmax.xlane.f32.xlu0 %v2810_v27  ;;  %v8632_v27 = vld [vmem:[%s11486_s1 + $0x70] sm:$0xff] }
0x12fa   : > { %2821 = vrot.lane.b32.xlu0 %v10439_v39, %s11495_s7 }
0x12fe   : > { %2971 = vrot.lane.b32.xlu0 %v10439_v39, %s11496_s8 }
0x1371   : > { %v2812_v28 = vpop.xlane.xlu0 %2811 }
0x1372   : > { %v2813_v29 = vsub.f32 %v2807_v22, %v2812_v28  ;;  %v8633_v28 = vld [vmem:[%s11486_s1 + $0x78] sm:$0xff] }
0x1374   : > { %v2814_v30 = vmul.f32 1.442695, %v2813_v29  ;;  %v9656_v29 = vpack.c.bf16 %v8633_v28, %v8632_v27 }
0x1375   : > { %v2822_v31 = vpop.permute.xlu0 %2821 }
0x1376   : > { %9828 = vpow2.f32 %v2814_v30  ;;  %9163 = vmatpush3.msra.mxu1 %v2822_v31 }
0x1377   : > { %9172 = vmatprep.subr.mxu1 %v9990_v9 }
0x1379   : > { %v2972_v37 = vpop.permute.xlu0 %2971 }
0x1380   : > { %v9829_v32 = vpop.eup %9828 }
0x1381   : > { %v2816_v1 = vsel %vm1028_vm2, %v9829_v32, 0.0 }
0x1382   : > { %2817 = vadd.xlane.f32.xlu1 %v2816_v1 }
0x1393   : > { %2973 = vrot.lane.b32.xlu1 %v10439_v39, %s11497_s10 }
0x140f   : > { %v2818_v33 = vpop.xlane.xlu1 %2817 }
0x1410   : > { %9830 = vrcp.f32 %v2818_v33 }
0x1413   : > { %v2974_v36 = vpop.permute.xlu1 %2973 }
0x141a   : > { %v9831_v34 = vpop.eup %9830 }
0x141b   : > { %v2820_v35 = vmul.f32 %v9831_v34, %v9829_v32 }
0x141d   : > { %9165 = vmatmul.mubr.msk.f32.vlgmr.msra.gmra.mrb[22].mxu1 %vm1028_vm2, %v2820_v35 }
0x141e   : > { %9173 = vmatpush3.xpose.msk.msra.mxu1 %vm1028_vm2, %v2974_v36  ;;  %9174 = vmatprep.mubr.msk.f32.mxu1 %vm9989_vm1, %v9990_v9 }
0x141f   : > { %9182 = vmatprep.subr.mxu1 %v9990_v9 }
0x1421   : > { %9175 = vmatmul.mubr.msk.f32.vlgmr.msra.gmra.mrb[24].mxu1 %vm1028_vm2, %v2972_v37  ;;  %v3406_v37 = vld [vmem:[%s908_s29] sm:$0x1]  ;;  %s11515_s29 = sshll.u32 %s10199_s12, 3 }
0x1422   : > { %9184 = vmatprep.mubr.msk.f32.mxu1 %vm9989_vm1, %v9990_v9  ;;  %v3481_v38 = vsel %vm3480_vm4, %v3406_v37, 0.0 }
0x14f0   : > { %v2893_v40 = vpop.f32.mrb[22].mxu1 }
0x14f1   : > { %v9166_v41 = vpop.f32.mrb[23].mxu1  ;;  %9170 = vmatmul.mubr.msk.f32.vlgmr.msra.gmra.mrb[24].mxu0 %vm1028_vm2, %v2893_v40 }
0x14f2   : > { %9179 = vmatprep.mubr.msk.f32.mxu0 %vm9989_vm1, %v9990_v9 }
0x14f4   : > { %v3045_v18 = vpop.f32.mrb[24].mxu1 }
0x14f5   : > { %v3046_v42 = vadd.f32 %v3045_v18, %v10340_v25  ;;  %v9176_v43 = vpop.f32.mrb[25].mxu1 }
0x14f6   : > { %v8636_v43 = vld [vmem:[%s11500_s5] ss:$0 sm:$0xff]  ;;  %s11503_s5 = sshll.u32 %s10199_s12, 5 }
0x14f7   : > { %v3049_v44 = vsel %vm1028_vm2, %v3046_v42, -inf  ;;  %s10676_s25 = scalar_lea.vmem %s11504_s23, %s11503_s5  ;;  %s11509_s23 = sld [smem:[#allocation30_spill]] }
0x14f8   : > { %3050 = vmax.xlane.f32.xlu1 %v3049_v44  ;;  %v3487_v44 = vld [vmem:[%s11501_s22] sm:$0xff]  ;;  %s917_s5 = scalar_lea.vmem %s11516_s20, %s11515_s29 }
0x1585   : > { %v3051_v45 = vpop.xlane.xlu1 %3050 }
0x1586   : > { %v3052_v46 = vsub.f32 %v3046_v42, %v3051_v45  ;;  %v3488_v45 = vld [vmem:[%s11501_s22 + $0x8] sm:$0xff] }
0x1588   : > { %v3053_v47 = vmul.f32 1.442695, %v3052_v46 }
0x158a   : > { %9832 = vpow2.f32 %v3053_v47 }
0x1594   : > { %v9833_v48 = vpop.eup %9832 }
0x1595   : > { %v3055_v49 = vsel %vm1028_vm2, %v9833_v48, 0.0 }
0x1596   : > { %3056 = vadd.xlane.f32.xlu0 %v3055_v49  ;;  %v3489_v49 = vld [vmem:[%s11501_s22 + $0x10] sm:$0xff] }
0x15ac   : > { %3060 = vrot.lane.b32.xlu0 %v10439_v39, %s11498_s26  ;;  %v8603_v39 = vld [vmem:[%s11484_s4 + $0x38] sm:$0xff]  ;;  %s11505_s4 = sld [smem:[#allocation28_spill]] }
0x15ad   : > { %9183 = vmatpush3.msra.mxu1 %v8603_v39 }
0x15ae   : > { %9646 = vmatprep.subr.bf16.mxu1 %v9988_v6 }
0x15c4   : > { %v2966_v50 = vpop.f32.mrb[24].mxu0 }
0x15c5   : > { %v2970_v23 = vadd.f32 %v2966_v50, %v2729_v17  ;;  %v9171_v51 = vpop.f32.mrb[25].mxu0  ;;  %v3490_v50 = vld [vmem:[%s11501_s22 + $0x18] sm:$0xff]  ;;  %s11514_s22 = sld [smem:[#allocation9_spill]] }
0x1623   : > { %v3057_v52 = vpop.xlane.xlu0 %3056 }
0x1624   : > { %9834 = vrcp.f32 %v3057_v52 }
0x1627   : > { %v3061_v25 = vpop.permute.xlu0 %3060 }
0x1628   : > { %9178 = vmatpush3.msra.mxu0 %v3061_v25 }
0x1629   : > { %9640 = vmatprep.subr.bf16.mxu0 %v9988_v6 }
0x162e   : > { %v9835_v0 = vpop.eup %9834 }
0x162f   : > { %v3059_v53 = vmul.f32 %v9835_v0, %v9833_v48  ;;  %v9659_v48 = vpack.c.bf16 %v3488_v45, %v3487_v44  ;;  %v3667_v44 = vld [vmem:[%s11376_s16 + $0x8] sm:$0xff] }
0x1631   : > { %9180 = vmatmul.mubr.msk.f32.vlgmr.msra.gmra.mrb[26].mxu0 %vm1028_vm2, %v3059_v53 }
0x1632   : > { %9195 = vmatprep.mubr.msk.f32.mxu0 %vm9989_vm1, %v9990_v9  ;;  %9642 = vmatpush3.bf16.msra.mxu0 %v9641_v63  ;;  %v3589_v63 = vld [vmem:[%s11375_s15] sm:$0xff] }
0x1633   : > { %9643 = vmatprep.subr.bf16.mxu0 %v9988_v6 }
0x1704   : > { %v3132_v24 = vpop.f32.mrb[26].mxu0 }
0x1705   : > { %v9181_v54 = vpop.f32.mrb[27].mxu0  ;;  %9185 = vmatmul.mubr.msk.f32.vlgmr.msra.gmra.mrb[26].mxu1 %vm1028_vm2, %v3132_v24  ;;  %v3565_v24 = vlaneseq }
0x1706   : > { %9214 = vmatprep.mubr.msk.f32.mxu1 %vm9989_vm1, %v9990_v9  ;;  %9648 = vmatpush3.bf16.msra.mxu1 %v9647_v8 }
0x1707   : > { %9649 = vmatprep.subr.bf16.mxu1 %v9988_v6  ;;  %v3566_v54 = vshrl.u32 %v3565_v24, 7 }
0x170a   : > { %9651 = vmatpush3.bf16.msra.mxu1 %v9650_v11 }
0x170b   : > { %9652 = vmatprep.subr.bf16.mxu1 %v9988_v6 }
0x170e   : > { %9654 = vmatpush3.bf16.msra.mxu1 %v9653_v14 }
0x170f   : > { %9655 = vmatprep.subr.bf16.mxu1 %v9988_v6 }
0x1712   : > { %9657 = vmatpush3.bf16.msra.mxu1 %v9656_v29 }
0x1713   : > { %9664 = vmatprep.subr.bf16.mxu1 %v9988_v6 }
0x17d8   : > { %v3205_v55 = vpop.f32.mrb[26].mxu1 }
0x17d9   : > { %v3209_v56 = vadd.f32 %v3205_v55, %v2970_v23  ;;  %v9186_v57 = vpop.f32.mrb[27].mxu1  ;;  %v9662_v23 = vpack.c.bf16 %v3490_v50, %v3489_v49  ;;  %v3491_v55 = vld [vmem:[%s11502_s13] sm:$0x1] }
0x17db   : > { %v3210_v58 = vadd.f32 %v3209_v56, %v10413_v19  ;;  %v8624_v19 = vld [vmem:[%s11485_s6 + $0x30] sm:$0xff]  ;;  %v3567_v56 = vsub.s32 0, %v3566_v54 }
0x17dc   : > { %v9644_v3 = vpack.c.bf16 %v8625_v2, %v8624_v19  ;;  %v3590_v19 = vld [vmem:[%s11375_s15 + $0x8] sm:$0xff] }
0x17dd   : > { %v3213_v59 = vmul.f32 %v3210_v58, %v3210_v58  ;;  %v9665_v2 = vpack.c.bf16 %v3590_v19, %v3589_v63 }
0x17de   : > { %9645 = vmatpush3.bf16.msra.mxu0 %v9644_v3  ;;  %v3591_v3 = vld [vmem:[%s11375_s15 + $0x10] sm:$0xff] }
0x17df   : > { %v3214_v60 = vsel %vm928_vm0, %v3213_v59, 0.0  ;;  %9217 = vmatprep.subr.mxu0 %v9990_v9  ;;  %v9668_v5 = vpack.c.bf16 %v3592_v4, %v3591_v3 }
0x17e0   : > { %3215 = vadd.xlane.f32.xlu1 %v3214_v60 }
0x186d   : > { %v3216_v15 = vpop.xlane.xlu1 %3215 }
0x186e   : > { %v3217_v16 = vmul.f32 0.03125, %v3216_v15 }
0x1870   : > { %v3218_v17 = vadd.f32 1e-06, %v3217_v16 }
0x1872   : > { %9836 = vrsqrt.f32 %v3218_v17 }
0x187c   : > { %v9837_v20 = vpop.eup %9836 }
0x187d   : > { %v3220_v22 = vmul.f32 %v9837_v20, %v3210_v58 }
0x187f   : > { %v3227_v26 = vmul.f32 %v8621_v21, %v3220_v22  ;;  %v10679_v22 = vld [vmem:[%s10676_s25] sm:$0xff] }
0x1881   : > { %9196 = vmatmul.mubr.msk.f32.vlgmr.msra.gmra.mrb[28].mxu0 %vm928_vm0, %v3227_v26  ;;  %v10682_v26 = vld [vmem:[%s10676_s25 + $0x8] sm:$0xff] }
0x1882   : > { %9219 = vmatprep.mubr.msk.f32.mxu0 %vm9989_vm1, %v9990_v9 }
0x1954   : > { %v3311_v30 = vpop.f32.mrb[28].mxu0 }
0x1955   : > { %v3315_v31 = vmax.f32 %v3311_v30, 0.0  ;;  %v9197_v32 = vpop.f32.mrb[29].mxu0 }
0x1957   : > { %9215 = vmatmul.mubr.msk.f32.vlgmr.msra.gmra.mrb[28].mxu1 %vm2082_vm3, %v3315_v31 }
0x1958   : > { %9241 = vmatprep.mubr.msk.f32.mxu1 %vm9989_vm1, %v9990_v9  ;;  %9666 = vmatpush3.bf16.msra.mxu1 %v9665_v2 }
0x1959   : > { %9667 = vmatprep.subr.bf16.mxu1 %v9988_v6 }
0x195c   : > { %9669 = vmatpush3.bf16.msra.mxu1 %v9668_v5 }
0x195d   : > { %9254 = vmatprep.subr.mxu1 %v9990_v9 }
0x1a2a   : > { %v3385_v1 = vpop.f32.mrb[28].mxu1 }
0x1a2b   : > { %v3389_v33 = vadd.f32 %v3385_v1, %v3210_v58  ;;  %v9216_v34 = vpop.f32.mrb[29].mxu1 }
0x1a2d   : > { %v3391_v35 = vmul.f32 %v3389_v33, %v3389_v33 }
0x1a2f   : > { %v3392_v36 = vsel %vm928_vm0, %v3391_v35, 0.0 }
0x1a30   : > { %3393 = vadd.xlane.f32.xlu1 %v3392_v36 }
0x1a34   : > { %3482 = vadd.xlane.f32.xlu1 %v3481_v38 }
0x1abd   : > { %v3394_v40 = vpop.xlane.xlu1 %3393 }
0x1abe   : > { %v3395_v41 = vmul.f32 0.03125, %v3394_v40 }
0x1ac0   : > { %v3396_v18 = vadd.f32 1e-06, %v3395_v41 }
0x1ac1   : > { %v3483_v51 = vpop.xlane.xlu1 %3482 }
0x1ac2   : > { %9838 = vrsqrt.f32 %v3396_v18  ;;  %v3484_v52 = vmax.f32 %v3483_v51, 1e-09 }
0x1ac4   : > { %9840 = vrcp.f32 %v3484_v52  ;;  %v3666_v52 = vld [vmem:[%s11376_s16] sm:$0xff] }
0x1acc   : > { %v9839_v42 = vpop.eup %9838 }
0x1acd   : > { %v3398_v46 = vmul.f32 %v9839_v42, %v3389_v33 }
0x1ace   : > { %v9841_v25 = vpop.eup %9840 }
0x1acf   : > { %v3405_v47 = vmul.f32 %v8636_v43, %v3398_v46 }
0x1ad1   : > { %9218 = vmatpush3.msra.mxu0 %v3405_v47 }
0x1ad2   : > { %9220 = vmatmul.mubr.msk.f32.vlgmr.msra.gmra.mrb[30].mxu0 %vm1028_vm2, %v3406_v37  ;;  %9658 = vmatprep.subr.bf16.mxu0 %v9988_v6 }
0x1ad3   : > { %9660 = vmatpush3.bf16.msra.mxu0 %v9659_v48  ;;  %9230 = vmatprep.mubr.msk.f32.mxu0 %vm9989_vm1, %v9990_v9 }
0x1ad4   : > { %9661 = vmatprep.subr.bf16.mxu0 %v9988_v6 }
0x1ad7   : > { %9663 = vmatpush3.bf16.msra.mxu0 %v9662_v23 }
0x1ad8   : > { %9244 = vmatprep.subr.mxu0 %v9990_v9 }
0x1ba5   : > { %v3476_v0 = vpop.f32.mrb[30].mxu0 }
0x1ba6   : > { %v3486_v53 = vmul.f32 %v9841_v25, %v3476_v0  ;;  %v9221_v39 = vpop.f32.mrb[31].mxu0 }
0x1ba8   : > { %9231 = vmatmul.mubr.msk.f32.vlgmr.msra.gmra.mrb[32].mxu0 %vm928_vm0, %v3486_v53 }
0x1ba9   : > { %9246 = vmatprep.mubr.msk.f32.mxu0 %vm9989_vm1, %v9990_v9 }
0x1c7b   : > { %v3561_v57 = vpop.f32.mrb[32].mxu0 }
0x1c7c   : > { %v3562_v58 = vadd.f32 %v3561_v57, %v3491_v55  ;;  %v9232_v59 = vpop.f32.mrb[33].mxu0 }
0x1c7e   : > { %v10626_v60 = vrot.slane %v3562_v58, %v3567_v56 }
0x1c80   : > { %v3574_v61 = vmul.f32 %v10626_v60, %v10626_v60 }
0x1c82   : > { %v3575_v62 = vsel %vm928_vm0, %v3574_v61, 0.0 }
0x1c83   : > { %3576 = vadd.xlane.f32.xlu1 %v3575_v62  ;;  %v10726_v62 = vld [vmem:[%s10676_s25 + $0x10] sm:$0xff] }
0x1d10   : > { %v3577_v7 = vpop.xlane.xlu1 %3576 }
0x1d11   : > { %v3578_v8 = vmul.f32 0.03125, %v3577_v7 }
0x1d13   : > { %v3579_v10 = vadd.f32 1e-06, %v3578_v8 }
0x1d15   : > { %9842 = vrsqrt.f32 %v3579_v10 }
0x1d1f   : > { %v9843_v11 = vpop.eup %9842 }
0x1d20   : > { %v3581_v13 = vmul.f32 %v9843_v11, %v10626_v60 }
0x1d22   : > { %v3588_v14 = vmul.f32 %v8639_v12, %v3581_v13 }
0x1d24   : > { %9242 = vmatmul.mubr.msk.f32.vlgmr.msra.gmra.mrb[30].mxu1 %vm928_vm0, %v3588_v14 }
0x1d25   : > { %9256 = vmatprep.mubr.msk.f32.mxu1 %vm9989_vm1, %v9990_v9 }
0x1df7   : > { %v10652_v15 = vpop.f32.mrb[30].mxu1 }
0x1df8   : > { %3836 = vrot.lane.b32.xlu0 %v10652_v15, %s11488_s30  ;;  %3671 = vrot.lane.b32.xlu1 %v10652_v15, %s11489_s27  ;;  %v9243_v16 = vpop.f32.mrb[31].mxu1 }
0x1dfc   : > { %3834 = vrot.lane.b32.xlu0 %v10652_v15, %s11490_s3 }
0x1e6a   : > { %v3837_v17 = vpop.permute.xlu0 %3836  ;;  %v3672_v20 = vpop.permute.xlu1 %3671 }
0x1e6b   : > { %9245 = vmatpush3.xpose.msk.msra.mxu0 %vm1028_vm2, %v3672_v20  ;;  %9255 = vmatpush3.xpose.msk.msra.mxu1 %vm1028_vm2, %v3837_v17  ;;  %v3668_v20 = vld [vmem:[%s11376_s16 + $0x10] sm:$0xff] }
0x1e6c   : > { %9249 = vmatprep.subr.mxu0 %v9990_v9  ;;  %9264 = vmatprep.subr.mxu1 %v9990_v9 }
0x1e6e   : > { %v3835_v21 = vpop.permute.xlu0 %3834  ;;  %9247 = vmatmul.mubr.msk.f32.vlgmr.msra.gmra.mrb[34].mxu0 %vm1028_vm2, %v10652_v15 }
0x1e6f   : > { %9257 = vmatmul.mubr.msk.f32.vlgmr.msra.gmra.mrb[32].mxu1 %vm1028_vm2, %v3835_v21  ;;  %9251 = vmatprep.mubr.msk.f32.mxu0 %vm9989_vm1, %v9990_v9 }
0x1e70   : > { %9266 = vmatprep.mubr.msk.f32.mxu1 %vm9989_vm1, %v9990_v9  ;;  %9265 = vmatpush3.msra.mxu1 %v3667_v44  ;;  %v4717_v44 = vld [vmem:[%s11379_s19] sm:$0xff] }
0x1e71   : > { %9274 = vmatprep.subr.mxu1 %v9990_v9 }
0x1f41   : > { %v3743_v27 = vpop.f32.mrb[34].mxu0 }
0x1f42   : > { %v3744_v28 = vadd.f32 %v3743_v27, %v10679_v22  ;;  %v9248_v29 = vpop.f32.mrb[35].mxu0  ;;  %v3908_v30 = vpop.f32.mrb[32].mxu1 }
0x1f43   : > { %v3909_v31 = vadd.f32 %v3908_v30, %v10682_v26  ;;  %v9258_v32 = vpop.f32.mrb[33].mxu1 }
0x1f44   : > { %v3747_v1 = vsel %vm1028_vm2, %v3744_v28, -inf }
0x1f45   : > { %3748 = vmax.xlane.f32.xlu0 %v3747_v1  ;;  %v3912_v33 = vsel %vm1028_vm2, %v3909_v31, -inf }
0x1f46   : > { %3913 = vmax.xlane.f32.xlu1 %v3912_v33 }
0x1f57   : > { %3923 = vrot.lane.b32.xlu1 %v10652_v15, %s11494_s28 }
0x1f5b   : > { %4147 = vrot.lane.b32.xlu1 %v10652_v15, %s11492_s9 }
0x1fd2   : > { %v3749_v34 = vpop.xlane.xlu0 %3748 }
0x1fd3   : > { %v3750_v35 = vsub.f32 %v3744_v28, %v3749_v34  ;;  %v3914_v36 = vpop.xlane.xlu1 %3913  ;;  %v10752_v28 = vld [vmem:[%s10676_s25 + $0x18] sm:$0xff]  ;;  %s11506_s25 = sld [smem:[#allocation29_spill]] }
0x1fd4   : > { %v3915_v37 = vsub.f32 %v3909_v31, %v3914_v36 }
0x1fd5   : > { %v3751_v38 = vmul.f32 1.442695, %v3750_v35 }
0x1fd6   : > { %v3916_v40 = vmul.f32 1.442695, %v3915_v37 }
0x1fd7   : > { %9844 = vpow2.f32 %v3751_v38  ;;  %v3924_v50 = vpop.permute.xlu1 %3923  ;;  %v3669_v38 = vld [vmem:[%s11376_s16 + $0x18] sm:$0xff] }
0x1fd8   : > { %9846 = vpow2.f32 %v3916_v40 }
0x1fdb   : > { %v4148_v39 = vpop.permute.xlu1 %4147 }
0x1fe1   : > { %v9845_v41 = vpop.eup %9844 }
0x1fe2   : > { %v3753_v18 = vsel %vm1028_vm2, %v9845_v41, 0.0  ;;  %v9847_v42 = vpop.eup %9846 }
0x1fe3   : > { %3754 = vadd.xlane.f32.xlu0 %v3753_v18  ;;  %v3918_v43 = vsel %vm1028_vm2, %v9847_v42, 0.0 }
0x1fe7   : > { %3919 = vadd.xlane.f32.xlu0 %v3918_v43 }
0x1ffd   : > { %3758 = vrot.lane.b32.xlu0 %v10652_v15, %s11491_s2 }
0x2001   : > { %4145 = vrot.lane.b32.xlu0 %v10652_v15, %s11493_s11 }
0x2070   : > { %v3755_v45 = vpop.xlane.xlu0 %3754 }
0x2071   : > { %9848 = vrcp.f32 %v3755_v45  ;;  %v4718_v45 = vld [vmem:[%s11379_s19 + $0x8] sm:$0xff] }
0x2074   : > { %v3920_v46 = vpop.xlane.xlu0 %3919 }
0x2075   : > { %9850 = vrcp.f32 %v3920_v46  ;;  %v9677_v46 = vpack.c.bf16 %v4718_v45, %v4717_v44 }
0x2078   : > { %v3759_v47 = vpop.permute.xlu0 %3758 }
0x2079   : > { %9250 = vmatpush3.msra.mxu0 %v3759_v47  ;;  %v4719_v47 = vld [vmem:[%s11379_s19 + $0x10] sm:$0xff] }
0x207a   : > { %9259 = vmatprep.subr.mxu0 %v9990_v9 }
0x207b   : > { %v9849_v48 = vpop.eup %9848 }
0x207c   : > { %v3757_v49 = vmul.f32 %v9849_v48, %v9845_v41  ;;  %v4146_v55 = vpop.permute.xlu0 %4145  ;;  %v4720_v48 = vld [vmem:[%s11379_s19 + $0x18] sm:$0xff] }
0x207e   : > { %9252 = vmatmul.mubr.msk.f32.vlgmr.msra.gmra.mrb[36].mxu0 %vm1028_vm2, %v3757_v49 }
0x207f   : > { %v9851_v23 = vpop.eup %9850  ;;  %9260 = vmatpush3.msra.mxu0 %v3924_v50  ;;  %9261 = vmatprep.mubr.msk.f32.mxu0 %vm9989_vm1, %v9990_v9 }
0x2080   : > { %v3922_v51 = vmul.f32 %v9851_v23, %v9847_v42  ;;  %9269 = vmatprep.subr.mxu0 %v9990_v9  ;;  %v9680_v23 = vpack.c.bf16 %v4720_v48, %v4719_v47 }
0x2082   : > { %9262 = vmatmul.mubr.msk.f32.vlgmr.msra.gmra.mrb[38].mxu0 %vm1028_vm2, %v3922_v51 }
0x2083   : > { %9271 = vmatprep.mubr.msk.f32.mxu0 %vm9989_vm1, %v9990_v9  ;;  %9270 = vmatpush3.msra.mxu0 %v3666_v52 }
0x2084   : > { %9279 = vmatprep.subr.mxu0 %v9990_v9 }
0x2151   : > { %v3830_v25 = vpop.f32.mrb[36].mxu0 }
0x2152   : > { %v9253_v0 = vpop.f32.mrb[37].mxu0  ;;  %9272 = vmatmul.mubr.msk.f32.vlgmr.msra.gmra.mrb[40].mxu0 %vm1028_vm2, %v3830_v25 }
0x2153   : > { %9281 = vmatprep.mubr.msk.f32.mxu0 %vm9989_vm1, %v9990_v9 }
0x2155   : > { %v3995_v53 = vpop.f32.mrb[38].mxu0 }
0x2156   : > { %v9263_v54 = vpop.f32.mrb[39].mxu0  ;;  %9267 = vmatmul.mubr.msk.f32.vlgmr.msra.gmra.mrb[34].mxu1 %vm1028_vm2, %v3995_v53 }
0x2157   : > { %9275 = vmatpush3.xpose.msk.msra.mxu1 %vm1028_vm2, %v4148_v39  ;;  %9276 = vmatprep.mubr.msk.f32.mxu1 %vm9989_vm1, %v9990_v9 }
0x2158   : > { %9284 = vmatprep.subr.mxu1 %v9990_v9 }
0x215a   : > { %9277 = vmatmul.mubr.msk.f32.vlgmr.msra.gmra.mrb[36].mxu1 %vm1028_vm2, %v4146_v55 }
0x215b   : > { %9286 = vmatprep.mubr.msk.f32.mxu1 %vm9989_vm1, %v9990_v9  ;;  %9285 = vmatpush3.msra.mxu1 %v3668_v20 }
0x215c   : > { %9294 = vmatprep.subr.mxu1 %v9990_v9 }
0x2225   : > { %v4141_v56 = vpop.f32.mrb[40].mxu0 }
0x2226   : > { %v9273_v57 = vpop.f32.mrb[41].mxu0 }
0x2227   : > { %v4641_v57 = vld [vmem:[%s11378_s18 + $0x8] sm:$0xff] }
0x2229   : > { %v4068_v58 = vpop.f32.mrb[34].mxu1 }
0x222a   : > { %v4142_v59 = vadd.f32 %v4141_v56, %v4068_v58  ;;  %v9268_v61 = vpop.f32.mrb[35].mxu1  ;;  %v4640_v56 = vld [vmem:[%s11378_s18] sm:$0xff] }
0x222b   : > { %v9671_v58 = vpack.c.bf16 %v4641_v57, %v4640_v56  ;;  %v4643_v61 = vld [vmem:[%s11378_s18 + $0x18] sm:$0xff] }
0x222d   : > { %v4219_v63 = vpop.f32.mrb[36].mxu1 }
0x222e   : > { %v4220_v19 = vadd.f32 %v4219_v63, %v10726_v62  ;;  %v9278_v2 = vpop.f32.mrb[37].mxu1 }
0x2230   : > { %v4223_v3 = vsel %vm1028_vm2, %v4220_v19, -inf }
0x2231   : > { %4224 = vmax.xlane.f32.xlu1 %v4223_v3 }
0x2242   : > { %4386 = vrot.lane.b32.xlu1 %v10652_v15, %s11497_s10 }
0x2246   : > { %4384 = vrot.lane.b32.xlu1 %v10652_v15, %s11496_s8 }
0x22be   : > { %v4225_v4 = vpop.xlane.xlu1 %4224 }
0x22bf   : > { %v4226_v5 = vsub.f32 %v4220_v19, %v4225_v4 }
0x22c1   : > { %v4227_v7 = vmul.f32 1.442695, %v4226_v5  ;;  %v8657_v5 = vld [vmem:[%s11505_s4] ss:$0 sm:$0xff] }
0x22c2   : > { %v4387_v14 = vpop.permute.xlu1 %4386 }
0x22c3   : > { %9852 = vpow2.f32 %v4227_v7 }
0x22c6   : > { %v4385_v17 = vpop.permute.xlu1 %4384 }
0x22cd   : > { %v9853_v8 = vpop.eup %9852 }
0x22ce   : > { %v4229_v10 = vsel %vm1028_vm2, %v9853_v8, 0.0 }
0x22cf   : > { %4230 = vadd.xlane.f32.xlu0 %v4229_v10 }
0x22e5   : > { %4234 = vrot.lane.b32.xlu0 %v10652_v15, %s11495_s7 }
0x235c   : > { %v4231_v11 = vpop.xlane.xlu0 %4230 }
0x235d   : > { %9854 = vrcp.f32 %v4231_v11 }
0x2360   : > { %v4235_v12 = vpop.permute.xlu0 %4234 }
0x2361   : > { %9280 = vmatpush3.msra.mxu0 %v4235_v12 }
0x2362   : > { %9289 = vmatprep.subr.mxu0 %v9990_v9 }
0x2367   : > { %v9855_v13 = vpop.eup %9854 }
0x2368   : > { %v4233_v16 = vmul.f32 %v9855_v13, %v9853_v8 }
0x236a   : > { %9282 = vmatmul.mubr.msk.f32.vlgmr.msra.gmra.mrb[42].mxu0 %vm1028_vm2, %v4233_v16 }
0x236b   : > { %9290 = vmatpush3.xpose.msk.msra.mxu0 %vm1028_vm2, %v4387_v14  ;;  %9291 = vmatprep.mubr.msk.f32.mxu0 %vm9989_vm1, %v9990_v9 }
0x236c   : > { %9299 = vmatprep.subr.mxu0 %v9990_v9 }
0x236e   : > { %9292 = vmatmul.mubr.msk.f32.vlgmr.msra.gmra.mrb[44].mxu0 %vm1028_vm2, %v4385_v17 }
0x236f   : > { %9301 = vmatprep.mubr.msk.f32.mxu0 %vm9989_vm1, %v9990_v9  ;;  %9300 = vmatpush3.msra.mxu0 %v3669_v38 }
0x2370   : > { %9676 = vmatprep.subr.bf16.mxu0 %v9988_v6 }
0x243d   : > { %v4306_v21 = vpop.f32.mrb[42].mxu0 }
0x243e   : > { %v9283_v27 = vpop.f32.mrb[43].mxu0  ;;  %9287 = vmatmul.mubr.msk.f32.vlgmr.msra.gmra.mrb[38].mxu1 %vm1028_vm2, %v4306_v21 }
0x243f   : > { %9296 = vmatprep.mubr.msk.f32.mxu1 %vm9989_vm1, %v9990_v9 }
0x2441   : > { %v4458_v29 = vpop.f32.mrb[44].mxu0 }
0x2442   : > { %v4459_v30 = vadd.f32 %v4458_v29, %v10752_v28  ;;  %v9293_v31 = vpop.f32.mrb[45].mxu0 }
0x2444   : > { %v4462_v32 = vsel %vm1028_vm2, %v4459_v30, -inf }
0x2445   : > { %4463 = vmax.xlane.f32.xlu0 %v4462_v32 }
0x245b   : > { %4473 = vrot.lane.b32.xlu0 %v10652_v15, %s11498_s26 }
0x24d2   : > { %v4464_v1 = vpop.xlane.xlu0 %4463 }
0x24d3   : > { %v4465_v33 = vsub.f32 %v4459_v30, %v4464_v1 }
0x24d5   : > { %v4466_v34 = vmul.f32 1.442695, %v4465_v33 }
0x24d6   : > { %v4474_v35 = vpop.permute.xlu0 %4473 }
0x24d7   : > { %9856 = vpow2.f32 %v4466_v34  ;;  %9295 = vmatpush3.msra.mxu1 %v4474_v35 }
0x24d8   : > { %9670 = vmatprep.subr.bf16.mxu1 %v9988_v6 }
0x24e1   : > { %v9857_v36 = vpop.eup %9856 }
0x24e2   : > { %v4468_v37 = vsel %vm1028_vm2, %v9857_v36, 0.0 }
0x24e3   : > { %4469 = vadd.xlane.f32.xlu1 %v4468_v37 }
0x2511   : > { %v4379_v15 = vpop.f32.mrb[38].mxu1 }
0x2512   : > { %v4383_v40 = vadd.f32 %v4379_v15, %v4142_v59  ;;  %v9288_v41 = vpop.f32.mrb[39].mxu1  ;;  %v4642_v59 = vld [vmem:[%s11378_s18 + $0x10] sm:$0xff] }
0x2513   : > { %v9674_v63 = vpack.c.bf16 %v4643_v61, %v4642_v59 }
0x2570   : > { %v4470_v18 = vpop.xlane.xlu1 %4469 }
0x2571   : > { %9858 = vrcp.f32 %v4470_v18  ;;  %v4795_v18 = vld [vmem:[%s11506_s25 + $0x8] sm:$0xff] }
0x257b   : > { %v9859_v42 = vpop.eup %9858 }
0x257c   : > { %v4472_v43 = vmul.f32 %v9859_v42, %v9857_v36 }
0x257e   : > { %9297 = vmatmul.mubr.msk.f32.vlgmr.msra.gmra.mrb[40].mxu1 %vm1028_vm2, %v4472_v43 }
0x257f   : > { %9312 = vmatprep.mubr.msk.f32.mxu1 %vm9989_vm1, %v9990_v9  ;;  %9672 = vmatpush3.bf16.msra.mxu1 %v9671_v58 }
0x2580   : > { %9673 = vmatprep.subr.bf16.mxu1 %v9988_v6 }
0x2583   : > { %9675 = vmatpush3.bf16.msra.mxu1 %v9674_v63 }
0x2584   : > { %9326 = vmatprep.subr.mxu1 %v9990_v9 }
0x2651   : > { %v4545_v49 = vpop.f32.mrb[40].mxu1 }
0x2652   : > { %v9298_v50 = vpop.f32.mrb[41].mxu1  ;;  %9302 = vmatmul.mubr.msk.f32.vlgmr.msra.gmra.mrb[46].mxu0 %vm1028_vm2, %v4545_v49 }
0x2653   : > { %9678 = vmatpush3.bf16.msra.mxu0 %v9677_v46  ;;  %9323 = vmatprep.mubr.msk.f32.mxu0 %vm9989_vm1, %v9990_v9  ;;  %v4794_v46 = vld [vmem:[%s11506_s25] sm:$0xff] }
0x2654   : > { %9679 = vmatprep.subr.bf16.mxu0 %v9988_v6 }
0x2657   : > { %9681 = vmatpush3.bf16.msra.mxu0 %v9680_v23 }
0x2658   : > { %9331 = vmatprep.subr.mxu0 %v9990_v9 }
0x265a   : > { %9324 = vmatmul.mubr.msk.f32.vlgmr.msra.gmra.mrb[48].mxu0 %vm928_vm0, %v10626_v60 }
0x265b   : > { %9333 = vmatprep.mubr.msk.f32.mxu0 %vm9989_vm1, %v9990_v9 }
0x2725   : > { %v4618_v51 = vpop.f32.mrb[46].mxu0 }
0x2726   : > { %v4622_v52 = vadd.f32 %v4618_v51, %v4383_v40  ;;  %v9303_v25 = vpop.f32.mrb[47].mxu0 }
0x2728   : > { %v10791_v0 = vadd.f32 %v4622_v52, %v10626_v60 }
0x272a   : > { %v4625_v53 = vmul.f32 %v10791_v0, %v10791_v0 }
0x272c   : > { %v4626_v39 = vsel %vm928_vm0, %v4625_v53, 0.0 }
0x272d   : > { %v10796_v54 = vpop.f32.mrb[48].mxu0  ;;  %4627 = vadd.xlane.f32.xlu1 %v4626_v39 }
0x272e   : > { %v9325_v55 = vpop.f32.mrb[49].mxu0 }
0x273e   : > { %4963 = vrot.lane.b32.xlu1 %v10796_v54, %s11490_s3 }
0x27ba   : > { %v4628_v19 = vpop.xlane.xlu1 %4627 }
0x27bb   : > { %v4629_v2 = vmul.f32 0.03125, %v4628_v19 }
0x27bd   : > { %v4630_v3 = vadd.f32 1e-06, %v4629_v2 }
0x27be   : > { %v4964_v11 = vpop.permute.xlu1 %4963 }
0x27bf   : > { %9860 = vrsqrt.f32 %v4630_v3 }
0x27c9   : > { %v9861_v4 = vpop.eup %9860 }
0x27ca   : > { %v4632_v7 = vmul.f32 %v9861_v4, %v10791_v0 }
0x27cc   : > { %v4639_v8 = vmul.f32 %v8657_v5, %v4632_v7 }
0x27ce   : > { %9313 = vmatmul.mubr.msk.f32.vlgmr.msra.gmra.mrb[42].mxu1 %vm928_vm0, %v4639_v8 }
0x27cf   : > { %9327 = vmatpush3.xpose.msk.msra.mxu1 %vm1028_vm2, %v10796_v54  ;;  %9328 = vmatprep.mubr.msk.f32.mxu1 %vm9989_vm1, %v9990_v9 }
0x27d0   : > { %9336 = vmatprep.subr.mxu1 %v9990_v9 }
0x28a1   : > { %v10824_v10 = vpop.f32.mrb[42].mxu1 }
0x28a2   : > { %4961 = vrot.lane.b32.xlu0 %v10824_v10, %s11490_s3  ;;  %v9314_v12 = vpop.f32.mrb[43].mxu1  ;;  %9329 = vmatmul.mubr.msk.f32.vlgmr.msra.gmra.mrb[44].mxu1 %vm1028_vm2, %v10824_v10 }
0x28a3   : > { %9337 = vmatpush3.xpose.msk.msra.mxu1 %vm1028_vm2, %v4964_v11  ;;  %9338 = vmatprep.mubr.msk.f32.mxu1 %vm9989_vm1, %v9990_v9  ;;  %v4796_v11 = vld [vmem:[%s11506_s25 + $0x10] sm:$0xff] }
0x28a4   : > { %9346 = vmatprep.subr.mxu1 %v9990_v9 }
0x2914   : > { %v4962_v13 = vpop.permute.xlu0 %4961 }
0x2915   : > { %9339 = vmatmul.mubr.msk.f32.vlgmr.msra.gmra.mrb[46].mxu1 %vm1028_vm2, %v4962_v13 }
0x2916   : > { %9348 = vmatprep.mubr.msk.f32.mxu1 %vm9989_vm1, %v9990_v9  ;;  %9347 = vmatpush3.msra.mxu1 %v4795_v18 }
0x2917   : > { %9356 = vmatprep.subr.mxu1 %v9990_v9 }
0x2975   : > { %v4870_v14 = vpop.f32.mrb[44].mxu1 }
0x2976   : > { %v9330_v16 = vpop.f32.mrb[45].mxu1  ;;  %v4874_v17 = vsel %vm1028_vm2, %v4870_v14, -inf }
0x2977   : > { %4875 = vmax.xlane.f32.xlu0 %v4874_v17 }
0x29e8   : > { %v5035_v20 = vpop.f32.mrb[46].mxu1 }
0x29e9   : > { %v9340_v21 = vpop.f32.mrb[47].mxu1  ;;  %v5039_v27 = vsel %vm1028_vm2, %v5035_v20, -inf }
0x29ea   : > { %5040 = vmax.xlane.f32.xlu1 %v5039_v27 }
0x29fb   : > { %4885 = vrot.lane.b32.xlu1 %v10796_v54, %s11489_s27 }
0x29ff   : > { %5274 = vrot.lane.b32.xlu1 %v10796_v54, %s11493_s11 }
0x2a03   : > { %5272 = vrot.lane.b32.xlu1 %v10824_v10, %s11493_s11 }
0x2a04   : > { %v4876_v29 = vpop.xlane.xlu0 %4875 }
0x2a05   : > { %v4877_v30 = vsub.f32 %v4870_v14, %v4876_v29 }
0x2a07   : > { %v4878_v31 = vmul.f32 1.442695, %v4877_v30 }
0x2a09   : > { %9862 = vpow2.f32 %v4878_v31 }
0x2a13   : > { %v9863_v32 = vpop.eup %9862 }
0x2a14   : > { %v4880_v1 = vsel %vm1028_vm2, %v9863_v32, 0.0 }
0x2a15   : > { %4881 = vadd.xlane.f32.xlu0 %v4880_v1 }
0x2a77   : > { %v5041_v33 = vpop.xlane.xlu1 %5040 }
0x2a78   : > { %v5042_v34 = vsub.f32 %v5035_v20, %v5041_v33 }
0x2a7a   : > { %v5043_v35 = vmul.f32 1.442695, %v5042_v34 }
0x2a7b   : > { %v4886_v36 = vpop.permute.xlu1 %4885 }
0x2a7c   : > { %9864 = vpow2.f32 %v5043_v35  ;;  %9332 = vmatpush3.msra.mxu0 %v4886_v36 }
0x2a7d   : > { %9341 = vmatprep.subr.mxu0 %v9990_v9 }
0x2a7f   : > { %v5275_v49 = vpop.permute.xlu1 %5274 }
0x2a83   : > { %v5273_v51 = vpop.permute.xlu1 %5272 }
0x2a86   : > { %v9865_v37 = vpop.eup %9864 }
0x2a87   : > { %v5045_v38 = vsel %vm1028_vm2, %v9865_v37, 0.0 }
0x2a88   : > { %5046 = vadd.xlane.f32.xlu0 %v5045_v38 }
0x2a9e   : > { %5050 = vrot.lane.b32.xlu0 %v10796_v54, %s11488_s30 }
0x2aa2   : > { %v4882_v15 = vpop.xlane.xlu0 %4881 }
0x2aa3   : > { %9866 = vrcp.f32 %v4882_v15 }
0x2aad   : > { %v9867_v40 = vpop.eup %9866 }
0x2aae   : > { %v4884_v41 = vmul.f32 %v9867_v40, %v9863_v32 }
0x2ab0   : > { %9334 = vmatmul.mubr.msk.f32.vlgmr.msra.gmra.mrb[50].mxu0 %vm1028_vm2, %v4884_v41 }
0x2ab1   : > { %9343 = vmatprep.mubr.msk.f32.mxu0 %vm9989_vm1, %v9990_v9 }
0x2b15   : > { %v5047_v42 = vpop.xlane.xlu0 %5046 }
0x2b16   : > { %9868 = vrcp.f32 %v5047_v42 }
0x2b19   : > { %v5051_v43 = vpop.permute.xlu0 %5050 }
0x2b1a   : > { %9342 = vmatpush3.msra.mxu0 %v5051_v43 }
0x2b1b   : > { %9351 = vmatprep.subr.mxu0 %v9990_v9 }
0x2b20   : > { %v9869_v44 = vpop.eup %9868 }
0x2b21   : > { %v5049_v45 = vmul.f32 %v9869_v44, %v9865_v37  ;;  %v5767_v44 = vld [vmem:[%s11507_s24] sm:$0xff] }
0x2b23   : > { %9344 = vmatmul.mubr.msk.f32.vlgmr.msra.gmra.mrb[52].mxu0 %vm1028_vm2, %v5049_v45  ;;  %v5768_v45 = vld [vmem:[%s11507_s24 + $0x8] sm:$0xff] }
0x2b24   : > { %9352 = vmatpush3.msra.mxu0 %v4794_v46  ;;  %9353 = vmatprep.mubr.msk.f32.mxu0 %vm9989_vm1, %v9990_v9  ;;  %v9683_v46 = vpack.c.bf16 %v5768_v45, %v5767_v44 }
0x2b25   : > { %9361 = vmatprep.subr.mxu0 %v9990_v9 }
0x2b83   : > { %v4957_v47 = vpop.f32.mrb[50].mxu0 }
0x2b84   : > { %v9335_v48 = vpop.f32.mrb[51].mxu0  ;;  %9354 = vmatmul.mubr.msk.f32.vlgmr.msra.gmra.mrb[54].mxu0 %vm1028_vm2, %v4957_v47  ;;  %v5770_v47 = vld [vmem:[%s11507_s24 + $0x18] sm:$0xff] }
0x2b85   : > { %9363 = vmatprep.mubr.msk.f32.mxu0 %vm9989_vm1, %v9990_v9 }
0x2bf6   : > { %v5122_v50 = vpop.f32.mrb[52].mxu0 }
0x2bf7   : > { %v9345_v23 = vpop.f32.mrb[53].mxu0  ;;  %9349 = vmatmul.mubr.msk.f32.vlgmr.msra.gmra.mrb[48].mxu1 %vm1028_vm2, %v5122_v50  ;;  %v5772_v50 = vld [vmem:[%s11508_s0 + $0x8] sm:$0xff] }
0x2bf8   : > { %9357 = vmatpush3.xpose.msk.msra.mxu1 %vm1028_vm2, %v5275_v49  ;;  %9358 = vmatprep.mubr.msk.f32.mxu1 %vm9989_vm1, %v9990_v9  ;;  %v5771_v49 = vld [vmem:[%s11508_s0] sm:$0xff]  ;;  %v5773_v23 = vld [vmem:[%s11508_s0 + $0x10] sm:$0xff] }
0x2bf9   : > { %9366 = vmatprep.subr.mxu1 %v9990_v9 }
0x2bfb   : > { %9359 = vmatmul.mubr.msk.f32.vlgmr.msra.gmra.mrb[50].mxu1 %vm1028_vm2, %v5273_v51  ;;  %v9689_v51 = vpack.c.bf16 %v5772_v50, %v5771_v49 }
0x2bfc   : > { %9368 = vmatprep.mubr.msk.f32.mxu1 %vm9989_vm1, %v9990_v9  ;;  %9367 = vmatpush3.msra.mxu1 %v4796_v11 }
0x2bfd   : > { %9376 = vmatprep.subr.mxu1 %v9990_v9 }
0x2c57   : > { %v5268_v52 = vpop.f32.mrb[54].mxu0 }
0x2c58   : > { %v9355_v25 = vpop.f32.mrb[55].mxu0 }
0x2cca   : > { %v5195_v53 = vpop.f32.mrb[48].mxu1 }
0x2ccb   : > { %v5269_v39 = vadd.f32 %v5268_v52, %v5195_v53  ;;  %v9350_v55 = vpop.f32.mrb[49].mxu1  ;;  %v5774_v52 = vld [vmem:[%s11508_s0 + $0x18] sm:$0xff]  ;;  %v5775_v53 = vld [vmem:[%s11508_s0 + $0x20] sm:$0xff] }
0x2ccc   : > { %v9692_v25 = vpack.c.bf16 %v5774_v52, %v5773_v23 }
0x2cce   : > { %v5346_v56 = vpop.f32.mrb[50].mxu1 }
0x2ccf   : > { %v9360_v57 = vpop.f32.mrb[51].mxu1  ;;  %v5350_v58 = vsel %vm1028_vm2, %v5346_v56, -inf }
0x2cd0   : > { %5351 = vmax.xlane.f32.xlu0 %v5350_v58 }
0x2ce6   : > { %5361 = vrot.lane.b32.xlu0 %v10796_v54, %s11492_s9 }
0x2cea   : > { %5511 = vrot.lane.b32.xlu0 %v10824_v10, %s11496_s8 }
0x2d5d   : > { %v5352_v59 = vpop.xlane.xlu0 %5351 }
0x2d5e   : > { %v5353_v61 = vsub.f32 %v5346_v56, %v5352_v59 }
0x2d60   : > { %v5354_v63 = vmul.f32 1.442695, %v5353_v61  ;;  %v8676_v61 = vld [vmem:[%s11509_s23] ss:$0 sm:$0xff] }
0x2d61   : > { %v5362_v19 = vpop.permute.xlu0 %5361 }
0x2d62   : > { %9870 = vpow2.f32 %v5354_v63  ;;  %9362 = vmatpush3.msra.mxu0 %v5362_v19 }
0x2d63   : > { %9371 = vmatprep.subr.mxu0 %v9990_v9 }
0x2d65   : > { %v5512_v10 = vpop.permute.xlu0 %5511 }
0x2d6c   : > { %v9871_v2 = vpop.eup %9870 }
0x2d6d   : > { %v5356_v3 = vsel %vm1028_vm2, %v9871_v2, 0.0 }
0x2d6e   : > { %5357 = vadd.xlane.f32.xlu1 %v5356_v3  ;;  %v5778_v3 = vld [vmem:[%s11508_s0 + $0x38] sm:$0xff] }
0x2d7f   : > { %5513 = vrot.lane.b32.xlu1 %v10796_v54, %s11496_s8 }
0x2dfb   : > { %v5358_v4 = vpop.xlane.xlu1 %5357 }
0x2dfc   : > { %9872 = vrcp.f32 %v5358_v4 }
0x2dff   : > { %v5514_v8 = vpop.permute.xlu1 %5513 }
0x2e06   : > { %v9873_v5 = vpop.eup %9872 }
0x2e07   : > { %v5360_v7 = vmul.f32 %v9873_v5, %v9871_v2  ;;  %v5777_v2 = vld [vmem:[%s11508_s0 + $0x30] sm:$0xff] }
0x2e08   : > { %v9698_v4 = vpack.c.bf16 %v5778_v3, %v5777_v2 }
0x2e09   : > { %9364 = vmatmul.mubr.msk.f32.vlgmr.msra.gmra.mrb[56].mxu0 %vm1028_vm2, %v5360_v7 }
0x2e0a   : > { %9372 = vmatpush3.xpose.msk.msra.mxu0 %vm1028_vm2, %v5514_v8  ;;  %9373 = vmatprep.mubr.msk.f32.mxu0 %vm9989_vm1, %v9990_v9 }
0x2e0b   : > { %9381 = vmatprep.subr.mxu0 %v9990_v9 }
0x2e0d   : > { %9374 = vmatmul.mubr.msk.f32.vlgmr.msra.gmra.mrb[58].mxu0 %vm1028_vm2, %v5512_v10 }
0x2e0e   : > { %9383 = vmatprep.mubr.msk.f32.mxu0 %vm9989_vm1, %v9990_v9 }
0x2edc   : > { %v5433_v12 = vpop.f32.mrb[56].mxu0 }
0x2edd   : > { %v9365_v13 = vpop.f32.mrb[57].mxu0  ;;  %9369 = vmatmul.mubr.msk.f32.vlgmr.msra.gmra.mrb[52].mxu1 %vm1028_vm2, %v5433_v12 }
0x2ede   : > { %9378 = vmatprep.mubr.msk.f32.mxu1 %vm9989_vm1, %v9990_v9 }
0x2ee0   : > { %v5585_v14 = vpop.f32.mrb[58].mxu0 }
0x2ee1   : > { %v9375_v16 = vpop.f32.mrb[59].mxu0  ;;  %v5589_v17 = vsel %vm1028_vm2, %v5585_v14, -inf }
0x2ee2   : > { %5590 = vmax.xlane.f32.xlu1 %v5589_v17  ;;  %v8681_v16 = vld [vmem:[%s11375_s15 + $0x20] sm:$0xff]  ;;  %v8682_v17 = vld [vmem:[%s11375_s15 + $0x28] sm:$0xff] }
0x2f6f   : > { %v5591_v20 = vpop.xlane.xlu1 %5590 }
0x2f70   : > { %v5592_v21 = vsub.f32 %v5585_v14, %v5591_v20  ;;  %v9701_v20 = vpack.c.bf16 %v8682_v17, %v8681_v16 }
0x2f72   : > { %v5593_v27 = vmul.f32 1.442695, %v5592_v21  ;;  %v8683_v21 = vld [vmem:[%s11375_s15 + $0x30] sm:$0xff] }
0x2f74   : > { %9874 = vpow2.f32 %v5593_v27  ;;  %v8684_v27 = vld [vmem:[%s11375_s15 + $0x38] sm:$0xff] }
0x2f7e   : > { %v9875_v29 = vpop.eup %9874 }
0x2f7f   : > { %v5595_v30 = vsel %vm1028_vm2, %v9875_v29, 0.0 }
0x2f80   : > { %5596 = vadd.xlane.f32.xlu0 %v5595_v30 }
0x2f96   : > { %5600 = vrot.lane.b32.xlu0 %v10796_v54, %s11497_s10  ;;  %v4797_v54 = vld [vmem:[%s11506_s25 + $0x18] sm:$0xff] }
0x2f97   : > { %9382 = vmatpush3.msra.mxu0 %v4797_v54 }
0x2f98   : > { %9688 = vmatprep.subr.bf16.mxu0 %v9988_v6 }
0x2fb0   : > { %v5506_v31 = vpop.f32.mrb[52].mxu1 }
0x2fb1   : > { %v5510_v32 = vadd.f32 %v5506_v31, %v5269_v39  ;;  %v9370_v1 = vpop.f32.mrb[53].mxu1  ;;  %v5776_v39 = vld [vmem:[%s11508_s0 + $0x28] sm:$0xff] }
0x2fb2   : > { %v9695_v55 = vpack.c.bf16 %v5776_v39, %v5775_v53 }
0x300d   : > { %v5597_v33 = vpop.xlane.xlu0 %5596 }
0x300e   : > { %9876 = vrcp.f32 %v5597_v33  ;;  %v8680_v33 = vld [vmem:[%s11374_s14 + $0x1] ss:$0 sm:$0xff] }
0x3011   : > { %v5601_v34 = vpop.permute.xlu0 %5600 }
0x3012   : > { %9377 = vmatpush3.msra.mxu1 %v5601_v34 }
0x3013   : > { %9682 = vmatprep.subr.bf16.mxu1 %v9988_v6 }
0x3018   : > { %v9877_v35 = vpop.eup %9876 }
0x3019   : > { %v5599_v36 = vmul.f32 %v9877_v35, %v9875_v29  ;;  %v9704_v29 = vpack.c.bf16 %v8684_v27, %v8683_v21 }
0x301b   : > { %9379 = vmatmul.mubr.msk.f32.vlgmr.msra.gmra.mrb[54].mxu1 %vm1028_vm2, %v5599_v36 }
0x301c   : > { %9394 = vmatprep.mubr.msk.f32.mxu1 %vm9989_vm1, %v9990_v9  ;;  %9684 = vmatpush3.bf16.msra.mxu1 %v9683_v46 }
0x301d   : > { %9685 = vmatprep.subr.bf16.mxu1 %v9988_v6 }
0x30ee   : > { %v5672_v37 = vpop.f32.mrb[54].mxu1 }
0x30ef   : > { %v9380_v38 = vpop.f32.mrb[55].mxu1  ;;  %9384 = vmatmul.mubr.msk.f32.vlgmr.msra.gmra.mrb[60].mxu0 %vm1028_vm2, %v5672_v37 }
0x30f0   : > { %9413 = vmatprep.mubr.msk.f32.mxu0 %vm9989_vm1, %v9990_v9  ;;  %9690 = vmatpush3.bf16.msra.mxu0 %v9689_v51 }
0x30f1   : > { %9691 = vmatprep.subr.bf16.mxu0 %v9988_v6 }
0x30f4   : > { %9693 = vmatpush3.bf16.msra.mxu0 %v9692_v25 }
0x30f5   : > { %9694 = vmatprep.subr.bf16.mxu0 %v9988_v6 }
0x30f8   : > { %9696 = vmatpush3.bf16.msra.mxu0 %v9695_v55 }
0x30f9   : > { %9697 = vmatprep.subr.bf16.mxu0 %v9988_v6 }
0x30fc   : > { %9699 = vmatpush3.bf16.msra.mxu0 %v9698_v4 }
0x30fd   : > { %9432 = vmatprep.subr.mxu0 %v9990_v9 }
0x31c2   : > { %v5745_v15 = vpop.f32.mrb[60].mxu0 }
0x31c3   : > { %v5749_v40 = vadd.f32 %v5745_v15, %v5510_v32  ;;  %v9385_v41 = vpop.f32.mrb[61].mxu0 }
0x31c5   : > { %v5750_v18 = vadd.f32 %v5749_v40, %v10791_v0  ;;  %v5769_v0 = vld [vmem:[%s11507_s24 + $0x10] sm:$0xff] }
0x31c6   : > { %v9686_v48 = vpack.c.bf16 %v5770_v47, %v5769_v0 }
0x31c7   : > { %v5752_v42 = vmul.f32 %v5750_v18, %v5750_v18 }
0x31c8   : > { %9687 = vmatpush3.bf16.msra.mxu1 %v9686_v48 }
0x31c9   : > { %v5753_v43 = vsel %vm928_vm0, %v5752_v42, 0.0  ;;  %9700 = vmatprep.subr.bf16.mxu1 %v9988_v6 }
0x31ca   : > { %5754 = vadd.xlane.f32.xlu1 %v5753_v43 }
0x3257   : > { %v5755_v56 = vpop.xlane.xlu1 %5754 }
0x3258   : > { %v5756_v57 = vmul.f32 0.03125, %v5755_v56 }
0x325a   : > { %v5757_v58 = vadd.f32 1e-06, %v5756_v57 }
0x325c   : > { %9878 = vrsqrt.f32 %v5757_v58 }
0x3266   : > { %v9879_v59 = vpop.eup %9878 }
0x3267   : > { %v5759_v63 = vmul.f32 %v9879_v59, %v5750_v18 }
0x3269   : > { %v5766_v19 = vmul.f32 %v8676_v61, %v5759_v63  ;;  %v8686_v63 = vld [vmem:[%s11376_s16 + $0x20] sm:$0xff] }
0x326b   : > { %9395 = vmatmul.mubr.msk.f32.vlgmr.msra.gmra.mrb[56].mxu1 %vm928_vm0, %v5766_v19 }
0x326c   : > { %9424 = vmatprep.mubr.msk.f32.mxu1 %vm9989_vm1, %v9990_v9  ;;  %9702 = vmatpush3.bf16.msra.mxu1 %v9701_v20 }
0x326d   : > { %9703 = vmatprep.subr.bf16.mxu1 %v9988_v6 }
0x3270   : > { %9705 = vmatpush3.bf16.msra.mxu1 %v9704_v29 }
0x3271   : > { %9427 = vmatprep.subr.mxu1 %v9990_v9 }
0x333e   : > { %v5848_v5 = vpop.f32.mrb[56].mxu1 }
0x333f   : > { %v5852_v7 = vmax.f32 %v5848_v5, 0.0  ;;  %v9396_v8 = vpop.f32.mrb[57].mxu1 }
0x3341   : > { %9414 = vmatmul.mubr.msk.f32.vlgmr.msra.gmra.mrb[62].mxu0 %vm2082_vm3, %v5852_v7 }
0x3342   : > { %9434 = vmatprep.mubr.msk.f32.mxu0 %vm9989_vm1, %v9990_v9 }
0x3414   : > { %v5922_v10 = vpop.f32.mrb[62].mxu0 }
0x3415   : > { %v10968_v11 = vadd.f32 %v5922_v10, %v5750_v18  ;;  %v9415_v12 = vpop.f32.mrb[63].mxu0 }
0x3417   : > { %v5929_v13 = vmul.f32 %v10968_v11, %v10968_v11 }
0x3419   : > { %v5930_v14 = vsel %vm928_vm0, %v5929_v13, 0.0 }
0x341a   : > { %5931 = vadd.xlane.f32.xlu1 %v5930_v14 }
0x34a7   : > { %v5932_v30 = vpop.xlane.xlu1 %5931 }
0x34a8   : > { %v5933_v31 = vmul.f32 0.03125, %v5932_v30 }
0x34aa   : > { %v5934_v32 = vadd.f32 1e-06, %v5933_v31 }
0x34ac   : > { %9880 = vrsqrt.f32 %v5934_v32 }
0x34b6   : > { %v9881_v1 = vpop.eup %9880 }
0x34b7   : > { %v5936_v34 = vmul.f32 %v9881_v1, %v10968_v11 }
0x34b9   : > { %v5943_v35 = vmul.f32 %v8680_v33, %v5936_v34 }
0x34bb   : > { %9425 = vmatmul.mubr.msk.f32.vlgmr.msra.gmra.mrb[58].mxu1 %vm928_vm0, %v5943_v35 }
0x34bc   : > { %9429 = vmatprep.mubr.msk.f32.mxu1 %vm9989_vm1, %v9990_v9 }
0x358e   : > { %v10994_v36 = vpop.f32.mrb[58].mxu1 }
0x358f   : > { %6193 = vrot.lane.b32.xlu0 %v10994_v36, %s11488_s30  ;;  %6028 = vrot.lane.b32.xlu1 %v10994_v36, %s11489_s27  ;;  %v9426_v54 = vpop.f32.mrb[59].mxu1 }
0x3593   : > { %6191 = vrot.lane.b32.xlu0 %v10994_v36, %s11490_s3 }
0x3601   : > { %v6029_v37 = vpop.permute.xlu1 %6028  ;;  %v6194_v38 = vpop.permute.xlu0 %6193 }
0x3602   : > { %9428 = vmatpush3.xpose.msk.msra.mxu1 %vm1028_vm2, %v6029_v37  ;;  %v8688_v37 = vld [vmem:[%s11376_s16 + $0x30] sm:$0xff] }
0x3603   : > { %9437 = vmatprep.subr.mxu1 %v9990_v9 }
0x3605   : > { %9430 = vmatmul.mubr.msk.f32.vlgmr.msra.gmra.mrb[60].mxu1 %vm1028_vm2, %v10994_v36  ;;  %v6192_v15 = vpop.permute.xlu0 %6191 }
0x3606   : > { %9438 = vmatpush3.xpose.msk.msra.mxu1 %vm1028_vm2, %v6194_v38  ;;  %9439 = vmatprep.mubr.msk.f32.mxu1 %vm9989_vm1, %v9990_v9 }
0x3607   : > { %9447 = vmatprep.subr.mxu1 %v9990_v9 }
0x3609   : > { %9440 = vmatmul.mubr.msk.f32.vlgmr.msra.gmra.mrb[62].mxu1 %vm1028_vm2, %v6192_v15 }
0x360a   : > { %9449 = vmatprep.mubr.msk.f32.mxu1 %vm9989_vm1, %v9990_v9 }
0x36d8   : > { %v6100_v40 = vpop.f32.mrb[60].mxu1 }
0x36d9   : > { %v6101_v41 = vadd.f32 %v6100_v40, %v10679_v22  ;;  %v9431_v18 = vpop.f32.mrb[61].mxu1 }
0x36db   : > { %v6104_v42 = vsel %vm1028_vm2, %v6101_v41, -inf }
0x36dc   : > { %6105 = vmax.xlane.f32.xlu1 %v6104_v42  ;;  %v6265_v43 = vpop.f32.mrb[62].mxu1 }
0x36dd   : > { %v6266_v44 = vadd.f32 %v6265_v43, %v10682_v26  ;;  %v9441_v45 = vpop.f32.mrb[63].mxu1  ;;  %v8687_v26 = vld [vmem:[%s11376_s16 + $0x28] sm:$0xff] }
0x36de   : > { %9448 = vmatpush3.msra.mxu1 %v8687_v26  ;;  %v8715_v26 = vld [vmem:[%s11379_s19 + $0x30] sm:$0xff] }
0x36df   : > { %v6269_v46 = vsel %vm1028_vm2, %v6266_v44, -inf  ;;  %9457 = vmatprep.subr.mxu1 %v9990_v9 }
0x36e0   : > { %6270 = vmax.xlane.f32.xlu0 %v6269_v46 }
0x3769   : > { %v6106_v0 = vpop.xlane.xlu1 %6105 }
0x376a   : > { %v6107_v47 = vsub.f32 %v6101_v41, %v6106_v0 }
0x376c   : > { %v6108_v48 = vmul.f32 1.442695, %v6107_v47 }
0x376d   : > { %v6271_v49 = vpop.xlane.xlu0 %6270 }
0x376e   : > { %9882 = vpow2.f32 %v6108_v48  ;;  %v6272_v50 = vsub.f32 %v6266_v44, %v6271_v49 }
0x3770   : > { %v6273_v23 = vmul.f32 1.442695, %v6272_v50 }
0x3772   : > { %9884 = vpow2.f32 %v6273_v23 }
0x3778   : > { %v9883_v22 = vpop.eup %9882 }
0x3779   : > { %v6110_v51 = vsel %vm1028_vm2, %v9883_v22, 0.0 }
0x377a   : > { %6111 = vadd.xlane.f32.xlu0 %v6110_v51  ;;  %v8713_v51 = vld [vmem:[%s11379_s19 + $0x20] sm:$0xff] }
0x377c   : > { %v9885_v52 = vpop.eup %9884 }
0x377d   : > { %v6275_v25 = vsel %vm1028_vm2, %v9885_v52, 0.0 }
0x377e   : > { %6276 = vadd.xlane.f32.xlu1 %v6275_v25 }
0x378f   : > { %6280 = vrot.lane.b32.xlu1 %v10994_v36, %s11494_s28 }
0x3790   : > { %6115 = vrot.lane.b32.xlu0 %v10994_v36, %s11491_s2 }
0x3793   : > { %6504 = vrot.lane.b32.xlu1 %v10994_v36, %s11492_s9 }
0x3794   : > { %6502 = vrot.lane.b32.xlu0 %v10994_v36, %s11493_s11 }
0x3807   : > { %v6112_v53 = vpop.xlane.xlu0 %6111 }
0x3808   : > { %9886 = vrcp.f32 %v6112_v53  ;;  %v8716_v53 = vld [vmem:[%s11379_s19 + $0x38] sm:$0xff] }
0x380b   : > { %v6277_v39 = vpop.xlane.xlu1 %6276  ;;  %v6116_v55 = vpop.permute.xlu0 %6115 }
0x380c   : > { %9888 = vrcp.f32 %v6277_v39  ;;  %9433 = vmatpush3.msra.mxu0 %v6116_v55 }
0x380d   : > { %9442 = vmatprep.subr.mxu0 %v9990_v9 }
0x380f   : > { %v6281_v58 = vpop.permute.xlu1 %6280  ;;  %v6503_v7 = vpop.permute.xlu0 %6502 }
0x3812   : > { %v9887_v56 = vpop.eup %9886 }
0x3813   : > { %v6114_v57 = vmul.f32 %v9887_v56, %v9883_v22  ;;  %v6505_v4 = vpop.permute.xlu1 %6504  ;;  %v9716_v56 = vpack.c.bf16 %v8716_v53, %v8715_v26 }
0x3815   : > { %9435 = vmatmul.mubr.msk.f32.vlgmr.msra.gmra.mrb[64].mxu0 %vm1028_vm2, %v6114_v57 }
0x3816   : > { %v9889_v59 = vpop.eup %9888  ;;  %9443 = vmatpush3.msra.mxu0 %v6281_v58  ;;  %9444 = vmatprep.mubr.msk.f32.mxu0 %vm9989_vm1, %v9990_v9 }
0x3817   : > { %v6279_v61 = vmul.f32 %v9889_v59, %v9885_v52  ;;  %9452 = vmatprep.subr.mxu0 %v9990_v9  ;;  %v8714_v52 = vld [vmem:[%s11379_s19 + $0x28] sm:$0xff] }
0x3818   : > { %v9713_v25 = vpack.c.bf16 %v8714_v52, %v8713_v51 }
0x3819   : > { %9445 = vmatmul.mubr.msk.f32.vlgmr.msra.gmra.mrb[66].mxu0 %vm1028_vm2, %v6279_v61 }
0x381a   : > { %9454 = vmatprep.mubr.msk.f32.mxu0 %vm9989_vm1, %v9990_v9  ;;  %9453 = vmatpush3.msra.mxu0 %v8686_v63 }
0x381b   : > { %9462 = vmatprep.subr.mxu0 %v9990_v9 }
0x38e8   : > { %v6187_v19 = vpop.f32.mrb[64].mxu0 }
0x38e9   : > { %v9436_v2 = vpop.f32.mrb[65].mxu0  ;;  %9455 = vmatmul.mubr.msk.f32.vlgmr.msra.gmra.mrb[68].mxu0 %vm1028_vm2, %v6187_v19 }
0x38ea   : > { %9464 = vmatprep.mubr.msk.f32.mxu0 %vm9989_vm1, %v9990_v9 }
0x38ec   : > { %v6352_v3 = vpop.f32.mrb[66].mxu0 }
0x38ed   : > { %v9446_v5 = vpop.f32.mrb[67].mxu0  ;;  %9450 = vmatmul.mubr.msk.f32.vlgmr.msra.gmra.mrb[64].mxu1 %vm1028_vm2, %v6352_v3 }
0x38ee   : > { %9458 = vmatpush3.xpose.msk.msra.mxu1 %vm1028_vm2, %v6505_v4  ;;  %9459 = vmatprep.mubr.msk.f32.mxu1 %vm9989_vm1, %v9990_v9  ;;  %v8710_v5 = vld [vmem:[%s11378_s18 + $0x30] sm:$0xff] }
0x38ef   : > { %9467 = vmatprep.subr.mxu1 %v9990_v9 }
0x38f1   : > { %9460 = vmatmul.mubr.msk.f32.vlgmr.msra.gmra.mrb[66].mxu1 %vm1028_vm2, %v6503_v7  ;;  %v8711_v7 = vld [vmem:[%s11378_s18 + $0x38] sm:$0xff] }
0x38f2   : > { %9469 = vmatprep.mubr.msk.f32.mxu1 %vm9989_vm1, %v9990_v9  ;;  %9468 = vmatpush3.msra.mxu1 %v8688_v37 }
0x38f3   : > { %9477 = vmatprep.subr.mxu1 %v9990_v9 }
0x39bc   : > { %v6498_v8 = vpop.f32.mrb[68].mxu0 }
0x39bd   : > { %v9456_v10 = vpop.f32.mrb[69].mxu0 }
0x39c0   : > { %v6425_v12 = vpop.f32.mrb[64].mxu1 }
0x39c1   : > { %v6499_v13 = vadd.f32 %v6498_v8, %v6425_v12  ;;  %v9451_v14 = vpop.f32.mrb[65].mxu1  ;;  %v9710_v8 = vpack.c.bf16 %v8711_v7, %v8710_v5 }
0x39c4   : > { %v6576_v16 = vpop.f32.mrb[66].mxu1 }
0x39c5   : > { %v6577_v17 = vadd.f32 %v6576_v16, %v10726_v62  ;;  %v9461_v20 = vpop.f32.mrb[67].mxu1  ;;  %v8707_v16 = vld [vmem:[%s11505_s4 + $0x1] ss:$0 sm:$0xff] }
0x39c7   : > { %v6580_v21 = vsel %vm1028_vm2, %v6577_v17, -inf }
0x39c8   : > { %6581 = vmax.xlane.f32.xlu1 %v6580_v21 }
0x39d9   : > { %6743 = vrot.lane.b32.xlu1 %v10994_v36, %s11497_s10 }
0x39dd   : > { %6741 = vrot.lane.b32.xlu1 %v10994_v36, %s11496_s8 }
0x3a55   : > { %v6582_v27 = vpop.xlane.xlu1 %6581 }
0x3a56   : > { %v6583_v29 = vsub.f32 %v6577_v17, %v6582_v27 }
0x3a58   : > { %v6584_v30 = vmul.f32 1.442695, %v6583_v29 }
0x3a59   : > { %v6744_v34 = vpop.permute.xlu1 %6743 }
0x3a5a   : > { %9890 = vpow2.f32 %v6584_v30 }
0x3a5d   : > { %v6742_v54 = vpop.permute.xlu1 %6741 }
0x3a64   : > { %v9891_v31 = vpop.eup %9890 }
0x3a65   : > { %v6586_v32 = vsel %vm1028_vm2, %v9891_v31, 0.0 }
0x3a66   : > { %6587 = vadd.xlane.f32.xlu0 %v6586_v32 }
0x3a7c   : > { %6591 = vrot.lane.b32.xlu0 %v10994_v36, %s11495_s7  ;;  %s11513_s7 = sld [smem:[#allocation35_spill]] }
0x3af3   : > { %v6588_v62 = vpop.xlane.xlu0 %6587 }
0x3af4   : > { %9892 = vrcp.f32 %v6588_v62 }
0x3af7   : > { %v6592_v1 = vpop.permute.xlu0 %6591 }
0x3af8   : > { %9463 = vmatpush3.msra.mxu0 %v6592_v1 }
0x3af9   : > { %9472 = vmatprep.subr.mxu0 %v9990_v9 }
0x3afe   : > { %v9893_v33 = vpop.eup %9892 }
0x3aff   : > { %v6590_v35 = vmul.f32 %v9893_v33, %v9891_v31 }
0x3b01   : > { %9465 = vmatmul.mubr.msk.f32.vlgmr.msra.gmra.mrb[70].mxu0 %vm1028_vm2, %v6590_v35 }
0x3b02   : > { %9473 = vmatpush3.xpose.msk.msra.mxu0 %vm1028_vm2, %v6744_v34  ;;  %9474 = vmatprep.mubr.msk.f32.mxu0 %vm9989_vm1, %v9990_v9 }
0x3b03   : > { %9482 = vmatprep.subr.mxu0 %v9990_v9 }
0x3b05   : > { %9475 = vmatmul.mubr.msk.f32.vlgmr.msra.gmra.mrb[72].mxu0 %vm1028_vm2, %v6742_v54 }
0x3b06   : > { %9484 = vmatprep.mubr.msk.f32.mxu0 %vm9989_vm1, %v9990_v9 }
0x3bd4   : > { %v6663_v38 = vpop.f32.mrb[70].mxu0 }
0x3bd5   : > { %v9466_v15 = vpop.f32.mrb[71].mxu0  ;;  %9470 = vmatmul.mubr.msk.f32.vlgmr.msra.gmra.mrb[68].mxu1 %vm1028_vm2, %v6663_v38 }
0x3bd6   : > { %9479 = vmatprep.mubr.msk.f32.mxu1 %vm9989_vm1, %v9990_v9 }
0x3bd8   : > { %v6815_v40 = vpop.f32.mrb[72].mxu0 }
0x3bd9   : > { %v6816_v41 = vadd.f32 %v6815_v40, %v10752_v28  ;;  %v9476_v18 = vpop.f32.mrb[73].mxu0  ;;  %v8689_v28 = vld [vmem:[%s11376_s16 + $0x38] sm:$0xff] }
0x3bda   : > { %9483 = vmatpush3.msra.mxu0 %v8689_v28 }
0x3bdb   : > { %v6819_v42 = vsel %vm1028_vm2, %v6816_v41, -inf  ;;  %9712 = vmatprep.subr.bf16.mxu0 %v9988_v6 }
0x3bdc   : > { %6820 = vmax.xlane.f32.xlu0 %v6819_v42 }
0x3bf2   : > { %6830 = vrot.lane.b32.xlu0 %v10994_v36, %s11498_s26 }
0x3c69   : > { %v6821_v43 = vpop.xlane.xlu0 %6820 }
0x3c6a   : > { %v6822_v44 = vsub.f32 %v6816_v41, %v6821_v43 }
0x3c6c   : > { %v6823_v45 = vmul.f32 1.442695, %v6822_v44 }
0x3c6d   : > { %v6831_v46 = vpop.permute.xlu0 %6830 }
0x3c6e   : > { %9894 = vpow2.f32 %v6823_v45  ;;  %9478 = vmatpush3.msra.mxu1 %v6831_v46 }
0x3c6f   : > { %9706 = vmatprep.subr.bf16.mxu1 %v9988_v6 }
0x3c78   : > { %v9895_v0 = vpop.eup %9894 }
0x3c79   : > { %v6825_v47 = vsel %vm1028_vm2, %v9895_v0, 0.0 }
0x3c7a   : > { %6826 = vadd.xlane.f32.xlu1 %v6825_v47  ;;  %v8719_v47 = vld [vmem:[%s11506_s25 + $0x28] sm:$0xff] }
0x3ca8   : > { %v6736_v36 = vpop.f32.mrb[68].mxu1 }
0x3ca9   : > { %v6740_v48 = vadd.f32 %v6736_v36, %v6499_v13  ;;  %v9471_v49 = vpop.f32.mrb[69].mxu1 }
0x3d07   : > { %v6827_v50 = vpop.xlane.xlu1 %6826 }
0x3d08   : > { %9896 = vrcp.f32 %v6827_v50  ;;  %v8718_v50 = vld [vmem:[%s11506_s25 + $0x20] sm:$0xff] }
0x3d12   : > { %v9897_v23 = vpop.eup %9896 }
0x3d13   : > { %v6829_v22 = vmul.f32 %v9897_v23, %v9895_v0 }
0x3d15   : > { %9480 = vmatmul.mubr.msk.f32.vlgmr.msra.gmra.mrb[70].mxu1 %vm1028_vm2, %v6829_v22 }
0x3d16   : > { %9495 = vmatprep.mubr.msk.f32.mxu1 %vm9989_vm1, %v9990_v9 }
0x3de8   : > { %v6902_v39 = vpop.f32.mrb[70].mxu1 }
0x3de9   : > { %v9481_v55 = vpop.f32.mrb[71].mxu1  ;;  %9485 = vmatmul.mubr.msk.f32.vlgmr.msra.gmra.mrb[74].mxu0 %vm1028_vm2, %v6902_v39 }
0x3dea   : > { %9714 = vmatpush3.bf16.msra.mxu0 %v9713_v25  ;;  %9506 = vmatprep.mubr.msk.f32.mxu0 %vm9989_vm1, %v9990_v9 }
0x3deb   : > { %9715 = vmatprep.subr.bf16.mxu0 %v9988_v6 }
0x3dee   : > { %9717 = vmatpush3.bf16.msra.mxu0 %v9716_v56 }
0x3def   : > { %9514 = vmatprep.subr.mxu0 %v9990_v9 }
0x3df1   : > { %9507 = vmatmul.mubr.msk.f32.vlgmr.msra.gmra.mrb[76].mxu0 %vm928_vm0, %v10626_v60  ;;  %v8708_v60 = vld [vmem:[%s11378_s18 + $0x20] sm:$0xff] }
0x3df2   : > { %9516 = vmatprep.mubr.msk.f32.mxu0 %vm9989_vm1, %v9990_v9 }
0x3ebc   : > { %v6975_v57 = vpop.f32.mrb[74].mxu0 }
0x3ebd   : > { %v6979_v58 = vadd.f32 %v6975_v57, %v6740_v48  ;;  %v9486_v59 = vpop.f32.mrb[75].mxu0 }
0x3ebf   : > { %v11114_v61 = vadd.f32 %v6979_v58, %v10968_v11  ;;  %v8709_v11 = vld [vmem:[%s11378_s18 + $0x28] sm:$0xff] }
0x3ec0   : > { %v9707_v4 = vpack.c.bf16 %v8709_v11, %v8708_v60 }
0x3ec1   : > { %v6983_v63 = vmul.f32 %v11114_v61, %v11114_v61 }
0x3ec2   : > { %9708 = vmatpush3.bf16.msra.mxu1 %v9707_v4 }
0x3ec3   : > { %v6984_v19 = vsel %vm928_vm0, %v6983_v63, 0.0  ;;  %9709 = vmatprep.subr.bf16.mxu1 %v9988_v6 }
0x3ec4   : > { %v11119_v2 = vpop.f32.mrb[76].mxu0  ;;  %6985 = vadd.xlane.f32.xlu1 %v6984_v19 }
0x3ec5   : > { %v9508_v3 = vpop.f32.mrb[77].mxu0 }
0x3ec6   : > { %9711 = vmatpush3.bf16.msra.mxu1 %v9710_v8 }
0x3ec7   : > { %9509 = vmatprep.subr.mxu1 %v9990_v9 }
0x3ed5   : > { %7321 = vrot.lane.b32.xlu1 %v11119_v2, %s11490_s3 }
0x3f51   : > { %v6986_v10 = vpop.xlane.xlu1 %6985 }
0x3f52   : > { %v6987_v12 = vmul.f32 0.03125, %v6986_v10 }
0x3f54   : > { %v6988_v13 = vadd.f32 1e-06, %v6987_v12 }
0x3f55   : > { %v7322_v27 = vpop.permute.xlu1 %7321 }
0x3f56   : > { %9898 = vrsqrt.f32 %v6988_v13 }
0x3f60   : > { %v9899_v14 = vpop.eup %9898 }
0x3f61   : > { %v6990_v17 = vmul.f32 %v9899_v14, %v11114_v61  ;;  %v8720_v14 = vld [vmem:[%s11506_s25 + $0x30] sm:$0xff] }
0x3f63   : > { %v6997_v20 = vmul.f32 %v8707_v16, %v6990_v17 }
0x3f65   : > { %9496 = vmatmul.mubr.msk.f32.vlgmr.msra.gmra.mrb[72].mxu1 %vm928_vm0, %v6997_v20 }
0x3f66   : > { %9510 = vmatpush3.xpose.msk.msra.mxu1 %vm1028_vm2, %v11119_v2  ;;  %9511 = vmatprep.mubr.msk.f32.mxu1 %vm9989_vm1, %v9990_v9 }
0x3f67   : > { %9519 = vmatprep.subr.mxu1 %v9990_v9 }
0x4038   : > { %v11147_v21 = vpop.f32.mrb[72].mxu1 }
0x4039   : > { %7319 = vrot.lane.b32.xlu0 %v11147_v21, %s11490_s3  ;;  %v9497_v29 = vpop.f32.mrb[73].mxu1  ;;  %9512 = vmatmul.mubr.msk.f32.vlgmr.msra.gmra.mrb[74].mxu1 %vm1028_vm2, %v11147_v21  ;;  %s8758_s3 = sshll.u32 %s11514_s22, 7 }
0x403a   : > { %9520 = vmatpush3.xpose.msk.msra.mxu1 %vm1028_vm2, %v7322_v27  ;;  %9521 = vmatprep.mubr.msk.f32.mxu1 %vm9989_vm1, %v9990_v9 }
0x403b   : > { %9529 = vmatprep.subr.mxu1 %v9990_v9 }
0x40ab   : > { %v7320_v30 = vpop.permute.xlu0 %7319 }
0x40ac   : > { %9522 = vmatmul.mubr.msk.f32.vlgmr.msra.gmra.mrb[76].mxu1 %vm1028_vm2, %v7320_v30 }
0x40ad   : > { %9531 = vmatprep.mubr.msk.f32.mxu1 %vm9989_vm1, %v9990_v9  ;;  %9530 = vmatpush3.msra.mxu1 %v8719_v47 }
0x40ae   : > { %9539 = vmatprep.subr.mxu1 %v9990_v9 }
0x410c   : > { %v7228_v31 = vpop.f32.mrb[74].mxu1 }
0x410d   : > { %v9513_v32 = vpop.f32.mrb[75].mxu1  ;;  %v7232_v62 = vsel %vm1028_vm2, %v7228_v31, -inf }
0x410e   : > { %7233 = vmax.xlane.f32.xlu0 %v7232_v62 }
0x417f   : > { %v7393_v1 = vpop.f32.mrb[76].mxu1 }
0x4180   : > { %v9523_v33 = vpop.f32.mrb[77].mxu1  ;;  %v7397_v34 = vsel %vm1028_vm2, %v7393_v1, -inf }
0x4181   : > { %7398 = vmax.xlane.f32.xlu1 %v7397_v34 }
0x4192   : > { %7243 = vrot.lane.b32.xlu1 %v11119_v2, %s11489_s27 }
0x4196   : > { %7632 = vrot.lane.b32.xlu1 %v11119_v2, %s11493_s11 }
0x419a   : > { %7630 = vrot.lane.b32.xlu1 %v11147_v21, %s11493_s11  ;;  %s11511_s11 = sld [smem:[#allocation6_spill]] }
0x419b   : > { %v7234_v35 = vpop.xlane.xlu0 %7233 }
0x419c   : > { %v7235_v54 = vsub.f32 %v7228_v31, %v7234_v35 }
0x419e   : > { %v7236_v37 = vmul.f32 1.442695, %v7235_v54 }
0x41a0   : > { %9900 = vpow2.f32 %v7236_v37  ;;  %s889_s6 = sand.u32 1, %s11511_s11  }
0x41a1   : > { %s8419_s2 = scalar_lea.sflag [#allocation3], %s889_s6 }
0x41aa   : > { %v9901_v38 = vpop.eup %9900 }
0x41ab   : > { %v7238_v15 = vsel %vm1028_vm2, %v9901_v38, 0.0 }
0x41ac   : > { %7239 = vadd.xlane.f32.xlu0 %v7238_v15 }
0x420e   : > { %v7399_v40 = vpop.xlane.xlu1 %7398 }
0x420f   : > { %v7400_v41 = vsub.f32 %v7393_v1, %v7399_v40 }
0x4211   : > { %v7401_v18 = vmul.f32 1.442695, %v7400_v41 }
0x4212   : > { %v7244_v42 = vpop.permute.xlu1 %7243 }
0x4213   : > { %9902 = vpow2.f32 %v7401_v18  ;;  %9515 = vmatpush3.msra.mxu0 %v7244_v42 }
0x4214   : > { %9524 = vmatprep.subr.mxu0 %v9990_v9 }
0x4216   : > { %v7633_v51 = vpop.permute.xlu1 %7632 }
0x421a   : > { %v7631_v26 = vpop.permute.xlu1 %7630 }
0x421d   : > { %v9903_v43 = vpop.eup %9902 }
0x421e   : > { %v7403_v44 = vsel %vm1028_vm2, %v9903_v43, 0.0 }
0x421f   : > { %7404 = vadd.xlane.f32.xlu0 %v7403_v44 }
0x4235   : > { %7408 = vrot.lane.b32.xlu0 %v11119_v2, %s11488_s30 }
0x4239   : > { %v7240_v45 = vpop.xlane.xlu0 %7239 }
0x423a   : > { %9904 = vrcp.f32 %v7240_v45 }
0x4244   : > { %v9905_v46 = vpop.eup %9904 }
0x4245   : > { %v7242_v0 = vmul.f32 %v9905_v46, %v9901_v38  ;;  %v8740_v46 = vld [vmem:[%s11507_s24 + $0x20] sm:$0xff] }
0x4247   : > { %9517 = vmatmul.mubr.msk.f32.vlgmr.msra.gmra.mrb[78].mxu0 %vm1028_vm2, %v7242_v0  ;;  %v8741_v0 = vld [vmem:[%s11507_s24 + $0x28] sm:$0xff] }
0x4248   : > { %9526 = vmatprep.mubr.msk.f32.mxu0 %vm9989_vm1, %v9990_v9  ;;  %v9719_v47 = vpack.c.bf16 %v8741_v0, %v8740_v46 }
0x42ac   : > { %v7405_v28 = vpop.xlane.xlu0 %7404 }
0x42ad   : > { %9906 = vrcp.f32 %v7405_v28  ;;  %v8743_v28 = vld [vmem:[%s11507_s24 + $0x38] sm:$0xff] }
0x42b0   : > { %v7409_v36 = vpop.permute.xlu0 %7408 }
0x42b1   : > { %9525 = vmatpush3.msra.mxu0 %v7409_v36 }
0x42b2   : > { %9534 = vmatprep.subr.mxu0 %v9990_v9 }
0x42b7   : > { %v9907_v48 = vpop.eup %9906 }
0x42b8   : > { %v7407_v49 = vmul.f32 %v9907_v48, %v9903_v43  ;;  %v8744_v48 = vld [vmem:[%s11508_s0 + $0x40] sm:$0xff] }
0x42ba   : > { %9527 = vmatmul.mubr.msk.f32.vlgmr.msra.gmra.mrb[80].mxu0 %vm1028_vm2, %v7407_v49  ;;  %v8745_v49 = vld [vmem:[%s11508_s0 + $0x48] sm:$0xff] }
0x42bb   : > { %9535 = vmatpush3.msra.mxu0 %v8718_v50  ;;  %9536 = vmatprep.mubr.msk.f32.mxu0 %vm9989_vm1, %v9990_v9  ;;  %v8746_v50 = vld [vmem:[%s11508_s0 + $0x50] sm:$0xff] }
0x42bc   : > { %9544 = vmatprep.subr.mxu0 %v9990_v9 }
0x431a   : > { %v7315_v23 = vpop.f32.mrb[78].mxu0 }
0x431b   : > { %v9518_v22 = vpop.f32.mrb[79].mxu0  ;;  %9537 = vmatmul.mubr.msk.f32.vlgmr.msra.gmra.mrb[82].mxu0 %vm1028_vm2, %v7315_v23  ;;  %v9725_v23 = vpack.c.bf16 %v8745_v49, %v8744_v48 }
0x431c   : > { %9546 = vmatprep.mubr.msk.f32.mxu0 %vm9989_vm1, %v9990_v9  ;;  %v8747_v22 = vld [vmem:[%s11508_s0 + $0x58] sm:$0xff] }
0x438d   : > { %v7480_v52 = vpop.f32.mrb[80].mxu0 }
0x438e   : > { %v9528_v25 = vpop.f32.mrb[81].mxu0  ;;  %9532 = vmatmul.mubr.msk.f32.vlgmr.msra.gmra.mrb[78].mxu1 %vm1028_vm2, %v7480_v52  ;;  %v8748_v52 = vld [vmem:[%s11508_s0 + $0x60] sm:$0xff] }
0x438f   : > { %9540 = vmatpush3.xpose.msk.msra.mxu1 %vm1028_vm2, %v7633_v51  ;;  %9541 = vmatprep.mubr.msk.f32.mxu1 %vm9989_vm1, %v9990_v9  ;;  %v9728_v51 = vpack.c.bf16 %v8747_v22, %v8746_v50  ;;  %v8749_v25 = vld [vmem:[%s11508_s0 + $0x68] sm:$0xff] }
0x4390   : > { %9549 = vmatprep.subr.mxu1 %v9990_v9 }
0x4392   : > { %9542 = vmatmul.mubr.msk.f32.vlgmr.msra.gmra.mrb[80].mxu1 %vm1028_vm2, %v7631_v26  ;;  %v9731_v26 = vpack.c.bf16 %v8749_v25, %v8748_v52 }
0x4393   : > { %9551 = vmatprep.mubr.msk.f32.mxu1 %vm9989_vm1, %v9990_v9  ;;  %9550 = vmatpush3.msra.mxu1 %v8720_v14 }
0x4394   : > { %9559 = vmatprep.subr.mxu1 %v9990_v9 }
0x43ee   : > { %v7626_v53 = vpop.f32.mrb[82].mxu0 }
0x43ef   : > { %v9538_v39 = vpop.f32.mrb[83].mxu0 }
0x4461   : > { %v7553_v55 = vpop.f32.mrb[78].mxu1 }
0x4462   : > { %v7627_v56 = vadd.f32 %v7626_v53, %v7553_v55  ;;  %v9533_v57 = vpop.f32.mrb[79].mxu1 }
0x4463   : > { %v8739_v57 = vld [vmem:[%s11509_s23 + $0x1] ss:$0 sm:$0xff] }
0x4465   : > { %v7704_v58 = vpop.f32.mrb[80].mxu1 }
0x4466   : > { %v9543_v59 = vpop.f32.mrb[81].mxu1  ;;  %v7708_v63 = vsel %vm1028_vm2, %v7704_v58, -inf }
0x4467   : > { %7709 = vmax.xlane.f32.xlu0 %v7708_v63  ;;  %v8750_v63 = vld [vmem:[%s11508_s0 + $0x70] sm:$0xff] }
0x447d   : > { %7719 = vrot.lane.b32.xlu0 %v11119_v2, %s11492_s9 }
0x4481   : > { %7869 = vrot.lane.b32.xlu0 %v11147_v21, %s11496_s8 }
0x44f4   : > { %v7710_v19 = vpop.xlane.xlu0 %7709 }
0x44f5   : > { %v7711_v3 = vsub.f32 %v7704_v58, %v7710_v19  ;;  %v8751_v19 = vld [vmem:[%s11508_s0 + $0x78] sm:$0xff] }
0x44f7   : > { %v7712_v60 = vmul.f32 1.442695, %v7711_v3  ;;  %v9734_v3 = vpack.c.bf16 %v8751_v19, %v8750_v63 }
0x44f8   : > { %v7720_v11 = vpop.permute.xlu0 %7719 }
0x44f9   : > { %9908 = vpow2.f32 %v7712_v60  ;;  %9545 = vmatpush3.msra.mxu0 %v7720_v11 }
0x44fa   : > { %9554 = vmatprep.subr.mxu0 %v9990_v9 }
0x44fc   : > { %v7870_v13 = vpop.permute.xlu0 %7869 }
0x4503   : > { %v9909_v4 = vpop.eup %9908 }
0x4504   : > { %v7714_v5 = vsel %vm1028_vm2, %v9909_v4, 0.0 }
0x4505   : > { %7715 = vadd.xlane.f32.xlu1 %v7714_v5 }
0x4516   : > { %7871 = vrot.lane.b32.xlu1 %v11119_v2, %s11496_s8  ;;  %s11518_s8 = sld [smem:[#allocation36_spill]] }
0x4592   : > { %v7716_v7 = vpop.xlane.xlu1 %7715 }
0x4593   : > { %9910 = vrcp.f32 %v7716_v7 }
0x4596   : > { %v7872_v12 = vpop.permute.xlu1 %7871 }
0x459d   : > { %v9911_v8 = vpop.eup %9910 }
0x459e   : > { %v7718_v10 = vmul.f32 %v9911_v8, %v9909_v4 }
0x45a0   : > { %9547 = vmatmul.mubr.msk.f32.vlgmr.msra.gmra.mrb[84].mxu0 %vm1028_vm2, %v7718_v10 }
0x45a1   : > { %9555 = vmatpush3.xpose.msk.msra.mxu0 %vm1028_vm2, %v7872_v12  ;;  %9556 = vmatprep.mubr.msk.f32.mxu0 %vm9989_vm1, %v9990_v9  ;;  %v8304_v12 = vld [vmem:[%s11510_s17] sm:$0xff] }
0x45a2   : > { %9564 = vmatprep.subr.mxu0 %v9990_v9 }
0x45a4   : > { %9557 = vmatmul.mubr.msk.f32.vlgmr.msra.gmra.mrb[86].mxu0 %vm1028_vm2, %v7870_v13  ;;  %v8305_v13 = vld [vmem:[%s11510_s17 + $0x8] sm:$0xff] }
0x45a5   : > { %9566 = vmatprep.mubr.msk.f32.mxu0 %vm9989_vm1, %v9990_v9  ;;  %v9737_v14 = vpack.c.bf16 %v8305_v13, %v8304_v12 }
0x4673   : > { %v7791_v16 = vpop.f32.mrb[84].mxu0 }
0x4674   : > { %v9548_v17 = vpop.f32.mrb[85].mxu0  ;;  %9552 = vmatmul.mubr.msk.f32.vlgmr.msra.gmra.mrb[82].mxu1 %vm1028_vm2, %v7791_v16  ;;  %v8306_v16 = vld [vmem:[%s11510_s17 + $0x10] sm:$0xff] }
0x4675   : > { %9561 = vmatprep.mubr.msk.f32.mxu1 %vm9989_vm1, %v9990_v9  ;;  %v8307_v17 = vld [vmem:[%s11510_s17 + $0x18] sm:$0xff] }
0x4677   : > { %v7943_v20 = vpop.f32.mrb[86].mxu0 }
0x4678   : > { %v9558_v21 = vpop.f32.mrb[87].mxu0  ;;  %v7947_v27 = vsel %vm1028_vm2, %v7943_v20, -inf }
0x4679   : > { %7948 = vmax.xlane.f32.xlu1 %v7947_v27 }
0x4706   : > { %v7949_v29 = vpop.xlane.xlu1 %7948 }
0x4707   : > { %v7950_v30 = vsub.f32 %v7943_v20, %v7949_v29  ;;  %v9740_v20 = vpack.c.bf16 %v8307_v17, %v8306_v16 }
0x4709   : > { %v7951_v31 = vmul.f32 1.442695, %v7950_v30 }
0x470b   : > { %9912 = vpow2.f32 %v7951_v31 }
0x4715   : > { %v9913_v32 = vpop.eup %9912 }
0x4716   : > { %v7953_v62 = vsel %vm1028_vm2, %v9913_v32, 0.0 }
0x4717   : > { %7954 = vadd.xlane.f32.xlu0 %v7953_v62  ;;  %v10002_v62 = vmov 0  }
0x4718   : > { %9796 = vset.pattern.permute.xlu1 %v10002_v62  ;;  %9797 = vset.pattern.permute.xlu0 %v10002_v62 }
0x472d   : > { %7958 = vrot.lane.b32.xlu0 %v11119_v2, %s11497_s10  ;;  %v8721_v2 = vld [vmem:[%s11506_s25 + $0x38] sm:$0xff]  ;;  %s8565_s10 = sshll.u32 %s889_s6, 3 }
0x472e   : > { %9565 = vmatpush3.msra.mxu0 %v8721_v2  ;;  %s891_s13 = scalar_lea.vmem [#allocation2], %s8565_s10  ;;  %v8391_v2 = vand.u32 127, %v3565_v24  ;;  %s11320_s10 = scalar_lea.hbm %s11518_s8, %s8758_s3 }
0x472f   : > { %9724 = vmatprep.subr.bf16.mxu0 %v9988_v6  ;;  %s8435_s30 = sshll.u32 %s891_s13, 4  ;;  %s8436_s30 = int_to_ptr.vmem [resolvable:$true] %s8435_s30 }
0x4730   : > { %s9924_s28 = scalar_lea.vmem %s8436_s30, 128 }
0x4731   : > { %p9925_p11 = scmp.ne.s32.totalorder %s8436_s30, %s9924_s28 }
0x4733   : > { %p9926_p12 = pnand %p9925_p11, %p10187_p5 }
0x4735   : > { %p9927_p13 = pneg %p9926_p12 }
0x4747   : > { %v7864_v1 = vpop.f32.mrb[82].mxu1 }
0x4748   : > { %v7868_v33 = vadd.f32 %v7864_v1, %v7627_v56  ;;  %v9553_v34 = vpop.f32.mrb[83].mxu1  ;;  %v8755_v1 = vld [vmem:[%s11513_s7] ss:$0 sm:$0xff]  ;;  %s10003_s7 = smov [#allocation2]  }
0x4749   : > { %s9928_s29 = sshll.u32 %s10003_s7, 4  ;;  %s9929_s29 = int_to_ptr.vmem [resolvable:$false] %s9928_s29 }
0x474a   : > { %s9930_s26 = scalar_lea.vmem %s9929_s29, 256  ;;  %p9931_p0 = scmp.lt.s32.totalorder %s8436_s30, %s9929_s29 }
0x474b   : > { %p9932_p1 = scmp.lt.s32.totalorder %s9930_s26, %s9924_s28 }
0x474d   : > { %p9933_p2 = por %p9932_p1, %p9931_p0 }
0x474f   : > { %p9934_p3 = pnand %p9933_p2, %p9927_p13 }
0x47a4   : > { %v7955_v35 = vpop.xlane.xlu0 %7954 }
0x47a5   : > { %9914 = vrcp.f32 %v7955_v35 }
0x47a8   : > { %v7959_v54 = vpop.permute.xlu0 %7958 }
0x47a9   : > { %9560 = vmatpush3.msra.mxu1 %v7959_v54  ;;  %v8389_v54 = vld [vmem:[%s917_s5] sm:$0xff] }
0x47aa   : > { %9718 = vmatprep.subr.bf16.mxu1 %v9988_v6 }
0x47af   : > { %v9915_v37 = vpop.eup %9914 }
0x47b0   : > { %v7957_v38 = vmul.f32 %v9915_v37, %v9913_v32 }
0x47b2   : > { %9562 = vmatmul.mubr.msk.f32.vlgmr.msra.gmra.mrb[84].mxu1 %vm1028_vm2, %v7957_v38 }
0x47b3   : > { %9577 = vmatprep.mubr.msk.f32.mxu1 %vm9989_vm1, %v9990_v9  ;;  %9720 = vmatpush3.bf16.msra.mxu1 %v9719_v47 }
0x47b4   : > { %9721 = vmatprep.subr.bf16.mxu1 %v9988_v6 }
0x4885   : > { %v8030_v15 = vpop.f32.mrb[84].mxu1 }
0x4886   : > { %v9563_v40 = vpop.f32.mrb[85].mxu1  ;;  %9567 = vmatmul.mubr.msk.f32.vlgmr.msra.gmra.mrb[88].mxu0 %vm1028_vm2, %v8030_v15 }
0x4887   : > { %9596 = vmatprep.mubr.msk.f32.mxu0 %vm9989_vm1, %v9990_v9  ;;  %9726 = vmatpush3.bf16.msra.mxu0 %v9725_v23 }
0x4888   : > { %9727 = vmatprep.subr.bf16.mxu0 %v9988_v6 }
0x488b   : > { %9729 = vmatpush3.bf16.msra.mxu0 %v9728_v51 }
0x488c   : > { %9730 = vmatprep.subr.bf16.mxu0 %v9988_v6 }
0x488f   : > { %9732 = vmatpush3.bf16.msra.mxu0 %v9731_v26 }
0x4890   : > { %9733 = vmatprep.subr.bf16.mxu0 %v9988_v6 }
0x4893   : > { %9735 = vmatpush3.bf16.msra.mxu0 %v9734_v3 }
0x4959   : > { %v8103_v41 = vpop.f32.mrb[88].mxu0 }
0x495a   : > { %v8107_v18 = vadd.f32 %v8103_v41, %v7868_v33  ;;  %v9568_v42 = vpop.f32.mrb[89].mxu0 }
0x495c   : > { %v8108_v43 = vadd.f32 %v8107_v18, %v11114_v61  ;;  %v8742_v61 = vld [vmem:[%s11507_s24 + $0x30] sm:$0xff] }
0x495d   : > { %v9722_v36 = vpack.c.bf16 %v8743_v28, %v8742_v61 }
0x495e   : > { %v8111_v44 = vmul.f32 %v8108_v43, %v8108_v43 }
0x495f   : > { %9723 = vmatpush3.bf16.msra.mxu1 %v9722_v36 }
0x4960   : > { %v8112_v45 = vsel %vm928_vm0, %v8111_v44, 0.0  ;;  %9736 = vmatprep.subr.bf16.mxu1 %v9988_v6 }
0x4961   : > { %8113 = vadd.xlane.f32.xlu1 %v8112_v45 }
0x49ee   : > { %v8114_v53 = vpop.xlane.xlu1 %8113 }
0x49ef   : > { %v8115_v39 = vmul.f32 0.03125, %v8114_v53 }
0x49f1   : > { %v8116_v55 = vadd.f32 1e-06, %v8115_v39 }
0x49f3   : > { %9916 = vrsqrt.f32 %v8116_v55 }
0x49fd   : > { %v9917_v56 = vpop.eup %9916 }
0x49fe   : > { %v8118_v58 = vmul.f32 %v9917_v56, %v8108_v43 }
0x4a00   : > { %v8125_v59 = vmul.f32 %v8739_v57, %v8118_v58 }
0x4a02   : > { %9578 = vmatmul.mubr.msk.f32.vlgmr.msra.gmra.mrb[86].mxu1 %vm928_vm0, %v8125_v59 }
0x4a03   : > { %9607 = vmatprep.mubr.msk.f32.mxu1 %vm9989_vm1, %v9990_v9  ;;  %9738 = vmatpush3.bf16.msra.mxu1 %v9737_v14 }
0x4a04   : > { %9739 = vmatprep.subr.bf16.mxu1 %v9988_v6  ;;  %v8754_v6 = vld [vmem:[%s11512_s21] ss:$0 sm:$0xff]  ;;  %s11519_s21 = smov %s11518_s8 }
0x4a07   : > { %9741 = vmatpush3.bf16.msra.mxu1 %v9740_v20 }
0x4ad5   : > { %v8209_v60 = vpop.f32.mrb[86].mxu1 }
0x4ad6   : > { %v8213_v11 = vmax.f32 %v8209_v60, 0.0  ;;  %v9579_v4 = vpop.f32.mrb[87].mxu1 }
0x4ad8   : > { %9597 = vmatmul.mubr.msk.f32.vlgmr.msra.gmra.mrb[90].mxu0 %vm2082_vm3, %v8213_v11 }
0x4bab   : > { %v8283_v5 = vpop.f32.mrb[90].mxu0 }
0x4bac   : > { %v8287_v7 = vadd.f32 %v8283_v5, %v8108_v43  ;;  %v9598_v8 = vpop.f32.mrb[91].mxu0 }
0x4bae   : > { %v8289_v10 = vmul.f32 %v8287_v7, %v8287_v7 }
0x4bb0   : > { %v8290_v9 = vsel %vm928_vm0, %v8289_v10, 0.0 }
0x4bb1   : > { %8291 = vadd.xlane.f32.xlu1 %v8290_v9 }
0x4c3e   : > { %v8292_v21 = vpop.xlane.xlu1 %8291 }
0x4c3f   : > { %v8293_v27 = vmul.f32 0.03125, %v8292_v21 }
0x4c41   : > { %v8294_v29 = vadd.f32 1e-06, %v8293_v27 }
0x4c43   : > { %9918 = vrsqrt.f32 %v8294_v29 }
0x4c4d   : > { %v9919_v30 = vpop.eup %9918 }
0x4c4e   : > { %v8296_v31 = vmul.f32 %v9919_v30, %v8287_v7 }
0x4c50   : > { %v8303_v32 = vmul.f32 %v8754_v6, %v8296_v31 }
0x4c52   : > { %9608 = vmatmul.mubr.msk.f32.vlgmr.msra.gmra.mrb[88].mxu1 %vm928_vm0, %v8303_v32 }
0x4d25   : > { %v8384_v33 = vpop.f32.mrb[88].mxu1 }
0x4d26   : > { %v8385_v34 = vadd.f32 %v8755_v1, %v8384_v33  ;;  %v9609_v35 = vpop.f32.mrb[89].mxu1 }
0x4d28   : > { %8399 = vmax.xlane.f32.xlu1 %v8385_v34  ;;  %8388 = vst [vmem:[%s891_s13] sm:$0xff] %v8385_v34 }
0x4d39   : > { %8393 = vperm.xlu1 %9796, %v8389_v54  }
0x4db5   : > { %v8400_v37 = vpop.xlane.xlu1 %8399 }
0x4db6   : > { %v8401_v38 = vsub.f32 %v8385_v34, %v8400_v37 }
0x4db8   : > { %v8402_v15 = vmul.f32 1.442695, %v8401_v38 }
0x4db9   : > { %v8394_v40 = vpop.permute.xlu1 %8393 }
0x4dba   : > { %9920 = vpow2.f32 %v8402_v15  ;;  %vm8395_vm5 = vcmp.eq.s32.totalorder %v8391_v2, %v8394_v40 }
0x4dbb   : > { %v8396_v41 = vsel %vm8395_vm5, %v8385_v34, 0.0 }
0x4dbc   : > { %8397 = vadd.xlane.f32.xlu0 %v8396_v41 }
0x4dc4   : > { %v9921_v18 = vpop.eup %9920 }
0x4dc5   : > { %8404 = vadd.xlane.f32.xlu1 %v9921_v18 }
0x4dc6   : > { %9937 = shalt.err (!%p9934_p3)
}
0x4dc7   : > { %s9938_s6 = scalar_lea.hbm %s11320_s10, 128  ;;  %s9942_s1 = scalar_lea.hbm %s11519_s21, 256 }
0x4dc8   : > { %p9939_p4 = scmp.ne.s32.totalorder %s11320_s10, %s9938_s6  ;;  %p9943_p9 = scmp.lt.u32.totalorder %s11320_s10, %s11519_s21 }
0x4dc9   : > { %p9944_p10 = scmp.lt.u32.totalorder %s9942_s1, %s9938_s6  ;;  %p9946_p12 = scmp.lt.u32.totalorder %s9938_s6, %s11320_s10 }
0x4dca   : > { %p9940_p7 = pnand %p9939_p4, %p10187_p5 }
0x4dcb   : > { %p9945_p11 = por %p9944_p10, %p9943_p9 }
0x4dcc   : > { %p9941_p8 = pneg %p9940_p7 }
0x4dcd   : > { %p9947_p13 = por %p9946_p12, %p9945_p11 }
0x4dcf   : > { %p9948_p0 = pnand %p9947_p13, %p9941_p8 }
0x4dd1   : > { %9951 = shalt.err (!%p9948_p0)
}
0x4dd2   : > { %9742 = dma.vmem_to_hbm [thread:$0]  (%p10187_p5), %s8436_s30, 128, %s11320_s10, %s8419_s2   ;;  %vm8416_vm6 = vcmask 0  }
0x4dd3   : > { %s11520_s9 = sld [smem:[#allocation37_spill]] }
0x4dd9   : > { %s920_s8 = scalar_lea.vmem %s11520_s9, %s10199_s12 }
0x4e49   : > { %v8398_v45 = vpop.xlane.xlu0 %8397 }
0x4e52   : > { %v8405_v24 = vpop.xlane.xlu1 %8404 }
0x4e53   : > { %9922 = vlog2.f32 %v8405_v24 }
0x4e5d   : > { %v9923_v42 = vpop.eup %9922 }
0x4e5e   : > { %v8407_v43 = vmul.f32 0.6931472, %v9923_v42 }
0x4e60   : > { %v8408_v44 = vadd.f32 %v8407_v43, %v8400_v37 }
0x4e62   : > { %v8409_v46 = vsub.f32 %v8408_v44, %v8398_v45 }
0x4e64   : > { %v8410_v0 = vrot.slane %v8409_v46, 4 }
0x4e66   : > { %v8411_v47 = vadd.f32 %v8410_v0, %v8409_v46 }
0x4e68   : > { %v8412_v61 = vrot.slane %v8411_v47, 2 }
0x4e6a   : > { %v8413_v28 = vadd.f32 %v8412_v61, %v8411_v47 }
0x4e6c   : > { %v8414_v36 = vrot.slane %v8413_v28, 1 }
0x4e6e   : > { %v8415_v48 = vadd.f32 %v8414_v36, %v8413_v28 }
0x4e70   : > { %8417 = vst.msk [vmem:[%s920_s8] sm:$0x1] %vm8416_vm6, %v8415_v48 }
0x4e71 PF: > { %s11521_s27 = sld [smem:[#allocation8_spill]]  ;;  %s11522_s30 = sld [smem:[#allocation5_spill]] }
0x4e77   : > { %p9748_p5 = scmp.ge.s32.totalorder %s11521_s27, 2  ;;  %s8450_s2 = sand.u32 1, %s11522_s30  }
0x4e78   : > { %s8451_s28 = scalar_lea.sflag [#allocation3], %s8450_s2 }
0x4e79   : > { %p9745_p1 = pnand %p9748_p5, %p10191_p6 }
0x4e7b   : > { %9969 = dma.done.wait (!%p9745_p1), %s8451_s28, 128  }
0x4e7c   : > { %9971 = vsyncadd (!%p9745_p1), %s8451_s28, 4294967168  ;;  %s11524_s30 = sld [smem:[#allocation10_spill]]  ;;  %s11525_s8 = sld [smem:[#allocation6_spill]] }
0x4e7d   : > { %s11526_s5 = sld [smem:[#allocation7_spill]]  ;;  %s11527_s9 = sld [smem:[#allocation11_spill]] }
0x4e82   : > { %p39_p2 = scmp.ge.s32.totalorder %s11524_s30, 4  }
0x4e84   :  { %41 = sbr.rel (!%p39_p2) target bundleno = 28 (0x1c), region = 203 }
0x4e8b   :  { %8462 = vsyncpa [#allocation3], 1 }
0x4e8c   :  { %8464 = vsyncpa [#allocation3 + $0x1], 1 }

</bundles_post_ra>
